<compile_context>
chip_gen: v5e
topology: v5e:2x2
jax: 0.10.0
libtpu: 0.0.40
codegen_flags: <defaults>
</compile_context>

<pallas_src>
import functools

import jax
import jax.numpy as jnp
import numpy as np
from jax.experimental import pallas as pl
from jax.experimental.pallas import tpu as pltpu


# ----------------------------------------------------------------------------
# Pallas kernel: one grid step processes Bw windows (Bw = wb * nW).
# ----------------------------------------------------------------------------
def _window_attn_kernel(x_ref, wqkv_ref, bqkv_ref, bias_ref, wproj_ref, bproj_ref,
                        o_ref, *, num_heads):
    """
    x_ref:     (Bw*N, C)    f32  token rows for Bw windows
    wqkv_ref:  (C, 3C)      bf16 qkv weight^T (1/sqrt(Dh) folded into Q columns)
    bqkv_ref:  (1, 3C)      f32  qkv bias (Q part pre-scaled)
    bias_ref:  (H*Bw, N, N) bf16 rel-pos bias + shift mask, pre-tiled per block
    wproj_ref: (C, C)       bf16 output projection weight^T
    bproj_ref: (1, C)       f32
    o_ref:     (Bw*N, C)
    """
    H = num_heads
    R, C = x_ref.shape                 # R = Bw * N
    HB, N, _ = bias_ref.shape          # HB = H * Bw
    Bw = HB // H
    Dh = C // H

    # ---- QKV projection: one (Bw*N, C) @ (C, 3C) GEMM, bf16 operands / f32 acc.
    qkv = jnp.dot(x_ref[...].astype(jnp.bfloat16), wqkv_ref[...],
                  preferred_element_type=jnp.float32)
    qkv = qkv + bqkv_ref[...]          # (R, 3C) f32; scale already folded into Q

    # ---- Gather heads into one batched axis z = h*Bw + b (window-within-block).
    # Only static lane slices + major-dim reshapes + major-dim concat (all safe).
    def head_batch(col0):
        parts = [qkv[:, col0 + h * Dh: col0 + (h + 1) * Dh].reshape(Bw, N, Dh)
                 for h in range(H)]
        return jnp.concatenate(parts, axis=0)                        # (H*Bw, N, Dh)

    q = head_batch(0)
    k = head_batch(C)
    v = head_batch(2 * C)

    # ---- Attention logits for all windows & heads in one batched MXU stream.
    attn = jnp.einsum('znd,zmd->znm',
                      q.astype(jnp.bfloat16), k.astype(jnp.bfloat16),
                      preferred_element_type=jnp.float32)            # (H*Bw, N, N)

    # ---- Pre-combined (rel-pos bias + shift mask): one f32 elementwise add.
    attn = attn + bias_ref[...].astype(jnp.float32)

    # ---- Softmax in f32; denominator via EUP approximate reciprocal (VALU-free).
    attn = attn - jnp.max(attn, axis=-1, keepdims=True)
    p = jnp.exp(attn)
    p = p * pl.reciprocal(jnp.sum(p, axis=-1, keepdims=True), approx=True)

    # ---- (p @ v) for all windows & heads, one batched MXU stream.
    o = jnp.einsum('znm,zmd->znd',
                   p.astype(jnp.bfloat16), v.astype(jnp.bfloat16),
                   preferred_element_type=jnp.float32)               # (H*Bw, N, Dh)

    # ---- Re-assemble heads along channels, then ONE K=C projection GEMM.
    o_cat = jnp.concatenate(
        [o[h * Bw:(h + 1) * Bw].reshape(R, Dh) for h in range(H)], axis=-1)  # (R, C)
    out = jnp.dot(o_cat.astype(jnp.bfloat16), wproj_ref[...],
                  preferred_element_type=jnp.float32) + bproj_ref[...]
    o_ref[...] = out.astype(o_ref.dtype)


# ----------------------------------------------------------------------------
# Block-size selection: largest window block that (a) keeps >= 2 grid steps when
# the batch allows (v7x megacore + pipelining) and (b) fits a VMEM budget.
# ----------------------------------------------------------------------------
def _vmem_bytes_estimate(Bw, N, C, H):
    rows = Bw * N
    x_out = 2 * 2 * rows * C * 4                  # double-buffered f32 x + out blocks
    weights = 2 * (C * 3 * C + C * C) * 2         # bf16 W_qkv + W_proj
    biases = 2 * 4 * (4 * C)                      # f32 qkv / proj biases
    bias_mask = 2 * H * Bw * N * N * 2            # bf16 pre-tiled bias+mask
    inter = (rows * 3 * C * 4 * 2                 # qkv + q/k/v copies
             + H * Bw * N * N * 4 * 3             # attn + softmax temps
             + rows * C * 4 * 3)                  # o_cat / out temps
    return x_out + weights + biases + bias_mask + inter


def _choose_block_windows(B_, nW, N, C, H, vmem_budget_bytes, min_grid_steps=2):
    batch = B_ // nW
    best = nW                                     # wb = 1 is always legal
    for wb in range(1, batch + 1):
        if batch % wb:
            continue
        Bw = wb * nW
        steps = B_ // Bw
        if steps < min(min_grid_steps, batch):    # keep >= 2 steps when possible
            continue
        if _vmem_bytes_estimate(Bw, N, C, H) > vmem_budget_bytes:
            continue
        best = Bw
    return best


# ----------------------------------------------------------------------------
# Wrapper
# ----------------------------------------------------------------------------
def window_attention_pallas(x, w_qkv_scaled, b_qkv_scaled, rel_bias, mask,
                            w_proj, b_proj, num_heads,
                            block_windows=None, vmem_budget_bytes=16 << 20):
    """
    x:            (B_, N, C)   windows (num_windows*batch, Wh*Ww, dim), f32
    w_qkv_scaled: (C, 3C)      qkv weight^T with 1/sqrt(Dh) folded into Q cols
    b_qkv_scaled: (1, 3C)      qkv bias with 1/sqrt(Dh) folded into Q part
    rel_bias:     (H, N, N)    relative position bias (already gathered)
    mask:         (nW, N, N)   shifted-window mask (0 / -100)
    w_proj:       (C, C)       output projection weight^T
    b_proj:       (1, C)
    """
    B_, N, C = x.shape
    H = num_heads
    nW = mask.shape[0]
    assert C % H == 0 and B_ % nW == 0

    if block_windows is None:
        block_windows = _choose_block_windows(B_, nW, N, C, H, vmem_budget_bytes)
    Bw = block_windows
    assert B_ % Bw == 0 and Bw % nW == 0, (B_, Bw, nW)   # keeps the mask mapping valid
    wb = Bw // nW
    R = Bw * N

    # Pre-combine bias + mask and pre-tile to the block ordering z = h*Bw + b
    # (window b within a block uses mask[b % nW]); store bf16 (VMEM-resident).
    mask_rep = jnp.tile(mask, (wb, 1, 1))                              # (Bw, N, N)
    bias_full = rel_bias[:, None, :, :] + mask_rep[None, :, :, :]      # (H, Bw, N, N)
    bias_full = bias_full.reshape(H * Bw, N, N).astype(jnp.bfloat16)

    # bf16 weights for the MXU (f32 accumulation in-kernel); biases stay f32.
    wqkv_bf = w_qkv_scaled.astype(jnp.bfloat16)
    wproj_bf = w_proj.astype(jnp.bfloat16)

    # Contiguous token-row view: each grid step reads/writes one (Bw*N, C) slab.
    x2 = x.reshape(B_ * N, C)

    kernel = functools.partial(_window_attn_kernel, num_heads=H)
    vmem_limit = int(min(max(4 * _vmem_bytes_estimate(Bw, N, C, H), 8 << 20), 64 << 20))

    out2 = pl.pallas_call(
        kernel,
        out_shape=jax.ShapeDtypeStruct((B_ * N, C), x.dtype),
        grid=(B_ // Bw,),
        in_specs=[
            pl.BlockSpec((R, C), lambda b: (b, 0)),                  # x token rows
            pl.BlockSpec((C, 3 * C), lambda b: (0, 0)),              # W_qkv^T (bf16, scaled)
            pl.BlockSpec((1, 3 * C), lambda b: (0, 0)),              # b_qkv (f32, scaled)
            pl.BlockSpec((H * Bw, N, N), lambda b: (0, 0, 0)),       # bias+mask (bf16)
            pl.BlockSpec((C, C), lambda b: (0, 0)),                  # W_proj^T (bf16)
            pl.BlockSpec((1, C), lambda b: (0, 0)),                  # b_proj (f32)
        ],
        out_specs=pl.BlockSpec((R, C), lambda b: (b, 0)),
        compiler_params=pltpu.CompilerParams(
            dimension_semantics=("parallel",),
            vmem_limit_bytes=vmem_limit),
    )(x2, wqkv_bf, b_qkv_scaled, bias_full, wproj_bf, b_proj)
    return out2.reshape(B_, N, C)


# ----------------------------------------------------------------------------
# Pure-JAX f32 reference (mirrors the PyTorch forward) for correctness checking.
# ----------------------------------------------------------------------------
def window_attention_ref(x, w_qkv, b_qkv, rel_bias, mask, w_proj, b_proj,
                         num_heads, scale):
    B_, N, C = x.shape
    Dh = C // num_heads
    nW = mask.shape[0]
    qkv = x @ w_qkv + b_qkv[0]                                    # (B_, N, 3C)
    qkv = qkv.reshape(B_, N, 3, num_heads, Dh).transpose(2, 0, 3, 1, 4)
    q, k, v = qkv[0], qkv[1], qkv[2]                              # (B_, H, N, Dh)
    q = q * scale
    attn = jnp.einsum('bhnd,bhmd->bhnm', q, k)
    attn = attn + rel_bias[None]
    attn = attn.reshape(B_ // nW, nW, num_heads, N, N) + mask[None, :, None]
    attn = attn.reshape(B_, num_heads, N, N)
    attn = jax.nn.softmax(attn, axis=-1)
    out = jnp.einsum('bhnm,bhmd->bhnd', attn, v)
    out = out.transpose(0, 2, 1, 3).reshape(B_, N, C)
    return out @ w_proj + b_proj[0]


# ----------------------------------------------------------------------------
# Parameter / buffer construction (matches the module __init__, host-side numpy).
# ----------------------------------------------------------------------------
def build_relative_position_index(window_size):
    Wh, Ww = window_size
    coords = np.stack(np.meshgrid(np.arange(Wh), np.arange(Ww), indexing='ij'))
    coords_flatten = coords.reshape(2, -1)                         # (2, N)
    rel = coords_flatten[:, :, None] - coords_flatten[:, None, :]  # (2, N, N)
    rel = rel.transpose(1, 2, 0).astype(np.int64)                  # (N, N, 2)
    rel[:, :, 0] += Wh - 1
    rel[:, :, 1] += Ww - 1
    rel[:, :, 0] *= 2 * Ww - 1
    return rel.sum(-1)                                             # (N, N)


def build_shift_mask(feat_hw, window, shift):
    # Standard Swin shifted-window attention mask: (nW, N, N) with 0 / -100.
    Hh, Ww = feat_hw
    img_mask = np.zeros((Hh, Ww), dtype=np.float32)
    slices = (slice(0, -window), slice(-window, -shift), slice(-shift, None))
    cnt = 0
    for hs in slices:
        for ws in slices:
            img_mask[hs, ws] = cnt
            cnt += 1
    win = img_mask.reshape(Hh // window, window, Ww // window, window)
    win = win.transpose(0, 2, 1, 3).reshape(-1, window * window)   # (nW, N)
    diff = win[:, None, :] - win[:, :, None]
    return np.where(diff != 0, -100.0, 0.0).astype(np.float32)     # (nW, N, N)


if __name__ == "__main__":
    # Small configuration: dim=32, window 4x4 -> N=16, 4 heads, feature map 8x8,
    # shift 2 -> nW=4 windows, batch=4 -> B_ = 16 windows (grid of >= 2 steps).
    dim = 32
    num_heads = 4
    window_size = (4, 4)
    feat_hw = (8, 8)
    shift = 2
    batch = 4

    Wh, Ww = window_size
    N = Wh * Ww
    head_dim = dim // num_heads
    scale = head_dim ** (-0.5)
    nW = (feat_hw[0] // Wh) * (feat_hw[1] // Ww)
    B_ = batch * nW

    key = jax.random.PRNGKey(0)
    k_x, k_tbl, k_wq, k_bq, k_wp, k_bp = jax.random.split(key, 6)

    # Input windows (num_windows*B, Wh*Ww, C)
    x = jax.random.normal(k_x, (B_, N, dim), dtype=jnp.float32)

    # relative_position_bias_table: ((2Wh-1)*(2Ww-1), num_heads), trunc_normal std=0.02
    table_size = (2 * Wh - 1) * (2 * Ww - 1)
    rel_table = 0.02 * jax.random.truncated_normal(
        k_tbl, -2.0, 2.0, (table_size, num_heads), dtype=jnp.float32)

    # qkv / proj linear parameters (stored transposed: (in, out)).
    w_qkv = 0.1 * jax.random.normal(k_wq, (dim, 3 * dim), dtype=jnp.float32)
    b_qkv = 0.1 * jax.random.normal(k_bq, (1, 3 * dim), dtype=jnp.float32)
    w_proj = 0.1 * jax.random.normal(k_wp, (dim, dim), dtype=jnp.float32)
    b_proj = 0.1 * jax.random.normal(k_bp, (1, dim), dtype=jnp.float32)

    # Relative position bias, gathered outside the kernel (pure indexing glue):
    rel_index = build_relative_position_index(window_size)              # (N, N)
    rel_bias = rel_table[rel_index.reshape(-1)].reshape(N, N, num_heads)
    rel_bias = jnp.transpose(rel_bias, (2, 0, 1)).astype(jnp.float32)   # (H, N, N)

    # Shifted-window attention mask (nW, N, N)
    mask = jnp.asarray(build_shift_mask(feat_hw, Wh, shift))

    # ---- one-time parameter preparation for the kernel (offline) -------------
    # Fold 1/sqrt(Dh) into the Q columns of W_qkv and the Q part of b_qkv.
    w_qkv_scaled = w_qkv.at[:, :dim].multiply(scale)
    b_qkv_scaled = b_qkv.at[:, :dim].multiply(scale)

    out = window_attention_pallas(x, w_qkv_scaled, b_qkv_scaled, rel_bias, mask,
                                  w_proj, b_proj, num_heads)
    out = jax.block_until_ready(out)

    ref = window_attention_ref(x, w_qkv, b_qkv, rel_bias, mask,
                               w_proj, b_proj, num_heads, scale)
    # Tolerance accounts for bf16 MXU operands (f32 accumulation), bf16 bias/mask
    # storage and the EUP approximate reciprocal in the softmax denominator.
    np.testing.assert_allclose(np.asarray(out), np.asarray(ref),
                               atol=2e-2, rtol=2e-2)

    print("KERNEL_OK")
</pallas_src>

<mosaic_0001>
module attributes {stable_mosaic.version = 11 : i64} {
  func.func @_window_attn_kernel(%arg0: i32, %arg1: memref<128x32xf32, #tpu.memory_space<vmem>>, %arg2: memref<32x96xbf16, #tpu.memory_space<vmem>>, %arg3: memref<1x96xf32, #tpu.memory_space<vmem>>, %arg4: memref<32x16x16xbf16, #tpu.memory_space<vmem>>, %arg5: memref<32x32xbf16, #tpu.memory_space<vmem>>, %arg6: memref<1x32xf32, #tpu.memory_space<vmem>>, %arg7: memref<128x32xf32, #tpu.memory_space<vmem>>) attributes {dimension_semantics = [#tpu.dimension_semantics<parallel>], iteration_bounds = array<i64: 2>, scalar_prefetch = 0 : i64, scratch_operands = 0 : i64, tpu.core_type = #tpu.core_type<tc>, window_params = [{transform_indices = @transform_0, window_bounds = array<i64: 128, 32>}, {pipeline_mode = #tpu.pipeline_mode<synchronous>, transform_indices = @transform_1, window_bounds = array<i64: 32, 96>}, {pipeline_mode = #tpu.pipeline_mode<synchronous>, transform_indices = @transform_2, window_bounds = array<i64: 1, 96>}, {pipeline_mode = #tpu.pipeline_mode<synchronous>, transform_indices = @transform_3, window_bounds = array<i64: 32, 16, 16>}, {pipeline_mode = #tpu.pipeline_mode<synchronous>, transform_indices = @transform_4, window_bounds = array<i64: 32, 32>}, {pipeline_mode = #tpu.pipeline_mode<synchronous>, transform_indices = @transform_5, window_bounds = array<i64: 1, 32>}, {transform_indices = @transform_6, window_bounds = array<i64: 128, 32>}]} {
    %c0 = arith.constant 0 : index
    %c0_0 = arith.constant 0 : index
    %0 = vector.load %arg1[%c0, %c0_0] : memref<128x32xf32, #tpu.memory_space<vmem>>, vector<128x32xf32>
    %1 = arith.truncf %0 : vector<128x32xf32> to vector<128x32xbf16>
    %c0_1 = arith.constant 0 : index
    %c0_2 = arith.constant 0 : index
    %2 = vector.load %arg2[%c0_1, %c0_2] : memref<32x96xbf16, #tpu.memory_space<vmem>>, vector<32x96xbf16>
    %cst = arith.constant dense<0.000000e+00> : vector<128x96xf32>
    %3 = tpu.matmul %1, %2, %cst {dimension_numbers = #tpu.dot_dimension_numbers<[1], [0], [0], [1], [0, 0, 1, 1], [], []>} : vector<128x32xbf16>, vector<32x96xbf16>, vector<128x96xf32> -> vector<128x96xf32>
    %c0_3 = arith.constant 0 : index
    %c0_4 = arith.constant 0 : index
    %4 = vector.load %arg3[%c0_3, %c0_4] : memref<1x96xf32, #tpu.memory_space<vmem>>, vector<1x96xf32>
    %5 = vector.broadcast %4 : vector<1x96xf32> to vector<128x96xf32>
    %6 = arith.addf %3, %5 : vector<128x96xf32>
    %7 = vector.extract_strided_slice %6 {offsets = [0, 0], sizes = [128, 8], strides = [1, 1]} : vector<128x96xf32> to vector<128x8xf32>
    %8 = vector.shape_cast %7 : vector<128x8xf32> to vector<8x16x8xf32>
    %9 = vector.extract_strided_slice %6 {offsets = [0, 8], sizes = [128, 8], strides = [1, 1]} : vector<128x96xf32> to vector<128x8xf32>
    %10 = vector.shape_cast %9 : vector<128x8xf32> to vector<8x16x8xf32>
    %11 = vector.extract_strided_slice %6 {offsets = [0, 16], sizes = [128, 8], strides = [1, 1]} : vector<128x96xf32> to vector<128x8xf32>
    %12 = vector.shape_cast %11 : vector<128x8xf32> to vector<8x16x8xf32>
    %13 = vector.extract_strided_slice %6 {offsets = [0, 24], sizes = [128, 8], strides = [1, 1]} : vector<128x96xf32> to vector<128x8xf32>
    %14 = vector.shape_cast %13 : vector<128x8xf32> to vector<8x16x8xf32>
    %15 = tpu.concatenate %8, %10, %12, %14 in 0 : vector<8x16x8xf32>, vector<8x16x8xf32>, vector<8x16x8xf32>, vector<8x16x8xf32> -> vector<32x16x8xf32>
    %16 = vector.extract_strided_slice %6 {offsets = [0, 32], sizes = [128, 8], strides = [1, 1]} : vector<128x96xf32> to vector<128x8xf32>
    %17 = vector.shape_cast %16 : vector<128x8xf32> to vector<8x16x8xf32>
    %18 = vector.extract_strided_slice %6 {offsets = [0, 40], sizes = [128, 8], strides = [1, 1]} : vector<128x96xf32> to vector<128x8xf32>
    %19 = vector.shape_cast %18 : vector<128x8xf32> to vector<8x16x8xf32>
    %20 = vector.extract_strided_slice %6 {offsets = [0, 48], sizes = [128, 8], strides = [1, 1]} : vector<128x96xf32> to vector<128x8xf32>
    %21 = vector.shape_cast %20 : vector<128x8xf32> to vector<8x16x8xf32>
    %22 = vector.extract_strided_slice %6 {offsets = [0, 56], sizes = [128, 8], strides = [1, 1]} : vector<128x96xf32> to vector<128x8xf32>
    %23 = vector.shape_cast %22 : vector<128x8xf32> to vector<8x16x8xf32>
    %24 = tpu.concatenate %17, %19, %21, %23 in 0 : vector<8x16x8xf32>, vector<8x16x8xf32>, vector<8x16x8xf32>, vector<8x16x8xf32> -> vector<32x16x8xf32>
    %25 = vector.extract_strided_slice %6 {offsets = [0, 64], sizes = [128, 8], strides = [1, 1]} : vector<128x96xf32> to vector<128x8xf32>
    %26 = vector.shape_cast %25 : vector<128x8xf32> to vector<8x16x8xf32>
    %27 = vector.extract_strided_slice %6 {offsets = [0, 72], sizes = [128, 8], strides = [1, 1]} : vector<128x96xf32> to vector<128x8xf32>
    %28 = vector.shape_cast %27 : vector<128x8xf32> to vector<8x16x8xf32>
    %29 = vector.extract_strided_slice %6 {offsets = [0, 80], sizes = [128, 8], strides = [1, 1]} : vector<128x96xf32> to vector<128x8xf32>
    %30 = vector.shape_cast %29 : vector<128x8xf32> to vector<8x16x8xf32>
    %31 = vector.extract_strided_slice %6 {offsets = [0, 88], sizes = [128, 8], strides = [1, 1]} : vector<128x96xf32> to vector<128x8xf32>
    %32 = vector.shape_cast %31 : vector<128x8xf32> to vector<8x16x8xf32>
    %33 = tpu.concatenate %26, %28, %30, %32 in 0 : vector<8x16x8xf32>, vector<8x16x8xf32>, vector<8x16x8xf32>, vector<8x16x8xf32> -> vector<32x16x8xf32>
    %34 = arith.truncf %15 : vector<32x16x8xf32> to vector<32x16x8xbf16>
    %35 = arith.truncf %24 : vector<32x16x8xf32> to vector<32x16x8xbf16>
    "tpu.trace_start"() <{level = 10 : i32, message = "znd,zmd->znm"}> : () -> ()
    %cst_5 = arith.constant dense<0.000000e+00> : vector<32x16x16xf32>
    %36 = tpu.matmul %34, %35, %cst_5 {dimension_numbers = #tpu.dot_dimension_numbers<[2], [2], [1], [1], [0, 0, 0, 1, 1, 1], [0], [0]>} : vector<32x16x8xbf16>, vector<32x16x8xbf16>, vector<32x16x16xf32> -> vector<32x16x16xf32>
    "tpu.trace_stop"() : () -> ()
    %c0_6 = arith.constant 0 : index
    %c0_7 = arith.constant 0 : index
    %c0_8 = arith.constant 0 : index
    %37 = vector.load %arg4[%c0_6, %c0_7, %c0_8] : memref<32x16x16xbf16, #tpu.memory_space<vmem>>, vector<32x16x16xbf16>
    %38 = arith.extf %37 : vector<32x16x16xbf16> to vector<32x16x16xf32>
    %39 = arith.addf %36, %38 : vector<32x16x16xf32>
    %cst_9 = arith.constant dense<0xFF800000> : vector<32x16xf32>
    %40 = vector.multi_reduction <maximumf>, %39, %cst_9 [2] : vector<32x16x16xf32> to vector<32x16xf32>
    %41 = vector.shape_cast %40 : vector<32x16xf32> to vector<32x16x1xf32>
    %42 = vector.broadcast %41 : vector<32x16x1xf32> to vector<32x16x16xf32>
    %43 = arith.subf %39, %42 : vector<32x16x16xf32>
    %44 = math.exp %43 : vector<32x16x16xf32>
    %cst_10 = arith.constant dense<0.000000e+00> : vector<32x16xf32>
    %45 = vector.multi_reduction <add>, %44, %cst_10 [2] : vector<32x16x16xf32> to vector<32x16xf32>
    %46 = vector.shape_cast %45 : vector<32x16xf32> to vector<32x16x1xf32>
    %47 = tpu.reciprocal %46 {approx = true} : vector<32x16x1xf32> -> vector<32x16x1xf32>
    %48 = vector.broadcast %47 : vector<32x16x1xf32> to vector<32x16x16xf32>
    %49 = arith.mulf %44, %48 : vector<32x16x16xf32>
    %50 = arith.truncf %49 : vector<32x16x16xf32> to vector<32x16x16xbf16>
    %51 = arith.truncf %33 : vector<32x16x8xf32> to vector<32x16x8xbf16>
    "tpu.trace_start"() <{level = 10 : i32, message = "znm,zmd->znd"}> : () -> ()
    %cst_11 = arith.constant dense<0.000000e+00> : vector<32x16x8xf32>
    %52 = tpu.matmul %50, %51, %cst_11 {dimension_numbers = #tpu.dot_dimension_numbers<[2], [1], [1], [2], [0, 0, 0, 1, 1, 2], [0], [0]>} : vector<32x16x16xbf16>, vector<32x16x8xbf16>, vector<32x16x8xf32> -> vector<32x16x8xf32>
    "tpu.trace_stop"() : () -> ()
    %53 = vector.extract_strided_slice %52 {offsets = [0, 0, 0], sizes = [8, 16, 8], strides = [1, 1, 1]} : vector<32x16x8xf32> to vector<8x16x8xf32>
    %54 = vector.shape_cast %53 : vector<8x16x8xf32> to vector<128x8xf32>
    %55 = vector.extract_strided_slice %52 {offsets = [8, 0, 0], sizes = [8, 16, 8], strides = [1, 1, 1]} : vector<32x16x8xf32> to vector<8x16x8xf32>
    %56 = vector.shape_cast %55 : vector<8x16x8xf32> to vector<128x8xf32>
    %57 = vector.extract_strided_slice %52 {offsets = [16, 0, 0], sizes = [8, 16, 8], strides = [1, 1, 1]} : vector<32x16x8xf32> to vector<8x16x8xf32>
    %58 = vector.shape_cast %57 : vector<8x16x8xf32> to vector<128x8xf32>
    %59 = vector.extract_strided_slice %52 {offsets = [24, 0, 0], sizes = [8, 16, 8], strides = [1, 1, 1]} : vector<32x16x8xf32> to vector<8x16x8xf32>
    %60 = vector.shape_cast %59 : vector<8x16x8xf32> to vector<128x8xf32>
    %61 = tpu.concatenate %54, %56, %58, %60 in 1 : vector<128x8xf32>, vector<128x8xf32>, vector<128x8xf32>, vector<128x8xf32> -> vector<128x32xf32>
    %62 = arith.truncf %61 : vector<128x32xf32> to vector<128x32xbf16>
    %c0_12 = arith.constant 0 : index
    %c0_13 = arith.constant 0 : index
    %63 = vector.load %arg5[%c0_12, %c0_13] : memref<32x32xbf16, #tpu.memory_space<vmem>>, vector<32x32xbf16>
    %cst_14 = arith.constant dense<0.000000e+00> : vector<128x32xf32>
    %64 = tpu.matmul %62, %63, %cst_14 {dimension_numbers = #tpu.dot_dimension_numbers<[1], [0], [0], [1], [0, 0, 1, 1], [], []>} : vector<128x32xbf16>, vector<32x32xbf16>, vector<128x32xf32> -> vector<128x32xf32>
    %c0_15 = arith.constant 0 : index
    %c0_16 = arith.constant 0 : index
    %65 = vector.load %arg6[%c0_15, %c0_16] : memref<1x32xf32, #tpu.memory_space<vmem>>, vector<1x32xf32>
    %66 = vector.broadcast %65 : vector<1x32xf32> to vector<128x32xf32>
    %67 = arith.addf %64, %66 : vector<128x32xf32>
    %c0_17 = arith.constant 0 : index
    %c0_18 = arith.constant 0 : index
    %68 = vector.load %arg7[%c0_17, %c0_18] : memref<128x32xf32, #tpu.memory_space<vmem>>, vector<128x32xf32>
    tpu.vector_store %arg7[%c0_17, %c0_18], %67 {strides = array<i32>} : memref<128x32xf32, #tpu.memory_space<vmem>>, vector<128x32xf32>,
    return
  }
  func.func @transform_0(%arg0: i32) -> (i32, i32) {
    %c0_i32 = arith.constant 0 : i32
    %c0_i32_0 = arith.constant 0 : i32
    return %arg0, %c0_i32 : i32, i32
  }
  func.func @transform_1(%arg0: i32) -> (i32, i32) {
    %c0_i32 = arith.constant 0 : i32
    %c0_i32_0 = arith.constant 0 : i32
    %c0_i32_1 = arith.constant 0 : i32
    return %c0_i32, %c0_i32_0 : i32, i32
  }
  func.func @transform_2(%arg0: i32) -> (i32, i32) {
    %c0_i32 = arith.constant 0 : i32
    %c0_i32_0 = arith.constant 0 : i32
    %c0_i32_1 = arith.constant 0 : i32
    return %c0_i32, %c0_i32_0 : i32, i32
  }
  func.func @transform_3(%arg0: i32) -> (i32, i32, i32) {
    %c0_i32 = arith.constant 0 : i32
    %c0_i32_0 = arith.constant 0 : i32
    %c0_i32_1 = arith.constant 0 : i32
    %c0_i32_2 = arith.constant 0 : i32
    return %c0_i32, %c0_i32_0, %c0_i32_1 : i32, i32, i32
  }
  func.func @transform_4(%arg0: i32) -> (i32, i32) {
    %c0_i32 = arith.constant 0 : i32
    %c0_i32_0 = arith.constant 0 : i32
    %c0_i32_1 = arith.constant 0 : i32
    return %c0_i32, %c0_i32_0 : i32, i32
  }
  func.func @transform_5(%arg0: i32) -> (i32, i32) {
    %c0_i32 = arith.constant 0 : i32
    %c0_i32_0 = arith.constant 0 : i32
    %c0_i32_1 = arith.constant 0 : i32
    return %c0_i32, %c0_i32_0 : i32, i32
  }
  func.func @transform_6(%arg0: i32) -> (i32, i32) {
    %c0_i32 = arith.constant 0 : i32
    %c0_i32_0 = arith.constant 0 : i32
    return %arg0, %c0_i32 : i32, i32
  }
}

</mosaic_0001>

<bundles_post_ra>
// kernel: tpu_custom_call.1
= control target key start
LH: loop header
LB: loop body
LE: loop exit
PB: predicated region body
PF: predicated region fallthrough
CT: control target
= control target key end

     0   :  { %s4415_s21 = smov 0   ;;  %s6023_s0 = inlined_call_operand.vmem [shape: f32[256,32], index: 0, kind: input, shape index: {}]   ;;  %s6024_s1 = inlined_call_operand.vmem [shape: bf16[32,96], index: 1, kind: input, shape index: {}]   ;;  %s6025_s2 = inlined_call_operand.vmem [shape: f32[1,96], index: 2, kind: input, shape index: {}]   ;;  %s6026_s3 = inlined_call_operand.vmem [shape: bf16[32,16,16], index: 3, kind: input, shape index: {}]   ;;  %s6027_s4 = inlined_call_operand.vmem [shape: bf16[32,32], index: 4, kind: input, shape index: {}]   ;;  %s6028_s5 = inlined_call_operand.vmem [shape: f32[1,32], index: 5, kind: input, shape index: {}]   ;;  %s6029_s6 = inlined_call_operand.vmem [shape: f32[256,32], index: 6, kind: output, shape index: {}]  }
   0x1 LB: > { %s3574_s22 = sadd.s32 4294967295, %s4370_s21   ;;  %p3578_p0 = scmp.ge.s32.totalorder %s4370_s21, 1  ;;  %s4370_s21 = sphi %s4415_s21, %s16_s21  }
   0x2   : > { %p213_p1 = scmp.lt.s32.totalorder %s4370_s21, 3 }
   0x4   : > { %p214_p2 = pnand %p3578_p0, %p213_p1 }
   0x6   : > { %217 = sbr.rel (%p214_p2) target bundleno = 1705 (0x6a9), region = 44 }
   0xb   : > { %v3682_v0 = vld [vmem:[%s6024_s1 + $0x8] sm:$0xff]  ;;  %s3579_s25 = sshll.u32 %s3574_s22, 4  ;;  %v3681_v1 = vld [vmem:[%s6024_s1] sm:$0xff]  ;;  %vm300_vm0 = vcmask 261120   ;;  %s4372_s10 = smov 112   ;;  %vm733_vm1 = vcmask 64512  }
   0xc   : > { %p244_p3 = scmp.lt.s32.totalorder %s3579_s25, 31  ;;  %331 = vmatpush.bf16.msra.mxu0 %v3682_v0  ;;  %3844 = vmatpush.bf16.msra.mxu1 %v3682_v0  ;;  %v4448_v28 = vld [vmem:[%s6025_s2] ss:$0 sm:$0xff]  ;;  %s4373_s11 = smov 120   ;;  %vm1591_vm2 = vcmask 130048   ;;  %vm3384_vm3 = vcmask 195584  }
   0xd   : > { %3845 = vmatpush.bf16.msra.mxu2 %v3682_v0  ;;  %3846 = vmatpush.bf16.msra.mxu3 %v3682_v0  ;;  %s4374_s12 = smov 104   ;;  %s4375_s13 = smov 96  }
   0xe   : > { %s6133_s25 = smov (!%p244_p3, %s3579_s25), 31  ;;  %s4376_s14 = smov 64  }
   0xf   : > { %s3580_s28 = sshll.u32 %s6133_s25, 3  ;;  %s4377_s19 = smov 16  }
  0x10   : > { %332 = vmatpush.bf16.msra.mxu0 %v3681_v1  ;;  %3847 = vmatpush.bf16.msra.mxu1 %v3681_v1  ;;  %s247_s7 = scalar_lea.vmem %s6023_s0, %s3580_s28  ;;  %s4379_s20 = smov 24  }
  0x11   : > { %3848 = vmatpush.bf16.msra.mxu2 %v3681_v1  ;;  %3849 = vmatpush.bf16.msra.mxu3 %v3681_v1  ;;  %v256_v2 = vld [vmem:[%s247_s7] sm:$0xff]  ;;  %v257_v3 = vld [vmem:[%s247_s7 + $0x8] sm:$0xff]  ;;  %v262_v14 = vld [vmem:[%s247_s7 + $0x30] sm:$0xff]  ;;  %s5942_s8 = scalar_lea.vmem %s6029_s6, %s3580_s28 }
  0x12   : > { %v260_v4 = vld [vmem:[%s247_s7 + $0x20] sm:$0xff]  ;;  %v272_v5 = vpack.c.bf16 %v257_v3, %v256_v2  ;;  %v261_v6 = vld [vmem:[%s247_s7 + $0x28] sm:$0xff]  ;;  %v258_v15 = vld [vmem:[%s247_s7 + $0x10] sm:$0xff] }
  0x13   : > { %v264_v7 = vld [vmem:[%s247_s7 + $0x40] sm:$0xff]  ;;  %v265_v8 = vld [vmem:[%s247_s7 + $0x48] sm:$0xff]  ;;  %v274_v9 = vpack.c.bf16 %v261_v6, %v260_v4  ;;  %v259_v16 = vld [vmem:[%s247_s7 + $0x18] sm:$0xff] }
  0x14   : > { %v276_v10 = vpack.c.bf16 %v265_v8, %v264_v7  ;;  %v268_v11 = vld [vmem:[%s247_s7 + $0x60] sm:$0xff]  ;;  %v269_v12 = vld [vmem:[%s247_s7 + $0x68] sm:$0xff]  ;;  %3591 = vmatmul.msk.bf16.vlgmr.msra.gmra.mxu0 %vm300_vm0, %v272_v5  ;;  %v263_v17 = vld [vmem:[%s247_s7 + $0x38] sm:$0xff]  ;;  %v273_v22 = vpack.c.bf16 %v259_v16, %v258_v15 }
  0x15   : > { %v278_v13 = vpack.c.bf16 %v269_v12, %v268_v11  ;;  %3593 = vmatmul.msk.bf16.vlgmr.msra.gmra.mxu1 %vm300_vm0, %v274_v9  ;;  %v266_v18 = vld [vmem:[%s247_s7 + $0x50] sm:$0xff]  ;;  %v267_v19 = vld [vmem:[%s247_s7 + $0x58] sm:$0xff]  ;;  %v275_v23 = vpack.c.bf16 %v263_v17, %v262_v14 }
  0x16   : > { %3595 = vmatmul.msk.bf16.vlgmr.msra.gmra.mxu2 %vm300_vm0, %v276_v10  ;;  %v270_v20 = vld [vmem:[%s247_s7 + $0x70] sm:$0xff]  ;;  %v271_v21 = vld [vmem:[%s247_s7 + $0x78] sm:$0xff]  ;;  %v277_v24 = vpack.c.bf16 %v267_v19, %v266_v18 }
  0x17   : > { %3597 = vmatmul.msk.bf16.vlgmr.msra.gmra.mxu3 %vm300_vm0, %v278_v13  ;;  %v279_v25 = vpack.c.bf16 %v271_v21, %v270_v20 }
  0x24   : > { %3592 = vmatmul.msk.bf16.gmra.mxu0 %vm300_vm0, %v273_v22 }
  0x25   : > { %3594 = vmatmul.msk.bf16.gmra.mxu1 %vm300_vm0, %v275_v23 }
  0x26   : > { %3596 = vmatmul.msk.bf16.gmra.mxu2 %vm300_vm0, %v277_v24 }
  0x27   : > { %3598 = vmatmul.msk.bf16.gmra.mxu3 %vm300_vm0, %v279_v25 }
  0x91   : > { %v334_v26 = vpop.f32.mrf.mxu0 }
  0x92   : > { %v344_v27 = vpop.f32.mrf.mxu1  ;;  %v335_v31 = vadd.f32 %v4448_v28, %v334_v26 }
  0x93   : > { %v345_v29 = vadd.f32 %v4448_v28, %v344_v27 }
  0x94   : > { %v534_v42 = vpack.c.bf16 %v335_v31, %v335_v31 }
  0x95   : > { %v538_v51 = vpack.c.bf16 %v345_v29, %v345_v29 }
  0x96   : > { %v728_v48 = vunpack.c.l.b16 %v534_v42 }
  0x97   : > { %v783_v54 = vunpack.c.l.b16 %v538_v51 }
  0x99   : > { %v336_v30 = vpop.f32.mrf.mxu0  ;;  %v354_v35 = vpop.f32.mrf.mxu2 }
  0x9a   : > { %v337_v32 = vadd.f32 %v4448_v28, %v336_v30  ;;  %v346_v33 = vpop.f32.mrf.mxu1  ;;  %v364_v36 = vpop.f32.mrf.mxu3  ;;  %v355_v43 = vadd.f32 %v4448_v28, %v354_v35 }
  0x9b   : > { %v347_v34 = vadd.f32 %v4448_v28, %v346_v33  ;;  %v365_v44 = vadd.f32 %v4448_v28, %v364_v36 }
  0x9c   : > { %v3876_v37 = vpack.i.bf16 %v337_v32, %v335_v31  ;;  %v535_v41 = vpack.c.bf16 %v337_v32, %v337_v32  ;;  %v542_v61 = vpack.c.bf16 %v355_v43, %v355_v43 }
  0x9d   : > { %v3871_v38 = vpack.i.bf16 %v347_v34, %v345_v29  ;;  %v539_v52 = vpack.c.bf16 %v347_v34, %v347_v34  ;;  %v546_v13 = vpack.c.bf16 %v365_v44, %v365_v44 }
  0x9e   : > { %3877 = vrot.lane.b32.xlu2 %v3876_v37, %s4372_s10  ;;  %3867 = vrot.lane.b32.xlu0 %v3876_v37, %s4373_s11  ;;  %v729_v47 = vunpack.c.l.b16 %v535_v41  ;;  %v837_v0 = vunpack.c.l.b16 %v542_v61 }
  0x9f   : > { %3872 = vrot.lane.b32.xlu1 %v3871_v38, %s4373_s11  ;;  %v784_v55 = vunpack.c.l.b16 %v539_v52  ;;  %v891_v17 = vunpack.c.l.b16 %v546_v13 }
  0xa0   : > { %v4464_v53 = vpack.c.b16 %v729_v47, %v728_v48 }
  0xa1   : > { %v356_v39 = vpop.f32.mrf.mxu2  ;;  %v4470_v56 = vpack.c.b16 %v784_v55, %v783_v54  ;;  %v339_v59 = vpop.f32.mrf.mxu0 }
  0xa2   : > { %v366_v40 = vpop.f32.mrf.mxu3  ;;  %v357_v45 = vadd.f32 %v4448_v28, %v356_v39  ;;  %v349_v57 = vpop.f32.mrf.mxu1  ;;  %v340_v7 = vadd.f32 %v4448_v28, %v339_v59 }
  0xa3   : > { %v367_v46 = vadd.f32 %v4448_v28, %v366_v40  ;;  %v350_v58 = vadd.f32 %v4448_v28, %v349_v57 }
  0xa4   : > { %v3896_v49 = vpack.i.bf16 %v357_v45, %v355_v43  ;;  %v543_v62 = vpack.c.bf16 %v357_v45, %v357_v45  ;;  %v536_v22 = vpack.c.bf16 %v340_v7, %v340_v7 }
  0xa5   : > { %v3901_v50 = vpack.i.bf16 %v367_v46, %v365_v44  ;;  %v3921_v60 = vpack.i.bf16 %v355_v43, %v350_v58  ;;  %v547_v14 = vpack.c.bf16 %v367_v46, %v367_v46  ;;  %v540_v31 = vpack.c.bf16 %v350_v58, %v350_v58 }
  0xa6   : > { %3887 = vrot.lane.b32.xlu2 %v3876_v37, %s4374_s12  ;;  %3892 = vrot.lane.b32.xlu0 %v3871_v38, %s4374_s12  ;;  %v838_v1 = vunpack.c.l.b16 %v543_v62  ;;  %v756_v26 = vunpack.c.l.b16 %v536_v22 }
  0xa7   : > { %3882 = vrot.lane.b32.xlu1 %v3871_v38, %s4372_s10  ;;  %v892_v18 = vunpack.c.l.b16 %v547_v14  ;;  %v810_v33 = vunpack.c.l.b16 %v540_v31 }
  0xa8   : > { %v4483_v4 = vpack.c.b16 %v838_v1, %v837_v0 }
  0xa9   : > { %v359_v2 = vpop.f32.mrf.mxu2  ;;  %v341_v5 = vpop.f32.mrf.mxu0  ;;  %v4497_v20 = vpack.c.b16 %v892_v18, %v891_v17 }
  0xaa   : > { %v351_v63 = vpop.f32.mrf.mxu1  ;;  %v342_v8 = vadd.f32 %v4448_v28, %v341_v5  ;;  %v369_v9 = vpop.f32.mrf.mxu3  ;;  %v360_v15 = vadd.f32 %v4448_v28, %v359_v2 }
  0xab   : > { %v352_v3 = vadd.f32 %v4448_v28, %v351_v63  ;;  %v370_v24 = vadd.f32 %v4448_v28, %v369_v9 }
  0xac   : > { %v3946_v10 = vpack.i.bf16 %v342_v8, %v340_v7  ;;  %v537_v23 = vpack.c.bf16 %v342_v8, %v342_v8  ;;  %v544_v35 = vpack.c.bf16 %v360_v15, %v360_v15 }
  0xad   : > { %v3931_v6 = vpack.i.bf16 %v352_v3, %v350_v58  ;;  %v3941_v12 = vpack.i.bf16 %v352_v3, %v357_v45  ;;  %v541_v32 = vpack.c.bf16 %v352_v3, %v352_v3  ;;  %v548_v40 = vpack.c.bf16 %v370_v24, %v370_v24 }
  0xae   : > { %3897 = vrot.lane.b32.xlu2 %v3896_v49, %s4373_s11  ;;  %3902 = vrot.lane.b32.xlu0 %v3901_v50, %s4373_s11  ;;  %v757_v27 = vunpack.c.l.b16 %v537_v23  ;;  %v864_v37 = vunpack.c.l.b16 %v544_v35 }
  0xaf   : > { %731 = vrot.lane.b32.xlu1 %v4464_v53, %s4375_s13  ;;  %v811_v34 = vunpack.c.l.b16 %v541_v32  ;;  %v918_v42 = vunpack.c.l.b16 %v548_v40 }
  0xb0   : > { %v4505_v30 = vpack.c.b16 %v757_v27, %v756_v26 }
  0xb1   : > { %v361_v11 = vpop.f32.mrf.mxu2 }
  0xb2   : > { %v362_v16 = vadd.f32 %v4448_v28, %v361_v11  ;;  %v371_v21 = vpop.f32.mrf.mxu3 }
  0xb3   : > { %v372_v25 = vadd.f32 %v4448_v28, %v371_v21  ;;  %v4512_v28 = vpack.c.b16 %v811_v34, %v810_v33 }
  0xb4   : > { %v3956_v19 = vpack.i.bf16 %v362_v16, %v360_v15  ;;  %v545_v36 = vpack.c.bf16 %v362_v16, %v362_v16 }
  0xb5   : > { %v3961_v29 = vpack.i.bf16 %v372_v25, %v370_v24  ;;  %v549_v41 = vpack.c.bf16 %v372_v25, %v372_v25 }
  0xb6   : > { %3917 = vrot.lane.b32.xlu2 %v3901_v50, %s4374_s12  ;;  %786 = vrot.lane.b32.xlu0 %v4470_v56, %s4375_s13  ;;  %v865_v38 = vunpack.c.l.b16 %v545_v36 }
  0xb7   : > { %2365 = vrot.lane.b32.xlu1 %v4464_v53, %s4376_s14  ;;  %v919_v43 = vunpack.c.l.b16 %v549_v41 }
  0xb8   : > { %v4518_v39 = vpack.c.b16 %v865_v38, %v864_v37 }
  0xb9   : > { %v4524_v44 = vpack.c.b16 %v919_v43, %v918_v42 }
  0xbe   : > { %3922 = vrot.lane.b32.xlu2 %v3921_v60, %s4372_s10  ;;  %3907 = vrot.lane.b32.xlu0 %v3901_v50, %s4372_s10 }
  0xbf   : > { %2415 = vrot.lane.b32.xlu1 %v4470_v56, %s4376_s14 }
  0xc6   : > { %2465 = vrot.lane.b32.xlu2 %v4483_v4, %s4376_s14  ;;  %3912 = vrot.lane.b32.xlu0 %v3896_v49, %s4374_s12 }
  0xc7   : > { %3932 = vrot.lane.b32.xlu1 %v3931_v6, %s4373_s11 }
  0xce   : > { %3942 = vrot.lane.b32.xlu2 %v3941_v12, %s4372_s10  ;;  %840 = vrot.lane.b32.xlu0 %v4483_v4, %s4375_s13 }
  0xcf   : > { %3947 = vrot.lane.b32.xlu1 %v3946_v10, %s4374_s12 }
  0xd6   : > { %3957 = vrot.lane.b32.xlu2 %v3956_v19, %s4373_s11  ;;  %894 = vrot.lane.b32.xlu0 %v4497_v20, %s4375_s13 }
  0xd7   : > { %3952 = vrot.lane.b32.xlu1 %v3931_v6, %s4374_s12 }
  0xde   : > { %759 = vrot.lane.b32.xlu2 %v4505_v30, %s4375_s13  ;;  %2515 = vrot.lane.b32.xlu0 %v4497_v20, %s4376_s14 }
  0xdf   : > { %3962 = vrot.lane.b32.xlu1 %v3961_v29, %s4373_s11 }
  0xe6   : > { %813 = vrot.lane.b32.xlu2 %v4512_v28, %s4375_s13  ;;  %3927 = vrot.lane.b32.xlu0 %v3946_v10, %s4373_s11 }
  0xe7   : > { %3967 = vrot.lane.b32.xlu1 %v3956_v19, %s4372_s10 }
  0xee   : > { %3972 = vrot.lane.b32.xlu2 %v3961_v29, %s4372_s10  ;;  %3937 = vrot.lane.b32.xlu0 %v3946_v10, %s4372_s10 }
  0xef   : > { %867 = vrot.lane.b32.xlu1 %v4518_v39, %s4375_s13 }
  0xf6   : > { %2440 = vrot.lane.b32.xlu2 %v4512_v28, %s4376_s14  ;;  %3977 = vrot.lane.b32.xlu0 %v3956_v19, %s4374_s12 }
  0xf7   : > { %921 = vrot.lane.b32.xlu1 %v4524_v44, %s4375_s13 }
  0xf8   : > { %v3878_v45 = vpop.permute.xlu2 %3877 }
  0xf9   : > { %v3880_v46 = vunpack.i.h.bf16 %v3878_v45  ;;  %v3879_v47 = vunpack.i.l.bf16 %v3878_v45 }
  0xfb   : > { %v567_v48 = vpack.c.bf16 %v3880_v46, %v3880_v46  ;;  %v566_v49 = vpack.c.bf16 %v3879_v47, %v3879_v47 }
  0xfd   : > { %v1162_v50 = vunpack.c.l.b16 %v567_v48  ;;  %v1161_v51 = vunpack.c.l.b16 %v566_v49 }
  0xfe   : > { %2540 = vrot.lane.b32.xlu2 %v4524_v44, %s4376_s14  ;;  %3982 = vrot.lane.b32.xlu0 %v3961_v29, %s4374_s12 }
  0xff   : > { %v4534_v52 = vpack.c.b16 %v1162_v50, %v1161_v51 }
 0x100   : > { %v3888_v54 = vpop.permute.xlu2 %3887 }
 0x101   : > { %1164 = vrot.lane.b32.xlu1 %v4534_v52, %s4375_s13  ;;  %v3890_v0 = vunpack.i.h.bf16 %v3888_v54  ;;  %v3889_v1 = vunpack.i.l.bf16 %v3888_v54 }
 0x103   : > { %v583_v11 = vpack.c.bf16 %v3890_v0, %v3890_v0  ;;  %v582_v12 = vpack.c.bf16 %v3889_v1, %v3889_v1 }
 0x105   : > { %v1378_v21 = vunpack.c.l.b16 %v583_v11  ;;  %v1377_v22 = vunpack.c.l.b16 %v582_v12 }
 0x106   : > { %2390 = vrot.lane.b32.xlu0 %v4505_v30, %s4376_s14 }
 0x107   : > { %v4558_v35 = vpack.c.b16 %v1378_v21, %v1377_v22 }
 0x108   : > { %v3898_v55 = vpop.permute.xlu2 %3897 }
 0x109   : > { %2765 = vrot.lane.b32.xlu1 %v4534_v52, %s4376_s14  ;;  %6060 = vst [vmem:[#allocation2_spill] sm:$0xff] %v4558_v35  ;;  %v3900_v40 = vunpack.i.h.bf16 %v3898_v55  ;;  %v3899_v41 = vunpack.i.l.bf16 %v3898_v55 }
 0x10b   : > { %v559_v46 = vpack.c.bf16 %v3900_v40, %v3900_v40  ;;  %v558_v47 = vpack.c.bf16 %v3899_v41, %v3899_v41 }
 0x10e   : > { %2490 = vrot.lane.b32.xlu0 %v4518_v39, %s4376_s14 }
 0x110   : > { %v4544_v57 = vpop.permute.xlu2 %3917  ;;  %v3868_v58 = vpop.permute.xlu0 %3867 }
 0x111   : > { %v3873_v59 = vpop.permute.xlu1 %3872  ;;  %v3870_v60 = vunpack.i.h.bf16 %v3868_v58  ;;  %v3869_v61 = vunpack.i.l.bf16 %v3868_v58 }
 0x112   : > { %v3875_v62 = vunpack.i.h.bf16 %v3873_v59  ;;  %v3874_v63 = vunpack.i.l.bf16 %v3873_v59 }
 0x113   : > { %v551_v2 = vpack.c.bf16 %v3870_v60, %v3870_v60  ;;  %v550_v3 = vpack.c.bf16 %v3869_v61, %v3869_v61  ;;  %v1054_v60 = vunpack.c.l.b16 %v559_v46  ;;  %v1053_v61 = vunpack.c.l.b16 %v558_v47 }
 0x114   : > { %v555_v5 = vpack.c.bf16 %v3875_v62, %v3875_v62  ;;  %v554_v6 = vpack.c.bf16 %v3874_v63, %v3874_v63  ;;  %v3920_v62 = vunpack.i.h.bf16 %v4544_v57  ;;  %v3919_v63 = vunpack.i.l.bf16 %v4544_v57 }
 0x115   : > { %v946_v7 = vunpack.c.l.b16 %v551_v2  ;;  %v945_v8 = vunpack.c.l.b16 %v550_v3 }
 0x116   : > { %v1000_v9 = vunpack.c.l.b16 %v555_v5  ;;  %v999_v10 = vunpack.c.l.b16 %v554_v6  ;;  %v595_v6 = vpack.c.bf16 %v3920_v62, %v3920_v62 }
 0x117   : > { %v4546_v13 = vpack.c.b16 %v946_v7, %v945_v8  ;;  %v594_v7 = vpack.c.bf16 %v3919_v63, %v3919_v63 }
 0x118   : > { %v4548_v14 = vpop.permute.xlu2 %3922  ;;  %v3893_v15 = vpop.permute.xlu0 %3892  ;;  %v4550_v16 = vpack.c.b16 %v1000_v9, %v999_v10  ;;  %v4588_v10 = vpack.c.b16 %v1054_v60, %v1053_v61 }
 0x119   : > { %v3883_v17 = vpop.permute.xlu1 %3882  ;;  %948 = vrot.lane.b32.xlu2 %v4546_v13, %s4375_s13  ;;  %v3895_v25 = vunpack.i.h.bf16 %v3893_v15  ;;  %v3894_v26 = vunpack.i.l.bf16 %v3893_v15  ;;  %v3925_v45 = vunpack.i.h.bf16 %v4548_v14  ;;  %v1539_v21 = vunpack.c.l.b16 %v594_v7 }
 0x11a   : > { %v3885_v18 = vunpack.i.h.bf16 %v3883_v17  ;;  %v3884_v19 = vunpack.i.l.bf16 %v3883_v17  ;;  %1002 = vrot.lane.b32.xlu0 %v4550_v16, %s4375_s13 }
 0x11b   : > { %v587_v31 = vpack.c.bf16 %v3895_v25, %v3895_v25  ;;  %v586_v32 = vpack.c.bf16 %v3894_v26, %v3894_v26  ;;  %v574_v51 = vpack.c.bf16 %v3925_v45, %v3925_v45 }
 0x11c   : > { %v571_v23 = vpack.c.bf16 %v3885_v18, %v3885_v18  ;;  %v570_v24 = vpack.c.bf16 %v3884_v19, %v3884_v19  ;;  %v1540_v19 = vunpack.c.l.b16 %v595_v6 }
 0x11d   : > { %v1432_v42 = vunpack.c.l.b16 %v587_v31  ;;  %v1431_v43 = vunpack.c.l.b16 %v586_v32  ;;  %v1269_v0 = vunpack.c.l.b16 %v574_v51 }
 0x11e   : > { %v1216_v27 = vunpack.c.l.b16 %v571_v23  ;;  %v1215_v29 = vunpack.c.l.b16 %v570_v24  ;;  %v4602_v31 = vpack.c.b16 %v1540_v19, %v1539_v21 }
 0x11f   : > { %v4570_v50 = vpack.c.b16 %v1432_v42, %v1431_v43 }
 0x120   : > { %v4556_v33 = vpop.permute.xlu2 %2465  ;;  %v3903_v34 = vpop.permute.xlu0 %3902  ;;  %v4560_v36 = vpack.c.b16 %v1216_v27, %v1215_v29  ;;  %6065 = vst [vmem:[#allocation7_spill] sm:$0xff] %v4602_v31 }
 0x121   : > { %v732_v37 = vpop.permute.xlu1 %731  ;;  %6062 = vst [vmem:[#allocation4_spill] sm:$0xff] %v4570_v50  ;;  %v3905_v1 = vunpack.i.h.bf16 %v3903_v34  ;;  %v3904_v2 = vunpack.i.l.bf16 %v3903_v34 }
 0x122   : > { %6061 = vst [vmem:[#allocation3_spill] sm:$0xff] %v4560_v36  ;;  %1380 = vrot.lane.b32.xlu0 %v4558_v35, %s4375_s13  ;;  %1218 = vrot.lane.b32.xlu2 %v4560_v36, %s4375_s13  ;;  %v738_v38 = vsel %vm733_vm1, %v732_v37, 0 }
 0x123   : > { %747 = vmatpush.bf16.xpose.msrb.mxu1 %v738_v38  ;;  %v562_v11 = vpack.c.bf16 %v3904_v2, %v3904_v2 }
 0x125   : > { %v1107_v23 = vunpack.c.l.b16 %v562_v11 }
 0x128   : > { %v4568_v48 = vpop.permute.xlu2 %3942  ;;  %v787_v49 = vpop.permute.xlu0 %786 }
 0x129   : > { %v3944_v54 = vunpack.i.l.bf16 %v4568_v48  ;;  %v4573_v58 = vpop.permute.xlu1 %2365  ;;  %v792_v59 = vsel %vm733_vm1, %v787_v49, 0 }
 0x12a   : > { %2615 = vrot.lane.b32.xlu0 %v4550_v16, %s4376_s14  ;;  %1434 = vrot.lane.b32.xlu2 %v4570_v50, %s4375_s13 }
 0x12b   : > { %v575_v55 = vpack.c.bf16 %v3944_v54, %v3944_v54  ;;  %3599 = vmatmul.msk.bf16.vlgmr.msrb.gmra.mxu1 %vm733_vm1, %v4464_v53  ;;  %801 = vmatpush.bf16.xpose.msrb.mxu3 %v792_v59  ;;  %v563_v53 = vpack.c.bf16 %v3905_v1, %v3905_v1 }
 0x12d   : > { %v1270_v3 = vunpack.c.l.b16 %v575_v55  ;;  %v1108_v22 = vunpack.c.l.b16 %v563_v53 }
 0x12f   : > { %v4584_v5 = vpack.c.b16 %v1270_v3, %v1269_v0  ;;  %v4604_v37 = vpack.c.b16 %v1108_v22, %v1107_v23 }
 0x130   : > { %v4586_v8 = vpop.permute.xlu2 %3957  ;;  %v3908_v9 = vpop.permute.xlu0 %3907 }
 0x131   : > { %6063 = vst [vmem:[#allocation5_spill] sm:$0xff] %v4584_v5  ;;  %v3910_v12 = vunpack.i.h.bf16 %v3908_v9  ;;  %v3909_v15 = vunpack.i.l.bf16 %v3908_v9  ;;  %v4590_v17 = vpop.permute.xlu1 %2415  ;;  %1272 = vrot.lane.b32.xlu1 %v4584_v5, %s4375_s13 }
 0x132   : > { %1056 = vrot.lane.b32.xlu0 %v4588_v10, %s4375_s13  ;;  %3601 = vmatmul.msk.bf16.vlgmr.msrb.gmra.mxu3 %vm733_vm1, %v4470_v56 }
 0x133   : > { %v579_v57 = vpack.c.bf16 %v3910_v12, %v3910_v12  ;;  %v578_v18 = vpack.c.bf16 %v3909_v15, %v3909_v15  ;;  %2565 = vrot.lane.b32.xlu2 %v4546_v13, %s4376_s14 }
 0x135   : > { %v1324_v24 = vunpack.c.l.b16 %v579_v57  ;;  %v1323_v25 = vunpack.c.l.b16 %v578_v18 }
 0x137   : > { %v4600_v26 = vpack.c.b16 %v1324_v24, %v1323_v25  ;;  %v3924_v25 = vunpack.i.l.bf16 %v4548_v14 }
 0x138   : > { %v760_v27 = vpop.permute.xlu2 %759  ;;  %v3913_v29 = vpop.permute.xlu0 %3912 }
 0x139   : > { %6064 = vst [vmem:[#allocation6_spill] sm:$0xff] %v4600_v26  ;;  %v3915_v32 = vunpack.i.h.bf16 %v3913_v29  ;;  %v3914_v34 = vunpack.i.l.bf16 %v3913_v29  ;;  %v3933_v56 = vpop.permute.xlu1 %3932  ;;  %1326 = vrot.lane.b32.xlu1 %v4600_v26, %s4375_s13  ;;  %v765_v38 = vsel %vm733_vm1, %v760_v27, 0 }
 0x13a   : > { %1542 = vrot.lane.b32.xlu0 %v4602_v31, %s4375_s13  ;;  %774 = vmatpush.bf16.xpose.msrb.mxu2 %v765_v38  ;;  %v3935_v59 = vunpack.i.h.bf16 %v3933_v56  ;;  %v3934_v55 = vunpack.i.l.bf16 %v3933_v56  ;;  %v572_v38 = vpack.c.bf16 %v3924_v25, %v3924_v25 }
 0x13b   : > { %v591_v40 = vpack.c.bf16 %v3915_v32, %v3915_v32  ;;  %v590_v41 = vpack.c.bf16 %v3914_v34, %v3914_v34  ;;  %1110 = vrot.lane.b32.xlu2 %v4604_v37, %s4375_s13 }
 0x13c   : > { %v557_v60 = vpack.c.bf16 %v3935_v59, %v3935_v59  ;;  %v556_v61 = vpack.c.bf16 %v3934_v55, %v3934_v55  ;;  %v3959_v59 = vunpack.i.l.bf16 %v4586_v8  ;;  %v1242_v55 = vunpack.c.l.b16 %v572_v38 }
 0x13d   : > { %v1486_v42 = vunpack.c.l.b16 %v591_v40  ;;  %v1485_v43 = vunpack.c.l.b16 %v590_v41 }
 0x13e   : > { %v1026_v1 = vunpack.c.l.b16 %v556_v61 }
 0x13f   : > { %v4613_v45 = vpack.c.b16 %v1486_v42, %v1485_v43 }
 0x140   : > { %v814_v46 = vpop.permute.xlu2 %813  ;;  %v841_v47 = vpop.permute.xlu0 %840 }
 0x141   : > { %6066 = vst [vmem:[#allocation8_spill] sm:$0xff] %v4613_v45  ;;  %v819_v49 = vsel %vm733_vm1, %v814_v46, 0  ;;  %v846_v51 = vsel %vm733_vm1, %v841_v47, 0  ;;  %v4617_v54 = vpop.permute.xlu1 %3947  ;;  %3600 = vmatmul.msk.bf16.vlgmr.msrb.gmra.mxu2 %vm733_vm1, %v4505_v30  ;;  %1488 = vrot.lane.b32.xlu1 %v4613_v45, %s4375_s13  ;;  %v1027_v30 = vunpack.c.l.b16 %v557_v60 }
 0x142   : > { %828 = vmatpush.bf16.xpose.msra.mxu1 %v819_v49  ;;  %855 = vmatpush.bf16.xpose.msra.mxu2 %v846_v51  ;;  %v3950_v43 = vunpack.i.h.bf16 %v4617_v54  ;;  %v3949_v46 = vunpack.i.l.bf16 %v4617_v54  ;;  %v3960_v51 = vunpack.i.h.bf16 %v4586_v8 }
 0x143   : > { %2715 = vrot.lane.b32.xlu2 %v4604_v37, %s4376_s14  ;;  %v4630_v9 = vpack.c.b16 %v1027_v30, %v1026_v1 }
 0x144   : > { %v561_v1 = vpack.c.bf16 %v3960_v51, %v3960_v51 }
 0x148   : > { %v895_v62 = vpop.permute.xlu0 %894  ;;  %v4640_v15 = vpop.permute.xlu2 %3972 }
 0x149   : > { %v900_v63 = vsel %vm733_vm1, %v895_v62, 0  ;;  %v3953_v0 = vpop.permute.xlu1 %3952  ;;  %2665 = vrot.lane.b32.xlu1 %v4588_v10, %s4376_s14  ;;  %3602 = vmatmul.msk.bf16.vlgmr.msra.gmra.mxu1 %vm733_vm1, %v4512_v28  ;;  %v585_v62 = vpack.c.bf16 %v3950_v43, %v3950_v43  ;;  %v3975_v8 = vunpack.i.h.bf16 %v4640_v15 }
 0x14a   : > { %909 = vmatpush.bf16.xpose.msrb.mxu1 %v900_v63  ;;  %v3955_v2 = vunpack.i.h.bf16 %v3953_v0  ;;  %v3954_v3 = vunpack.i.l.bf16 %v3953_v0  ;;  %v584_v63 = vpack.c.bf16 %v3949_v46, %v3949_v46 }
 0x14c   : > { %v589_v6 = vpack.c.bf16 %v3955_v2, %v3955_v2  ;;  %v588_v7 = vpack.c.bf16 %v3954_v3, %v3954_v3  ;;  %v560_v2 = vpack.c.bf16 %v3959_v59, %v3959_v59 }
 0x14e   : > { %v1459_v28 = vunpack.c.l.b16 %v589_v6  ;;  %v1458_v12 = vunpack.c.l.b16 %v588_v7 }
 0x150   : > { %v4632_v53 = vpop.permute.xlu0 %2515  ;;  %v4642_v57 = vpack.c.b16 %v1459_v28, %v1458_v12  ;;  %v4652_v40 = vpop.permute.xlu2 %2440  ;;  %v1405_v12 = vunpack.c.l.b16 %v585_v62 }
 0x151   : > { %v4634_v11 = vpop.permute.xlu1 %3962  ;;  %3603 = vmatmul.msk.bf16.vlgmr.msra.gmra.mxu2 %vm733_vm1, %v4483_v4  ;;  %1029 = vrot.lane.b32.xlu1 %v4630_v9, %s4375_s13  ;;  %v3945_v4 = vunpack.i.h.bf16 %v4568_v48 }
 0x152   : > { %6067 = vst [vmem:[#allocation9_spill] sm:$0xff] %v4642_v57 }
 0x153   : > { %v573_v32 = vpack.c.bf16 %v3945_v4, %v3945_v4  ;;  %v1081_v4 = vunpack.c.l.b16 %v561_v1 }
 0x155   : > { %v1243_v48 = vunpack.c.l.b16 %v573_v32 }
 0x157   : > { %v4663_v0 = vpack.c.b16 %v1243_v48, %v1242_v55 }
 0x158   : > { %v3928_v18 = vpop.permute.xlu0 %3927 }
 0x159   : > { %v3930_v19 = vunpack.i.h.bf16 %v3928_v18  ;;  %v3929_v21 = vunpack.i.l.bf16 %v3928_v18  ;;  %v3968_v22 = vpop.permute.xlu1 %3967  ;;  %3605 = vmatmul.msk.bf16.vlgmr.msrb.gmra.mxu1 %vm733_vm1, %v4497_v20  ;;  %1461 = vrot.lane.b32.xlu1 %v4642_v57, %s4375_s13  ;;  %6068 = vst [vmem:[#allocation10_spill] sm:$0xff] %v4663_v0  ;;  %v1404_v18 = vunpack.c.l.b16 %v584_v63 }
 0x15a   : > { %v3970_v54 = vunpack.i.h.bf16 %v3968_v22  ;;  %v3969_v6 = vunpack.i.l.bf16 %v3968_v22  ;;  %v4679_v22 = vpop.permute.xlu2 %2540 }
 0x15b   : > { %v553_v23 = vpack.c.bf16 %v3930_v19, %v3930_v19  ;;  %v552_v24 = vpack.c.bf16 %v3929_v21, %v3929_v21  ;;  %v3965_v19 = vunpack.i.h.bf16 %v4634_v11  ;;  %v3964_v21 = vunpack.i.l.bf16 %v4634_v11 }
 0x15c   : > { %v577_v25 = vpack.c.bf16 %v3970_v54, %v3970_v54 }
 0x15d   : > { %v973_v27 = vunpack.c.l.b16 %v553_v23  ;;  %v972_v29 = vunpack.c.l.b16 %v552_v24  ;;  %v1080_v23 = vunpack.c.l.b16 %v560_v2  ;;  %v3974_v24 = vunpack.i.l.bf16 %v4640_v15 }
 0x15e   : > { %v564_v32 = vpack.c.bf16 %v3964_v21, %v3964_v21 }
 0x15f   : > { %v4650_v34 = vpack.c.b16 %v973_v27, %v972_v29  ;;  %v576_v27 = vpack.c.bf16 %v3969_v6, %v3969_v6  ;;  %v581_v29 = vpack.c.bf16 %v3975_v8, %v3975_v8  ;;  %v580_v38 = vpack.c.bf16 %v3974_v24, %v3974_v24 }
 0x160   : > { %v3938_v56 = vpop.permute.xlu0 %3937 }
 0x161   : > { %v3940_v41 = vunpack.i.h.bf16 %v3938_v56  ;;  %v3939_v20 = vunpack.i.l.bf16 %v3938_v56  ;;  %v868_v42 = vpop.permute.xlu1 %867  ;;  %975 = vrot.lane.b32.xlu0 %v4650_v34, %s4375_s13  ;;  %2590 = vrot.lane.b32.xlu1 %v4650_v34, %s4376_s14  ;;  %v4682_v56 = vpack.c.b16 %v1405_v12, %v1404_v18  ;;  %v1296_v11 = vunpack.c.l.b16 %v576_v27  ;;  %v3686_v27 = vld [vmem:[%s6026_s3] sm:$0xff]  }
 0x162   : > { %v873_v14 = vsel %vm733_vm1, %v868_v42, 0  ;;  %v1297_v42 = vunpack.c.l.b16 %v577_v25  ;;  %v1351_v15 = vunpack.c.l.b16 %v581_v29 }
 0x163   : > { %v569_v47 = vpack.c.bf16 %v3940_v41, %v3940_v41  ;;  %v568_v49 = vpack.c.bf16 %v3939_v20, %v3939_v20  ;;  %882 = vmatpush.bf16.xpose.msra.mxu3 %v873_v14  ;;  %6069 = vst [vmem:[#allocation11_spill] sm:$0xff] %v4682_v56  ;;  %v4684_v20 = vpack.c.b16 %v1081_v4, %v1080_v23  ;;  %v1134_v14 = vunpack.c.l.b16 %v564_v32 }
 0x164   : > { %v3687_v32 = vunpack.c.l.bf16 %v3686_v27 }
 0x165   : > { %v1189_v60 = vunpack.c.l.b16 %v569_v47  ;;  %v1188_v61 = vunpack.c.l.b16 %v568_v49  ;;  %v1350_v49 = vunpack.c.l.b16 %v580_v38 }
 0x167   : > { %v4665_v30 = vpack.c.b16 %v1189_v60, %v1188_v61  ;;  %v4695_v60 = vpack.c.b16 %v1297_v42, %v1296_v11  ;;  %v4699_v2 = vpack.c.b16 %v1351_v15, %v1350_v49  ;;  %v3688_v15 = vunpack.c.h.bf16 %v3686_v27 }
 0x168   : > { %v3978_v3 = vpop.permute.xlu0 %3977 }
 0x169   : > { %v922_v7 = vpop.permute.xlu1 %921  ;;  %1245 = vrot.lane.b32.xlu0 %v4663_v0, %s4375_s13  ;;  %1191 = vrot.lane.b32.xlu2 %v4665_v30, %s4375_s13  ;;  %v3980_v43 = vunpack.i.h.bf16 %v3978_v3  ;;  %v3979_v46 = vunpack.i.l.bf16 %v3978_v3  ;;  %6070 = vst [vmem:[#allocation12_spill] sm:$0xff] %v4695_v60 }
 0x16a   : > { %v927_v28 = vsel %vm733_vm1, %v922_v7, 0  ;;  %3604 = vmatmul.msk.bf16.vlgmr.msra.gmra.mxu3 %vm733_vm1, %v4518_v39  ;;  %2790 = vrot.lane.b32.xlu1 %v4665_v30, %s4376_s14  ;;  %v565_v39 = vpack.c.bf16 %v3965_v19, %v3965_v19  ;;  %6072 = vst [vmem:[#allocation14_spill] sm:$0xff] %v4699_v2 }
 0x16b   : > { %936 = vmatpush.bf16.xpose.msrb.mxu2 %v927_v28  ;;  %v593_v61 = vpack.c.bf16 %v3980_v43, %v3980_v43  ;;  %v592_v62 = vpack.c.bf16 %v3979_v46, %v3979_v46 }
 0x16c   : > { %v1135_v48 = vunpack.c.l.b16 %v565_v39 }
 0x16d   : > { %v1513_v54 = vunpack.c.l.b16 %v593_v61  ;;  %v1512_v6 = vunpack.c.l.b16 %v592_v62 }
 0x16e   : > { %v4697_v63 = vpack.c.b16 %v1135_v48, %v1134_v14  ;;  %v3814_v48 = vld [vmem:[%s6026_s3 + $0x10] sm:$0xff]  }
 0x16f   : > { %v4711_v28 = vpack.c.b16 %v1513_v54, %v1512_v6  ;;  %v3695_v46 = vunpack.c.l.bf16 %v3814_v48 }
 0x170   : > { %v3983_v41 = vpop.permute.xlu0 %3982  ;;  %6071 = vst [vmem:[#allocation13_spill] sm:$0xff] %v4697_v63 }
 0x171   : > { %1407 = vrot.lane.b32.xlu2 %v4682_v56, %s4375_s13  ;;  %2640 = vrot.lane.b32.xlu0 %v4630_v9, %s4376_s14  ;;  %v3985_v51 = vunpack.i.h.bf16 %v3983_v41  ;;  %v3984_v59 = vunpack.i.l.bf16 %v3983_v41  ;;  %6073 = vst [vmem:[#allocation15_spill] sm:$0xff] %v4711_v28 }
 0x172   : > { %3606 = vmatmul.msk.bf16.vlgmr.msrb.gmra.mxu2 %vm733_vm1, %v4524_v44  ;;  %1083 = vrot.lane.b32.xlu1 %v4684_v20, %s4375_s13 }
 0x173   : > { %v949_v47 = vpop.permute.xlu2 %948  ;;  %v597_v44 = vpack.c.bf16 %v3985_v51, %v3985_v51  ;;  %v596_v1 = vpack.c.bf16 %v3984_v59, %v3984_v59 }
 0x174   : > { %v954_v55 = vsel %vm733_vm1, %v949_v47, 0 }
 0x175   : > { %963 = vmatpush.bf16.xpose.msrb.mxu3 %v954_v55  ;;  %v1567_v7 = vunpack.c.l.b16 %v597_v44  ;;  %v1566_v8 = vunpack.c.l.b16 %v596_v1  ;;  %v3696_v1 = vunpack.c.h.bf16 %v3814_v48 }
 0x177   : > { %v4713_v12 = vpack.c.b16 %v1567_v7, %v1566_v8 }
 0x178   : > { %v4705_v3 = vpop.permute.xlu0 %2390 }
 0x179   : > { %1299 = vrot.lane.b32.xlu2 %v4695_v60, %s4375_s13  ;;  %1137 = vrot.lane.b32.xlu0 %v4697_v63, %s4375_s13  ;;  %6074 = vst [vmem:[#allocation16_spill] sm:$0xff] %v4713_v12 }
 0x17a   : > { %1353 = vrot.lane.b32.xlu1 %v4699_v2, %s4375_s13 }
 0x17c   : > { %3607 = vmatmul.msk.bf16.vlgmr.msrb.gmra.mxu3 %vm733_vm1, %v4546_v13  ;;  %v4724_v13 = vpop.permute.xlu1 %1164  ;;  %v4729_v24 = vpop.permute.xlu2 %1218 }
 0x180   : > { %v4719_v18 = vpop.permute.xlu0 %2490 }
 0x181   : > { %1515 = vrot.lane.b32.xlu2 %v4711_v28, %s4375_s13 }
 0x182   : > { %1569 = vrot.lane.b32.xlu1 %v4713_v12, %s4375_s13 }
 0x184   : > { %v4731_v25 = vpop.permute.xlu1 %2765  ;;  %v4738_v29 = vpop.permute.xlu2 %1434 }
 0x185   : > { %6075 = vst [vmem:[#allocation17_spill] sm:$0xff] %v4731_v25 }
 0x18a   : > { %2690 = vrot.lane.b32.xlu1 %v4684_v20, %s4376_s14 }
 0x18c   : > { %v1003_v19 = vpop.permute.xlu0 %1002 }
 0x18d   : > { %v1008_v21 = vsel %vm733_vm1, %v1003_v19, 0  ;;  %v4748_v11 = vpop.permute.xlu2 %2565  ;;  %v3815_v19 = vld [vmem:[%s6026_s3 + $0x18] sm:$0xff]  }
 0x18e   : > { %1017 = vmatpush.bf16.xpose.msra.mxu2 %v1008_v21  ;;  %v3699_v27 = vunpack.c.l.bf16 %v3815_v19 }
 0x194   : > { %v1381_v4 = vpop.permute.xlu0 %1380 }
 0x195   : > { %3609 = vmatmul.msk.bf16.vlgmr.msra.gmra.mxu2 %vm733_vm1, %v4550_v16  ;;  %v1386_v23 = vsel %vm733_vm1, %v1381_v4, 0  ;;  %v1111_v61 = vpop.permute.xlu2 %1110 }
 0x196   : > { %1395 = vmatpush.bf16.xpose.msrb.mxu0 %v1386_v23 }
 0x19c   : > { %v4761_v62 = vpop.permute.xlu0 %2615 }
 0x19d   : > { %3623 = vmatmul.msk.bf16.vlgmr.msrb.gmra.mxu0 %vm733_vm1, %v4558_v35  ;;  %v4782_v21 = vpop.permute.xlu2 %2715  ;;  %v5116_v35 = vld [vmem:[%s6026_s3 + $0x98] sm:$0xff]  }
 0x19e   : > { %6077 = vst [vmem:[#allocation19_spill] sm:$0xff] %v4782_v21 }
 0x1a3   : > { %v4740_v39 = vpop.permute.xlu1 %1272 }
 0x1a4   : > { %v1057_v4 = vpop.permute.xlu0 %1056 }
 0x1a8   : > { %v749_v16 = vpop.f32.mrf.mxu1 }
 0x1a9   : > { %v4742_v38 = vadd.f32 %v3687_v32, %v749_v16 }
 0x1ab   : > { %v1592_v41 = vsel %vm1591_vm2, %v4742_v38, -inf  ;;  %v4746_v42 = vpop.permute.xlu1 %1326 }
 0x1ac   : > { %1593 = vmax.xlane.f32.xlu2 %v1592_v41  ;;  %v1116_v41 = vsel %vm733_vm1, %v1111_v61, 0  ;;  %v3700_v61 = vunpack.c.h.bf16 %v3815_v19  ;;  %v3818_v19 = vld [vmem:[%s6026_s3 + $0x30] sm:$0xff]  }
 0x1b0   : > { %v751_v14 = vpop.f32.mrf.mxu1 }
 0x1b1   : > { %v4753_v43 = vadd.f32 %v3688_v15, %v751_v14 }
 0x1b3   : > { %v1595_v47 = vsel %vm1591_vm2, %v4753_v43, -inf  ;;  %v1489_v49 = vpop.permute.xlu1 %1488 }
 0x1b4   : > { %1596 = vmax.xlane.f32.xlu0 %v1595_v47  ;;  %v1494_v51 = vsel %vm733_vm1, %v1489_v49, 0 }
 0x1b5   : > { %v803_v59 = vpop.f32.mrf.mxu3  ;;  %1503 = vmatpush.bf16.xpose.msra.mxu0 %v1494_v51  ;;  %v4795_v51 = vpop.permute.xlu0 %1542 }
 0x1b6   : > { %v4758_v55 = vadd.f32 %v3695_v46, %v803_v59 }
 0x1b8   : > { %v1604_v44 = vsel %vm1591_vm2, %v4758_v55, -inf }
 0x1b9   : > { %1605 = vmax.xlane.f32.xlu2 %v1604_v44 }
 0x1bb   : > { %v4765_v54 = vpop.permute.xlu1 %2665 }
 0x1bc   : > { %6076 = vst [vmem:[#allocation18_spill] sm:$0xff] %v4765_v54  ;;  %3627 = vmatmul.msk.bf16.vlgmr.msra.gmra.mxu0 %vm733_vm1, %v4613_v45  ;;  %v5188_v54 = vld [vmem:[%s6026_s3 + $0xa8] sm:$0xff]  }
 0x1bd   : > { %2378 = vmatpush.bf16.msrb.mxu0 %v4573_v58  ;;  %v805_v6 = vpop.f32.mrf.mxu3  ;;  %v4775_v58 = vld [vmem:[%s6026_s3 + $0x8] sm:$0xff]  }
 0x1be   : > { %v4770_v7 = vadd.f32 %v3696_v1, %v805_v6 }
 0x1c0   : > { %v1607_v8 = vsel %vm1591_vm2, %v4770_v7, -inf }
 0x1c1   : > { %2478 = vmatpush.bf16.msra.mxu0 %v4556_v33  ;;  %1608 = vmax.xlane.f32.xlu0 %v1607_v8  ;;  %v3691_v33 = vunpack.c.l.bf16 %v4775_v58  ;;  %v4807_v8 = vld [vmem:[%s6026_s3 + $0x20] sm:$0xff]  }
 0x1c3   : > { %v1030_v23 = vpop.permute.xlu1 %1029  ;;  %v1192_v47 = vpop.permute.xlu2 %1191 }
 0x1c4   : > { %v1035_v32 = vsel %vm733_vm1, %v1030_v23, 0  ;;  %v776_v16 = vpop.f32.mrf.mxu2  ;;  %v1197_v44 = vsel %vm733_vm1, %v1192_v47, 0 }
 0x1c5   : > { %v4787_v15 = vadd.f32 %v3691_v33, %v776_v16  ;;  %1044 = vmatpush.bf16.xpose.msra.mxu3 %v1035_v32  ;;  %v3711_v32 = vunpack.c.l.bf16 %v3818_v19 }
 0x1c6   : > { %v830_v48 = vpop.f32.mrf.mxu1 }
 0x1c7   : > { %v4789_v14 = vadd.f32 %v3699_v27, %v830_v48  ;;  %v1598_v46 = vsel %vm1591_vm2, %v4787_v15, -inf  ;;  %v3703_v27 = vunpack.c.l.bf16 %v4807_v8 }
 0x1c8   : > { %1599 = vmax.xlane.f32.xlu1 %v1598_v46  ;;  %v1062_v46 = vsel %vm733_vm1, %v1057_v4, 0  ;;  %v1278_v4 = vsel %vm733_vm1, %v4740_v39, 0 }
 0x1c9   : > { %v1610_v49 = vsel %vm1591_vm2, %v4789_v14, -inf }
 0x1ca   : > { %1611 = vmax.xlane.f32.xlu0 %v1610_v49 }
 0x1cb   : > { %v4797_v59 = vpop.permute.xlu1 %1461 }
 0x1cc   : > { %v4800_v1 = vpop.f32.mrf.mxu2  ;;  %3610 = vmatmul.msk.bf16.vlgmr.msra.gmra.mxu3 %vm733_vm1, %v4630_v9 }
 0x1cd   : > { %1125 = vmatpush.bf16.xpose.msrb.mxu3 %v1116_v41 }
 0x1ce   : > { %v832_v6 = vpop.f32.mrf.mxu1 }
 0x1cf   : > { %v4809_v33 = vadd.f32 %v3700_v61, %v832_v6 }
 0x1d1   : > { %v1613_v23 = vsel %vm1591_vm2, %v4809_v33, -inf }
 0x1d2   : > { %1614 = vmax.xlane.f32.xlu1 %v1613_v23 }
 0x1d3   : > { %v976_v9 = vpop.permute.xlu0 %975  ;;  %v4818_v41 = vpop.permute.xlu1 %2590 }
 0x1d4   : > { %v981_v16 = vsel %vm733_vm1, %v976_v9, 0  ;;  %v857_v48 = vpop.f32.mrf.mxu2  ;;  %v3712_v9 = vunpack.c.h.bf16 %v3818_v19 }
 0x1d5   : > { %1206 = vmatpush.bf16.xpose.msra.mxu3 %v1197_v44  ;;  %v4821_v47 = vadd.f32 %v3703_v27, %v857_v48  ;;  %990 = vmatpush.bf16.xpose.msra.mxu1 %v981_v16 }
 0x1d6   : > { %v911_v49 = vpop.f32.mrf.mxu1 }
 0x1d7   : > { %v4823_v61 = vadd.f32 %v3711_v32, %v911_v49  ;;  %v1616_v6 = vsel %vm1591_vm2, %v4821_v47, -inf  ;;  %v1170_v49 = vsel %vm733_vm1, %v4724_v13, 0 }
 0x1d9   : > { %v1628_v44 = vsel %vm1591_vm2, %v4823_v61, -inf }
 0x1da   : > { %1629 = vmax.xlane.f32.xlu0 %v1628_v44  ;;  %1617 = vmax.xlane.f32.xlu1 %v1616_v6 }
 0x1db   : > { %v1246_v23 = vpop.permute.xlu0 %1245 }
 0x1dc   : > { %v4831_v27 = vpop.permute.xlu1 %2790  ;;  %3608 = vmatmul.msk.bf16.vlgmr.msra.gmra.mxu1 %vm733_vm1, %v4650_v34  ;;  %3613 = vmatmul.msk.bf16.vlgmr.msrb.gmra.mxu3 %vm733_vm1, %v4604_v37  ;;  %v3817_v37 = vld [vmem:[%s6026_s3 + $0x28] sm:$0xff]   ;;  %v859_v13 = vpop.f32.mrf.mxu2 }
 0x1dd   : > { %1071 = vmatpush.bf16.xpose.msrb.mxu1 %v1062_v46  ;;  %6078 = vst [vmem:[#allocation20_spill] sm:$0xff] %v4831_v27  ;;  %1287 = vmatpush.bf16.xpose.msrb.mxu3 %v1278_v4  ;;  %v3707_v34 = vunpack.c.l.bf16 %v3817_v37  ;;  %v1251_v4 = vsel %vm733_vm1, %v1246_v23, 0  ;;  %v5140_v27 = vld [vmem:[%s6026_s3 + $0x90] sm:$0xff]  }
 0x1de   : > { %v913_v32 = vpop.f32.mrf.mxu1 }
 0x1df   : > { %v4837_v16 = vadd.f32 %v3712_v9, %v913_v32 }
 0x1e1   : > { %v1631_v48 = vsel %vm1591_vm2, %v4837_v16, -inf }
 0x1e2   : > { %1632 = vmax.xlane.f32.xlu1 %v1631_v48 }
 0x1e3   : > { %v4841_v19 = vpop.permute.xlu0 %2640 }
 0x1e4   : > { %v1084_v46 = vpop.permute.xlu1 %1083 }
 0x1e5   : > { %v1089_v39 = vsel %vm733_vm1, %v1084_v46, 0  ;;  %v1224_v46 = vsel %vm733_vm1, %v4729_v24, 0  ;;  %v3704_v24 = vunpack.c.h.bf16 %v4807_v8 }
 0x1e6   : > { %1098 = vmatpush.bf16.xpose.msrb.mxu2 %v1089_v39 }
 0x1eb   : > { %v1138_v44 = vpop.permute.xlu0 %1137 }
 0x1ec   : > { %v1143_v6 = vsel %vm733_vm1, %v1138_v44, 0  ;;  %v1354_v9 = vpop.permute.xlu1 %1353  ;;  %3611 = vmatmul.msk.bf16.vlgmr.msrb.gmra.mxu1 %vm733_vm1, %v4588_v10  ;;  %3616 = vmatmul.msk.bf16.vlgmr.msra.gmra.mxu3 %vm733_vm1, %v4665_v30  ;;  %v1408_v10 = vpop.permute.xlu2 %1407  ;;  %v3692_v30 = vunpack.c.h.bf16 %v4775_v58 }
 0x1ed   : > { %v1359_v32 = vsel %vm733_vm1, %v1354_v9, 0  ;;  %v884_v48 = vpop.f32.mrf.mxu3  ;;  %3612 = vmatmul.msk.bf16.vlgmr.msrb.gmra.mxu2 %vm733_vm1, %v4684_v20  ;;  %1152 = vmatpush.bf16.xpose.msra.mxu1 %v1143_v6 }
 0x1ee   : > { %1179 = vmatpush.bf16.xpose.msra.mxu2 %v1170_v49  ;;  %v4860_v39 = vadd.f32 %v3707_v34, %v884_v48  ;;  %1368 = vmatpush.bf16.xpose.msra.mxu3 %v1359_v32  ;;  %v3708_v49 = vunpack.c.h.bf16 %v3817_v37  ;;  %v4866_v44 = vadd.f32 %v3692_v30, %v4800_v1  ;;  %v3819_v37 = vld [vmem:[%s6026_s3 + $0x38] sm:$0xff]   ;;  %v4881_v1 = vld [vmem:[%s6026_s3 + $0x40] sm:$0xff]   ;;  %v4884_v48 = vadd.f32 %v3704_v24, %v859_v13 }
 0x1ef   : > { %v3716_v32 = vunpack.c.h.bf16 %v3819_v37  ;;  %v1332_v30 = vsel %vm733_vm1, %v4746_v42, 0  ;;  %v3715_v24 = vunpack.c.l.bf16 %v3819_v37 }
 0x1f0   : > { %v1622_v23 = vsel %vm1591_vm2, %v4860_v39, -inf  ;;  %v1601_v34 = vsel %vm1591_vm2, %v4866_v44, -inf }
 0x1f1   : > { %1623 = vmax.xlane.f32.xlu2 %v1622_v23  ;;  %v1467_v23 = vsel %vm733_vm1, %v4797_v59, 0 }
 0x1f4   : > { %v1570_v37 = vpop.permute.xlu1 %1569 }
 0x1f5   : > { %1233 = vmatpush.bf16.xpose.msrb.mxu1 %v1224_v46  ;;  %v886_v20 = vpop.f32.mrf.mxu3  ;;  %v938_v6 = vpop.f32.mrf.mxu2  ;;  %v3719_v46 = vunpack.c.l.bf16 %v4881_v1 }
 0x1f6   : > { %1260 = vmatpush.bf16.xpose.msrb.mxu2 %v1251_v4  ;;  %v4868_v9 = vadd.f32 %v3708_v49, %v886_v20  ;;  %v1300_v4 = vpop.permute.xlu2 %1299  ;;  %v4907_v59 = vadd.f32 %v3715_v24, %v938_v6  ;;  %v3836_v6 = vld [vmem:[%s6026_s3 + $0xc0] sm:$0xff]  }
 0x1f7   : > { %v1305_v8 = vsel %vm733_vm1, %v1300_v4, 0 }
 0x1f8   : > { %v1625_v58 = vsel %vm1591_vm2, %v4868_v9, -inf  ;;  %v1634_v4 = vsel %vm1591_vm2, %v4907_v59, -inf }
 0x1f9   : > { %1602 = vmax.xlane.f32.xlu2 %v1601_v34  ;;  %1626 = vmax.xlane.f32.xlu0 %v1625_v58  ;;  %v1619_v58 = vsel %vm1591_vm2, %v4884_v48, -inf }
 0x1fc   : > { %3614 = vmatmul.msk.bf16.vlgmr.msra.gmra.mxu1 %vm733_vm1, %v4697_v63  ;;  %3619 = vmatmul.msk.bf16.vlgmr.msrb.gmra.mxu3 %vm733_vm1, %v4584_v5 }
 0x1fd   : > { %v940_v49 = vpop.f32.mrf.mxu2  ;;  %3615 = vmatmul.msk.bf16.vlgmr.msra.gmra.mxu2 %vm733_vm1, %v4534_v52  ;;  %1314 = vmatpush.bf16.xpose.msra.mxu1 %v1305_v8  ;;  %v1440_v8 = vsel %vm733_vm1, %v4738_v29, 0 }
 0x1fe   : > { %v4897_v13 = vadd.f32 %v3716_v32, %v940_v49  ;;  %1341 = vmatpush.bf16.xpose.msra.mxu2 %v1332_v30  ;;  %1476 = vmatpush.bf16.xpose.msrb.mxu3 %v1467_v23  ;;  %v1413_v32 = vsel %vm733_vm1, %v1408_v10, 0  ;;  %v3822_v10 = vld [vmem:[%s6026_s3 + $0x50] sm:$0xff]   ;;  %v1516_v23 = vpop.permute.xlu2 %1515  ;;  %v3783_v49 = vunpack.c.l.bf16 %v3836_v6 }
 0x1ff   : > { %v965_v20 = vpop.f32.mrf.mxu3  ;;  %v3727_v30 = vunpack.c.l.bf16 %v3822_v10 }
 0x200   : > { %v4899_v34 = vadd.f32 %v3719_v46, %v965_v20  ;;  %v1637_v42 = vsel %vm1591_vm2, %v4897_v13, -inf  ;;  %v1575_v46 = vsel %vm733_vm1, %v1570_v37, 0 }
 0x201   : > { %1620 = vmax.xlane.f32.xlu2 %v1619_v58  ;;  %1638 = vmax.xlane.f32.xlu0 %v1637_v42 }
 0x202   : > { %v1640_v52 = vsel %vm1591_vm2, %v4899_v34, -inf }
 0x203   : > { %1641 = vmax.xlane.f32.xlu1 %v1640_v52  ;;  %v1548_v52 = vsel %vm733_vm1, %v4795_v51, 0 }
 0x209   : > { %1635 = vmax.xlane.f32.xlu2 %v1634_v4  ;;  %v1521_v4 = vsel %vm733_vm1, %v1516_v23, 0 }
 0x20c   : > { %3617 = vmatmul.msk.bf16.vlgmr.msrb.gmra.mxu1 %vm733_vm1, %v4560_v36  ;;  %3622 = vmatmul.msk.bf16.vlgmr.msra.gmra.mxu3 %vm733_vm1, %v4699_v2 }
 0x20d   : > { %3618 = vmatmul.msk.bf16.vlgmr.msrb.gmra.mxu2 %vm733_vm1, %v4663_v0  ;;  %1422 = vmatpush.bf16.xpose.msrb.mxu1 %v1413_v32 }
 0x20e   : > { %1449 = vmatpush.bf16.xpose.msrb.mxu2 %v1440_v8  ;;  %1584 = vmatpush.bf16.xpose.msra.mxu3 %v1575_v46  ;;  %v3784_v8 = vunpack.c.h.bf16 %v3836_v6 }
 0x218   : > { %v1019_v29 = vpop.f32.mrf.mxu2 }
 0x219   : > { %v4927_v20 = vadd.f32 %v3727_v30, %v1019_v29  ;;  %v3720_v29 = vunpack.c.h.bf16 %v4881_v1  ;;  %v3728_v1 = vunpack.c.h.bf16 %v3822_v10 }
 0x21a   : > { %v1397_v24 = vpop.f32.mrf.mxu0 }
 0x21b   : > { %v4929_v58 = vadd.f32 %v3783_v49, %v1397_v24  ;;  %v1652_v42 = vsel %vm1591_vm2, %v4927_v20, -inf  ;;  %v967_v24 = vpop.f32.mrf.mxu3 }
 0x21c   : > { %1653 = vmax.xlane.f32.xlu1 %v1652_v42  ;;  %3620 = vmatmul.msk.bf16.vlgmr.msra.gmra.mxu1 %vm733_vm1, %v4695_v60 }
 0x21d   : > { %6079 = vst [vmem:[#allocation21_spill] sm:$0xff] %v4929_v58  ;;  %3621 = vmatmul.msk.bf16.vlgmr.msra.gmra.mxu2 %vm733_vm1, %v4600_v26  ;;  %3626 = vmatmul.msk.bf16.vlgmr.msrb.gmra.mxu3 %vm733_vm1, %v4642_v57  ;;  %v1736_v37 = vsel %vm1591_vm2, %v4929_v58, -inf }
 0x21e   : > { %1530 = vmatpush.bf16.xpose.msra.mxu1 %v1521_v4  ;;  %1557 = vmatpush.bf16.xpose.msra.mxu2 %v1548_v52 }
 0x21f   : > { %2453 = vmatpush.bf16.msrb.mxu3 %v4652_v40  ;;  %v1594_v32 = vpop.xlane.xlu2 %1593  ;;  %1737 = vmax.xlane.f32.xlu0 %v1736_v37  ;;  %v4953_v40 = vadd.f32 %v3720_v29, %v967_v24 }
 0x220   : > { %v1784_v51 = vsub.f32 %v4742_v38, %v1594_v32  ;;  %v1021_v37 = vpop.f32.mrf.mxu2 }
 0x221   : > { %v1643_v4 = vsel %vm1591_vm2, %v4953_v40, -inf }
 0x222   : > { %v1848_v46 = vmul.f32 1.442695, %v1784_v51  ;;  %v1399_v30 = vpop.f32.mrf.mxu0  ;;  %v4987_v51 = vld [vmem:[%s6026_s3 + $0x58] sm:$0xff]  }
 0x223   : > { %v4946_v23 = vadd.f32 %v3784_v8, %v1399_v30 }
 0x224   : > { %4108 = vpow2.f32 %v1848_v46  ;;  %v3731_v46 = vunpack.c.l.bf16 %v4987_v51 }
 0x225   : > { %6080 = vst [vmem:[#allocation22_spill] sm:$0xff] %v4946_v23  ;;  %v1739_v49 = vsel %vm1591_vm2, %v4946_v23, -inf }
 0x226   : > { %1740 = vmax.xlane.f32.xlu2 %v1739_v49 }
 0x227   : > { %v1597_v52 = vpop.xlane.xlu0 %1596 }
 0x228   : > { %v1785_v6 = vsub.f32 %v4753_v43, %v1597_v52  ;;  %v4969_v43 = vadd.f32 %v3728_v1, %v1021_v37  ;;  %v5000_v1 = vpop.permute.xlu1 %2690 }
 0x229   : > { %6081 = vst [vmem:[#allocation23_spill] sm:$0xff] %v5000_v1 }
 0x22a   : > { %v4951_v42 = vpop.eup %4108  ;;  %v1850_v32 = vmul.f32 1.442695, %v1785_v6  ;;  %v1655_v8 = vsel %vm1591_vm2, %v4969_v43, -inf }
 0x22b   : > { %v1976_v38 = vsel %vm1591_vm2, %v4951_v42, 0.0 }
 0x22c   : > { %1977 = vadd.xlane.f32.xlu1 %v1976_v38  ;;  %3624 = vmatmul.msk.bf16.vlgmr.msrb.gmra.mxu1 %vm733_vm1, %v4682_v56  ;;  %4110 = vpow2.f32 %v1850_v32  ;;  %v1606_v29 = vpop.xlane.xlu2 %1605 }
 0x22d   : > { %3625 = vmatmul.msk.bf16.vlgmr.msrb.gmra.mxu2 %vm733_vm1, %v4570_v50  ;;  %3630 = vmatmul.msk.bf16.vlgmr.msra.gmra.mxu3 %vm733_vm1, %v4713_v12  ;;  %v1788_v24 = vsub.f32 %v4758_v55, %v1606_v29 }
 0x22e   : > { %2403 = vmatpush.bf16.msrb.mxu1 %v4705_v3  ;;  %2428 = vmatpush.bf16.msrb.mxu2 %v4590_v17 }
 0x22f   : > { %2553 = vmatpush.bf16.msra.mxu3 %v4679_v22  ;;  %1644 = vmax.xlane.f32.xlu2 %v1643_v4  ;;  %v1856_v6 = vmul.f32 1.442695, %v1788_v24 }
 0x232   : > { %v4973_v10 = vpop.eup %4110 }
 0x233   : > { %v1979_v17 = vsel %vm1591_vm2, %v4973_v10, 0.0 }
 0x234   : > { %v1609_v22 = vpop.xlane.xlu0 %1608 }
 0x235   : > { %v1789_v3 = vsub.f32 %v4770_v7, %v1609_v22  ;;  %v3821_v7 = vld [vmem:[%s6026_s3 + $0x48] sm:$0xff]  }
 0x236   : > { %v3723_v52 = vunpack.c.l.bf16 %v3821_v7 }
 0x237   : > { %1656 = vmax.xlane.f32.xlu2 %v1655_v8  ;;  %v1858_v30 = vmul.f32 1.442695, %v1789_v3  ;;  %v3724_v8 = vunpack.c.h.bf16 %v3821_v7 }
 0x239   : > { %4112 = vpow2.f32 %v1858_v30 }
 0x23a   : > { %4114 = vpow2.f32 %v1856_v6 }
 0x23c   : > { %3628 = vmatmul.msk.bf16.vlgmr.msra.gmra.mxu1 %vm733_vm1, %v4711_v28 }
 0x23d   : > { %3629 = vmatmul.msk.bf16.vlgmr.msra.gmra.mxu2 %vm733_vm1, %v4602_v31  ;;  %2503 = vmatpush.bf16.msra.mxu1 %v4719_v18 }
 0x23e   : > { %2528 = vmatpush.bf16.msra.mxu2 %v4632_v53 }
 0x23f   : > { %1980 = vadd.xlane.f32.xlu2 %v1979_v17  ;;  %v4998_v38 = vpop.eup %4112  ;;  %v1600_v17 = vpop.xlane.xlu1 %1599 }
 0x240   : > { %v1991_v32 = vsel %vm1591_vm2, %v4998_v38, 0.0  ;;  %v5008_v22 = vpop.eup %4114  ;;  %v1786_v30 = vsub.f32 %v4787_v15, %v1600_v17 }
 0x241   : > { %v1988_v29 = vsel %vm1591_vm2, %v5008_v22, 0.0 }
 0x242   : > { %v1852_v7 = vmul.f32 1.442695, %v1786_v30 }
 0x244   : > { %4116 = vpow2.f32 %v1852_v7 }
 0x24f   : > { %v1046_v49 = vpop.f32.mrf.mxu3 }
 0x250   : > { %v4990_v18 = vadd.f32 %v3731_v46, %v1046_v49  ;;  %v5016_v49 = vld [vmem:[%s6026_s3 + $0x60] sm:$0xff]  }
 0x251   : > { %v3735_v24 = vunpack.c.l.bf16 %v5016_v49 }
 0x252   : > { %v1658_v53 = vsel %vm1591_vm2, %v4990_v18, -inf }
 0x253   : > { %1659 = vmax.xlane.f32.xlu2 %v1658_v53 }
 0x257   : > { %v1048_v30 = vpop.f32.mrf.mxu3 }
 0x259   : > { %v992_v4 = vpop.f32.mrf.mxu1 }
 0x25a   : > { %v5002_v37 = vadd.f32 %v3723_v52, %v992_v4  ;;  %v1612_v52 = vpop.xlane.xlu0 %1611 }
 0x25b   : > { %1992 = vadd.xlane.f32.xlu2 %v1991_v32  ;;  %v1790_v15 = vsub.f32 %v4789_v14, %v1612_v52  ;;  %v3825_v32 = vld [vmem:[%s6026_s3 + $0x68] sm:$0xff]  }
 0x25c   : > { %v1646_v55 = vsel %vm1591_vm2, %v5002_v37, -inf  ;;  %v3740_v52 = vunpack.c.h.bf16 %v3825_v32 }
 0x25d   : > { %1647 = vmax.xlane.f32.xlu0 %v1646_v55  ;;  %v1860_v17 = vmul.f32 1.442695, %v1790_v15 }
 0x25f   : > { %4118 = vpow2.f32 %v1860_v17  ;;  %v1127_v45 = vpop.f32.mrf.mxu3 }
 0x261   : > { %v994_v3 = vpop.f32.mrf.mxu1 }
 0x262   : > { %v5010_v46 = vadd.f32 %v3724_v8, %v994_v3  ;;  %v3739_v8 = vunpack.c.l.bf16 %v3825_v32  ;;  %v5052_v32 = vld [vmem:[%s6026_s3 + $0x80] sm:$0xff]  }
 0x264   : > { %v1649_v53 = vsel %vm1591_vm2, %v5010_v46, -inf  ;;  %v1624_v14 = vpop.xlane.xlu2 %1623 }
 0x265   : > { %1989 = vadd.xlane.f32.xlu0 %v1988_v29  ;;  %1650 = vmax.xlane.f32.xlu1 %v1649_v53  ;;  %v5031_v29 = vpop.eup %4116  ;;  %v1794_v31 = vsub.f32 %v4860_v39, %v1624_v14  ;;  %v3751_v39 = vunpack.c.l.bf16 %v5052_v32 }
 0x266   : > { %v1982_v7 = vsel %vm1591_vm2, %v5031_v29, 0.0  ;;  %v5039_v15 = vpop.eup %4118 }
 0x267   : > { %v1868_v14 = vmul.f32 1.442695, %v1794_v31 }
 0x269   : > { %v1073_v6 = vpop.f32.mrf.mxu1 }
 0x26a   : > { %v5024_v4 = vadd.f32 %v3735_v24, %v1073_v6  ;;  %v1615_v6 = vpop.xlane.xlu1 %1614 }
 0x26b   : > { %v1791_v17 = vsub.f32 %v4809_v33, %v1615_v6  ;;  %v1994_v33 = vsel %vm1591_vm2, %v5039_v15, 0.0 }
 0x26c   : > { %v1664_v55 = vsel %vm1591_vm2, %v5024_v4, -inf }
 0x26d   : > { %1665 = vmax.xlane.f32.xlu2 %v1664_v55  ;;  %v1630_v55 = vpop.xlane.xlu0 %1629 }
 0x270   : > { %v1100_v3 = vpop.f32.mrf.mxu2 }
 0x271   : > { %v5033_v53 = vadd.f32 %v3739_v8, %v1100_v3  ;;  %v3826_v8 = vld [vmem:[%s6026_s3 + $0x70] sm:$0xff]  }
 0x272   : > { %v3743_v28 = vunpack.c.l.bf16 %v3826_v8 }
 0x273   : > { %v1670_v24 = vsel %vm1591_vm2, %v5033_v53, -inf }
 0x274   : > { %1671 = vmax.xlane.f32.xlu0 %v1670_v24  ;;  %v3732_v24 = vunpack.c.h.bf16 %v4987_v51  ;;  %v1862_v51 = vmul.f32 1.442695, %v1791_v17  ;;  %v5062_v50 = vadd.f32 %v3743_v28, %v1127_v45  ;;  %v1129_v28 = vpop.f32.mrf.mxu3 }
 0x275   : > { %1983 = vadd.xlane.f32.xlu2 %v1982_v7  ;;  %v1796_v7 = vsub.f32 %v4823_v61, %v1630_v55  ;;  %v1627_v61 = vpop.xlane.xlu0 %1626  ;;  %v1075_v55 = vpop.f32.mrf.mxu1 }
 0x276   : > { %4120 = vpow2.f32 %v1862_v51  ;;  %v1676_v17 = vsel %vm1591_vm2, %v5062_v50, -inf }
 0x277   : > { %v1872_v6 = vmul.f32 1.442695, %v1796_v7  ;;  %4122 = vpow2.f32 %v1868_v14  ;;  %v1618_v7 = vpop.xlane.xlu1 %1617  ;;  %v3736_v14 = vunpack.c.h.bf16 %v5016_v49 }
 0x278   : > { %v1102_v3 = vpop.f32.mrf.mxu2 }
 0x279   : > { %v5045_v12 = vadd.f32 %v3740_v52, %v1102_v3  ;;  %v1603_v52 = vpop.xlane.xlu2 %1602  ;;  %v5060_v3 = vadd.f32 %v3732_v24, %v1048_v30  ;;  %4124 = vpow2.f32 %v1872_v6 }
 0x27a   : > { %v1787_v51 = vsub.f32 %v4866_v44, %v1603_v52  ;;  %v5091_v44 = vadd.f32 %v3736_v14, %v1075_v55 }
 0x27b   : > { %v1673_v57 = vsel %vm1591_vm2, %v5045_v12, -inf  ;;  %v1661_v31 = vsel %vm1591_vm2, %v5060_v3, -inf }
 0x27c   : > { %1674 = vmax.xlane.f32.xlu1 %v1673_v57  ;;  %1995 = vadd.xlane.f32.xlu0 %v1994_v33  ;;  %v1795_v57 = vsub.f32 %v4868_v9, %v1627_v61  ;;  %v1667_v55 = vsel %vm1591_vm2, %v5091_v44, -inf }
 0x27e   : > { %v1870_v30 = vmul.f32 1.442695, %v1795_v57  ;;  %v3744_v57 = vunpack.c.h.bf16 %v3826_v8 }
 0x27f   : > { %v1633_v26 = vpop.xlane.xlu1 %1632 }
 0x280   : > { %v1181_v2 = vpop.f32.mrf.mxu2  ;;  %4126 = vpow2.f32 %v1870_v30  ;;  %v5095_v49 = vadd.f32 %v3744_v57, %v1129_v28  ;;  %v3827_v30 = vld [vmem:[%s6026_s3 + $0x78] sm:$0xff]  }
 0x281   : > { %v5064_v56 = vadd.f32 %v3751_v39, %v1181_v2  ;;  %v5073_v2 = vpop.eup %4120  ;;  %v5075_v24 = vpop.xlane.xlu2 %1620  ;;  %v3747_v14 = vunpack.c.l.bf16 %v3827_v30 }
 0x282   : > { %v5077_v9 = vpop.eup %4122  ;;  %v1154_v39 = vpop.f32.mrf.mxu1  ;;  %v1997_v61 = vsel %vm1591_vm2, %v5073_v2, 0.0  ;;  %v1679_v57 = vsel %vm1591_vm2, %v5095_v49, -inf }
 0x283   : > { %v1688_v45 = vsel %vm1591_vm2, %v5064_v56, -inf  ;;  %v5079_v33 = vpop.eup %4124  ;;  %v2006_v6 = vsel %vm1591_vm2, %v5077_v9, 0.0 }
 0x284   : > { %1677 = vmax.xlane.f32.xlu1 %v1676_v17  ;;  %1662 = vmax.xlane.f32.xlu0 %v1661_v31  ;;  %v2012_v17 = vsel %vm1591_vm2, %v5079_v33, 0.0  ;;  %v1854_v31 = vmul.f32 1.442695, %v1787_v51 }
 0x285   : > { %1689 = vmax.xlane.f32.xlu2 %v1688_v45  ;;  %v5089_v45 = vpop.f32.mrf.mxu3 }
 0x286   : > { %v5093_v52 = vpop.eup %4126  ;;  %4128 = vpow2.f32 %v1854_v31  ;;  %v5111_v31 = vadd.f32 %v3747_v14, %v1154_v39 }
 0x287   : > { %v2009_v51 = vsel %vm1591_vm2, %v5093_v52, 0.0 }
 0x289   : > { %v1636_v8 = vpop.xlane.xlu2 %1635 }
 0x28a   : > { %v1156_v28 = vpop.f32.mrf.mxu1 }
 0x28c   : > { %2007 = vadd.xlane.f32.xlu1 %v2006_v6  ;;  %1998 = vadd.xlane.f32.xlu0 %v1997_v61  ;;  %v1792_v6 = vsub.f32 %v4821_v47, %v1618_v7  ;;  %v1183_v61 = vpop.f32.mrf.mxu2  ;;  %v5109_v7 = vpop.eup %4128 }
 0x28d   : > { %2013 = vadd.xlane.f32.xlu2 %v2012_v17  ;;  %v3748_v17 = vunpack.c.h.bf16 %v3827_v30  ;;  %v1210_v30 = vpop.f32.mrf.mxu3  ;;  %v1985_v14 = vsel %vm1591_vm2, %v5109_v7, 0.0 }
 0x28e   : > { %v1864_v0 = vmul.f32 1.442695, %v1792_v6  ;;  %v3752_v6 = vunpack.c.h.bf16 %v5052_v32 }
 0x28f   : > { %v5107_v47 = vadd.f32 %v3748_v17, %v1156_v28  ;;  %v3763_v17 = vunpack.c.l.bf16 %v5116_v35 }
 0x290   : > { %4130 = vpow2.f32 %v1864_v0  ;;  %v5131_v0 = vadd.f32 %v3752_v6, %v1183_v61  ;;  %v3829_v61 = vld [vmem:[%s6026_s3 + $0x88] sm:$0xff]   ;;  %v3759_v6 = vunpack.c.l.bf16 %v5140_v27 }
 0x291   : > { %6082 = vst [vmem:[#allocation24_spill] sm:$0xff] %v5107_v47  ;;  %v1685_v39 = vsel %vm1591_vm2, %v5107_v47, -inf }
 0x292   : > { %v1235_v25 = vpop.f32.mrf.mxu1 }
 0x294   : > { %2010 = vadd.xlane.f32.xlu1 %v2009_v51  ;;  %1668 = vmax.xlane.f32.xlu0 %v1667_v55  ;;  %v1797_v51 = vsub.f32 %v4837_v16, %v1633_v26  ;;  %v5121_v55 = vpop.xlane.xlu1 %1641  ;;  %v1262_v28 = vpop.f32.mrf.mxu2 }
 0x295   : > { %1680 = vmax.xlane.f32.xlu2 %v1679_v57  ;;  %v1682_v57 = vsel %vm1591_vm2, %v5111_v31, -inf  ;;  %v5133_v16 = vadd.f32 %v3763_v17, %v1262_v28  ;;  %v1691_v28 = vsel %vm1591_vm2, %v5131_v0, -inf }
 0x296   : > { %v1874_v26 = vmul.f32 1.442695, %v1797_v51  ;;  %v5135_v32 = vpop.eup %4130  ;;  %v5150_v51 = vpop.f32.mrf.mxu3 }
 0x297   : > { %6084 = vst [vmem:[#allocation26_spill] sm:$0xff] %v5133_v16  ;;  %v1706_v17 = vsel %vm1591_vm2, %v5133_v16, -inf  ;;  %v1793_v16 = vsub.f32 %v4884_v48, %v5075_v24 }
 0x298   : > { %6085 = vst [vmem:[#allocation27_spill] sm:$0xff] %v5135_v32  ;;  %4132 = vpow2.f32 %v1874_v26  ;;  %v5159_v26 = vadd.f32 %v3759_v6, %v1235_v25 }
 0x299   : > { %v5118_v60 = vpop.xlane.xlu2 %1740 }
 0x29a   : > { %6083 = vst [vmem:[#allocation25_spill] sm:$0xff] %v5118_v60  ;;  %v1700_v25 = vsel %vm1591_vm2, %v5159_v26, -inf }
 0x29c   : > { %1686 = vmax.xlane.f32.xlu1 %v1685_v39  ;;  %1986 = vadd.xlane.f32.xlu0 %v1985_v14  ;;  %v1798_v39 = vsub.f32 %v4907_v59, %v1636_v8  ;;  %v5143_v36 = vpop.xlane.xlu1 %1653  ;;  %v2000_v59 = vsel %vm1591_vm2, %v5135_v32, 0.0  ;;  %v1264_v63 = vpop.f32.mrf.mxu2 }
 0x29d   : > { %1683 = vmax.xlane.f32.xlu2 %v1682_v57  ;;  %v3756_v57 = vunpack.c.h.bf16 %v3829_v61 }
 0x29e   : > { %v1876_v8 = vmul.f32 1.442695, %v1798_v39  ;;  %v5161_v23 = vpop.eup %4132  ;;  %v1237_v39 = vpop.f32.mrf.mxu1 }
 0x29f   : > { %v5163_v60 = vadd.f32 %v3756_v57, %v1210_v30  ;;  %v2015_v30 = vsel %vm1591_vm2, %v5161_v23, 0.0  ;;  %v1291_v24 = vpop.f32.mrf.mxu3 }
 0x2a0   : > { %4134 = vpow2.f32 %v1876_v8 }
 0x2a1   : > { %v1697_v48 = vsel %vm1591_vm2, %v5163_v60, -inf }
 0x2a2   : > { %v5145_v14 = vpop.xlane.xlu2 %1644 }
 0x2a4   : > { %1707 = vmax.xlane.f32.xlu1 %v1706_v17  ;;  %1692 = vmax.xlane.f32.xlu0 %v1691_v28  ;;  %v1978_v58 = vpop.xlane.xlu1 %1977  ;;  %v3755_v17 = vunpack.c.l.bf16 %v3829_v61  ;;  %v3832_v28 = vld [vmem:[%s6026_s3 + $0xa0] sm:$0xff]   ;;  %v1866_v61 = vmul.f32 1.442695, %v1793_v16 }
 0x2a5   : > { %2001 = vadd.xlane.f32.xlu2 %v2000_v59  ;;  %v3768_v6 = vunpack.c.h.bf16 %v3832_v28  ;;  %4136 = vrcp.f32 %v1978_v58  ;;  %v3764_v58 = vunpack.c.h.bf16 %v5116_v35  ;;  %v3767_v47 = vunpack.c.l.bf16 %v3832_v28 }
 0x2a6   : > { %v5179_v57 = vadd.f32 %v3755_v17, %v5089_v45  ;;  %v5181_v59 = vpop.eup %4134  ;;  %4138 = vpow2.f32 %v1866_v61  ;;  %v3771_v17 = vunpack.c.l.bf16 %v5188_v54  ;;  %v1639_v61 = vpop.xlane.xlu0 %1638 }
 0x2a7   : > { %6087 = vst [vmem:[#allocation29_spill] sm:$0xff] %v5181_v59  ;;  %v5183_v8 = vadd.f32 %v3768_v6, %v1291_v24  ;;  %v2018_v45 = vsel %vm1591_vm2, %v5181_v59, 0.0  ;;  %v1370_v35 = vpop.f32.mrf.mxu3 }
 0x2a8   : > { %6086 = vst [vmem:[#allocation28_spill] sm:$0xff] %v5179_v57  ;;  %v1694_v16 = vsel %vm1591_vm2, %v5179_v57, -inf }
 0x2a9   : > { %6088 = vst [vmem:[#allocation30_spill] sm:$0xff] %v5183_v8  ;;  %v1715_v6 = vsel %vm1591_vm2, %v5183_v8, -inf  ;;  %v1799_v8 = vsub.f32 %v4897_v13, %v1639_v61  ;;  %v3834_v61 = vld [vmem:[%s6026_s3 + $0xb0] sm:$0xff]  }
 0x2aa   : > { %v5167_v5 = vpop.xlane.xlu2 %1656 }
 0x2ab   : > { %v1878_v13 = vmul.f32 1.442695, %v1799_v8  ;;  %v3775_v8 = vunpack.c.l.bf16 %v3834_v61 }
 0x2ac   : > { %1701 = vmax.xlane.f32.xlu1 %v1700_v25  ;;  %2016 = vadd.xlane.f32.xlu0 %v2015_v30  ;;  %v1343_v25 = vpop.f32.mrf.mxu2  ;;  %v4137_v30 = vpop.eup %4136 }
 0x2ad   : > { %1698 = vmax.xlane.f32.xlu2 %v1697_v48  ;;  %v1316_v48 = vpop.f32.mrf.mxu1  ;;  %v2232_v24 = vmul.f32 %v4137_v30, %v4951_v42  ;;  %v5201_v1 = vpop.eup %4138  ;;  %v3760_v42 = vunpack.c.h.bf16 %v5140_v27  ;;  %v5218_v27 = vadd.f32 %v3767_v47, %v5150_v51 }
 0x2ae   : > { %v5203_v59 = vadd.f32 %v3771_v17, %v1316_v48 }
 0x2af   : > { %v5220_v28 = vadd.f32 %v3760_v42, %v1237_v39  ;;  %v1712_v39 = vsel %vm1591_vm2, %v5218_v27, -inf }
 0x2b0   : > { %v1718_v57 = vsel %vm1591_vm2, %v5203_v59, -inf }
 0x2b1   : > { %v1703_v51 = vsel %vm1591_vm2, %v5220_v28, -inf }
 0x2b2   : > { %v1981_v32 = vpop.xlane.xlu2 %1980 }
 0x2b3   : > { %4140 = vrcp.f32 %v1981_v32  ;;  %v5199_v32 = vadd.f32 %v3764_v58, %v1264_v63  ;;  %v2003_v58 = vsel %vm1591_vm2, %v5201_v1, 0.0 }
 0x2b4   : > { %2019 = vadd.xlane.f32.xlu1 %v2018_v45  ;;  %1695 = vmax.xlane.f32.xlu0 %v1694_v16  ;;  %v3835_v45 = vld [vmem:[%s6026_s3 + $0xb8] sm:$0xff]   ;;  %v2296_v16 = vpack.c.bf16 %v2232_v24, %v2232_v24  ;;  %v1345_v30 = vpop.f32.mrf.mxu2  ;;  %4142 = vpow2.f32 %v1878_v13 }
 0x2b5   : > { %1716 = vmax.xlane.f32.xlu2 %v1715_v6  ;;  %6089 = vst [vmem:[#allocation31_spill] sm:$0xff] %v5199_v32  ;;  %v1709_v63 = vsel %vm1591_vm2, %v5199_v32, -inf  ;;  %v3779_v17 = vunpack.c.l.bf16 %v3835_v45  ;;  %v1318_v47 = vpop.f32.mrf.mxu1 }
 0x2b7   : > { %v5222_v24 = vadd.f32 %v3779_v17, %v1370_v35  ;;  %v5240_v17 = vadd.f32 %v3775_v8, %v1343_v25 }
 0x2b9   : > { %v4141_v21 = vpop.eup %4140  ;;  %6090 = vst [vmem:[#allocation32_spill] sm:$0xff] %v5222_v24  ;;  %v1724_v25 = vsel %vm1591_vm2, %v5240_v17, -inf }
 0x2ba   : > { %v2233_v6 = vmul.f32 %v4141_v21, %v4973_v10  ;;  %v2362_v21 = vunpack.c.l.b16 %v2296_v16  ;;  %v1730_v16 = vsel %vm1591_vm2, %v5222_v24, -inf  ;;  %6091 = vst [vmem:[#allocation33_spill] sm:$0xff] %v5240_v17 }
 0x2bc   : > { %v2297_v48 = vpack.c.bf16 %v2233_v6, %v2233_v6  ;;  %1710 = vmax.xlane.f32.xlu1 %v1709_v63  ;;  %2004 = vadd.xlane.f32.xlu0 %v2003_v58  ;;  %v1372_v63 = vpop.f32.mrf.mxu3  ;;  %v1451_v42 = vpop.f32.mrf.mxu2 }
 0x2bd   : > { %1719 = vmax.xlane.f32.xlu2 %v1718_v57  ;;  %v3838_v57 = vld [vmem:[%s6026_s3 + $0xd0] sm:$0xff]  }
 0x2be   : > { %v2363_v10 = vunpack.c.l.b16 %v2297_v48  ;;  %v3791_v35 = vunpack.c.l.bf16 %v3838_v57  ;;  %v5242_v48 = vpop.eup %4142  ;;  %v3792_v17 = vunpack.c.h.bf16 %v3838_v57 }
 0x2bf   : > { %6092 = vst [vmem:[#allocation34_spill] sm:$0xff] %v5242_v48 }
 0x2c0   : > { %v2364_v6 = vpack.c.b16 %v2363_v10, %v2362_v21  ;;  %v5246_v13 = vadd.f32 %v3791_v35, %v1451_v42  ;;  %v3837_v21 = vld [vmem:[%s6026_s3 + $0xc8] sm:$0xff]   ;;  %v3780_v10 = vunpack.c.h.bf16 %v3835_v45  ;;  %v1424_v35 = vpop.f32.mrf.mxu1 }
 0x2c1   : > { %v3787_v8 = vunpack.c.l.bf16 %v3837_v21 }
 0x2c2   : > { %3631 = vmatmul.msk.bf16.vlgmr.msrb.gmra.mxu0 %vm1591_vm2, %v2364_v6  ;;  %6093 = vst [vmem:[#allocation35_spill] sm:$0xff] %v5246_v13  ;;  %v5257_v42 = vadd.f32 %v3780_v10, %v1372_v63 }
 0x2c3   : > { %2578 = vmatpush.bf16.msrb.mxu0 %v4748_v11  ;;  %v5244_v11 = vpop.xlane.xlu0 %1737  ;;  %v5261_v45 = vadd.f32 %v3787_v8, %v1424_v35 }
 0x2c4   : > { %1704 = vmax.xlane.f32.xlu1 %v1703_v51  ;;  %1713 = vmax.xlane.f32.xlu0 %v1712_v39  ;;  %v1478_v6 = vpop.f32.mrf.mxu3  ;;  %v3776_v51 = vunpack.c.h.bf16 %v3834_v61  ;;  %v2021_v39 = vsel %vm1591_vm2, %v5242_v48, 0.0  ;;  %6094 = vst [vmem:[#allocation36_spill] sm:$0xff] %v5257_v42  ;;  %v3772_v48 = vunpack.c.h.bf16 %v5188_v54  ;;  %v1453_v10 = vpop.f32.mrf.mxu2 }
 0x2c5   : > { %1731 = vmax.xlane.f32.xlu2 %v1730_v16  ;;  %v1748_v16 = vsel %vm1591_vm2, %v5246_v13, -inf  ;;  %6095 = vst [vmem:[#allocation37_spill] sm:$0xff] %v5261_v45 }
 0x2c6   : > { %v5238_v58 = vpop.xlane.xlu2 %1659  ;;  %v5259_v24 = vadd.f32 %v3776_v51, %v1345_v30  ;;  %v1733_v30 = vsel %vm1591_vm2, %v5257_v42, -inf  ;;  %v1742_v51 = vsel %vm1591_vm2, %v5261_v45, -inf  ;;  %v5275_v8 = vadd.f32 %v3772_v48, %v1318_v47 }
 0x2c7   : > { %v1800_v42 = vsub.f32 %v4899_v34, %v5121_v55 }
 0x2cc   : > { %2022 = vadd.xlane.f32.xlu1 %v2021_v39  ;;  %1725 = vmax.xlane.f32.xlu0 %v1724_v25  ;;  %v3839_v39 = vld [vmem:[%s6026_s3 + $0xd8] sm:$0xff]   ;;  %v1727_v25 = vsel %vm1591_vm2, %v5259_v24, -inf  ;;  %v1480_v54 = vpop.f32.mrf.mxu3 }
 0x2cd   : > { %1749 = vmax.xlane.f32.xlu2 %v1748_v16  ;;  %v3796_v63 = vunpack.c.h.bf16 %v3839_v39  ;;  %v5277_v16 = vadd.f32 %v3792_v17, %v1453_v10  ;;  %v3795_v45 = vunpack.c.l.bf16 %v3839_v39  ;;  %v1721_v17 = vsel %vm1591_vm2, %v5275_v8, -inf }
 0x2ce   : > { %v1993_v61 = vpop.xlane.xlu2 %1992 }
 0x2cf   : > { %4144 = vrcp.f32 %v1993_v61  ;;  %v5279_v57 = vadd.f32 %v3796_v63, %v1480_v54  ;;  %v1751_v48 = vsel %vm1591_vm2, %v5277_v16, -inf  ;;  %v1426_v63 = vpop.f32.mrf.mxu1  ;;  %v5293_v55 = vadd.f32 %v3795_v45, %v1478_v6 }
 0x2d0   : > { %v5263_v32 = vpop.xlane.xlu0 %1647 }
 0x2d1   : > { %v1757_v34 = vsel %vm1591_vm2, %v5279_v57, -inf  ;;  %v1754_v45 = vsel %vm1591_vm2, %v5293_v55, -inf }
 0x2d4   : > { %1728 = vmax.xlane.f32.xlu1 %v1727_v25  ;;  %1734 = vmax.xlane.f32.xlu0 %v1733_v30  ;;  %v1804_v30 = vsub.f32 %v4927_v20, %v5143_v36 }
 0x2d5   : > { %1743 = vmax.xlane.f32.xlu2 %v1742_v51  ;;  %v4145_v13 = vpop.eup %4144  ;;  %v3788_v51 = vunpack.c.h.bf16 %v3837_v21 }
 0x2d6   : > { %v2237_v10 = vmul.f32 %v4145_v13, %v4998_v38  ;;  %v1888_v36 = vmul.f32 1.442695, %v1804_v30  ;;  %v1801_v38 = vsub.f32 %v4953_v40, %v5145_v14  ;;  %v1805_v13 = vsub.f32 %v4969_v43, %v5167_v5 }
 0x2d7   : > { %v5295_v21 = vadd.f32 %v3788_v51, %v1426_v63 }
 0x2d8   : > { %v1990_v35 = vpop.xlane.xlu0 %1989  ;;  %v1651_v61 = vpop.xlane.xlu1 %1650  ;;  %v2301_v39 = vpack.c.bf16 %v2237_v10, %v2237_v10  ;;  %v1890_v14 = vmul.f32 1.442695, %v1805_v13 }
 0x2d9   : > { %4146 = vrcp.f32 %v1990_v35  ;;  %v1803_v25 = vsub.f32 %v5010_v46, %v1651_v61  ;;  %v1880_v46 = vmul.f32 1.442695, %v1800_v42  ;;  %v1745_v6 = vsel %vm1591_vm2, %v5295_v21, -inf }
 0x2da   : > { %v2413_v61 = vunpack.c.l.b16 %v2301_v39 }
 0x2db   : > { %v1886_v47 = vmul.f32 1.442695, %v1803_v25 }
 0x2dc   : > { %1722 = vmax.xlane.f32.xlu1 %v1721_v17  ;;  %1752 = vmax.xlane.f32.xlu0 %v1751_v48  ;;  %v1806_v17 = vsub.f32 %v4990_v18, %v5238_v58  ;;  %v1802_v48 = vsub.f32 %v5002_v37, %v5263_v32 }
 0x2dd   : > { %4148 = vpow2.f32 %v1886_v47  ;;  %1758 = vmax.xlane.f32.xlu2 %v1757_v34 }
 0x2de   : > { %4150 = vpow2.f32 %v1880_v46  ;;  %v1892_v34 = vmul.f32 1.442695, %v1806_v17  ;;  %v1884_v46 = vmul.f32 1.442695, %v1802_v48 }
 0x2df   : > { %v4147_v20 = vpop.eup %4146  ;;  %4152 = vpow2.f32 %v1888_v36 }
 0x2e0   : > { %v2236_v54 = vmul.f32 %v4147_v20, %v5008_v22  ;;  %v1882_v22 = vmul.f32 1.442695, %v1801_v38  ;;  %v1666_v43 = vpop.xlane.xlu2 %1665 }
 0x2e2   : > { %v2300_v42 = vpack.c.bf16 %v2236_v54, %v2236_v54  ;;  %4154 = vpow2.f32 %v1882_v22 }
 0x2e3   : > { %v5302_v35 = vpop.eup %4148  ;;  %4156 = vpow2.f32 %v1890_v14 }
 0x2e4   : > { %v2412_v25 = vunpack.c.l.b16 %v2300_v42  ;;  %1746 = vmax.xlane.f32.xlu1 %v1745_v6  ;;  %1755 = vmax.xlane.f32.xlu0 %v1754_v45  ;;  %v2033_v40 = vsel %vm1591_vm2, %v5302_v35, 0.0  ;;  %v5310_v30 = vpop.eup %4150  ;;  %4158 = vpow2.f32 %v1892_v34 }
 0x2e5   : > { %2034 = vadd.xlane.f32.xlu2 %v2033_v40  ;;  %v5312_v47 = vpop.eup %4152  ;;  %v2024_v63 = vsel %vm1591_vm2, %v5310_v30, 0.0  ;;  %4160 = vpow2.f32 %v1884_v46 }
 0x2e6   : > { %v2414_v5 = vpack.c.b16 %v2413_v61, %v2412_v25  ;;  %v2036_v10 = vsel %vm1591_vm2, %v5312_v47, 0.0 }
 0x2e7   : > { %v1672_v51 = vpop.xlane.xlu0 %1671 }
 0x2e8   : > { %3633 = vmatmul.msk.bf16.vlgmr.msrb.gmra.mxu2 %vm1591_vm2, %v2414_v5  ;;  %v5324_v36 = vpop.eup %4154  ;;  %v1984_v39 = vpop.xlane.xlu2 %1983  ;;  %v1810_v37 = vsub.f32 %v5033_v53, %v1672_v51 }
 0x2e9   : > { %2628 = vmatpush.bf16.msrb.mxu2 %v4761_v62  ;;  %v5326_v58 = vpop.eup %4156  ;;  %v1808_v62 = vsub.f32 %v5024_v4, %v1666_v43  ;;  %v2027_v54 = vsel %vm1591_vm2, %v5324_v36, 0.0 }
 0x2ea   : > { %v2039_v32 = vsel %vm1591_vm2, %v5326_v58, 0.0  ;;  %v1900_v13 = vmul.f32 1.442695, %v1810_v37  ;;  %v5334_v42 = vpop.eup %4158 }
 0x2eb   : > { %v1896_v38 = vmul.f32 1.442695, %v1808_v62  ;;  %v5336_v4 = vpop.eup %4160  ;;  %v2042_v5 = vsel %vm1591_vm2, %v5334_v42, 0.0 }
 0x2ec   : > { %2025 = vadd.xlane.f32.xlu0 %v2024_v63  ;;  %2037 = vadd.xlane.f32.xlu1 %v2036_v10  ;;  %v2030_v14 = vsel %vm1591_vm2, %v5336_v4, 0.0 }
 0x2ed   : > { %4162 = vpow2.f32 %v1896_v38 }
 0x2ee   : > { %4164 = vpow2.f32 %v1900_v13 }
 0x2ef   : > { %v1996_v20 = vpop.xlane.xlu0 %1995  ;;  %v1675_v18 = vpop.xlane.xlu1 %1674 }
 0x2f0   : > { %4166 = vrcp.f32 %v1996_v20  ;;  %v1811_v22 = vsub.f32 %v5045_v12, %v1675_v18 }
 0x2f2   : > { %v1902_v17 = vmul.f32 1.442695, %v1811_v22 }
 0x2f3   : > { %v5345_v43 = vpop.eup %4162 }
 0x2f4   : > { %2040 = vadd.xlane.f32.xlu0 %v2039_v32  ;;  %2028 = vadd.xlane.f32.xlu1 %v2027_v54  ;;  %v5347_v51 = vpop.eup %4164  ;;  %v2048_v34 = vsel %vm1591_vm2, %v5345_v43, 0.0 }
 0x2f5   : > { %v2054_v20 = vsel %vm1591_vm2, %v5347_v51, 0.0 }
 0x2f7   : > { %v1663_v6 = vpop.xlane.xlu0 %1662  ;;  %v1678_v45 = vpop.xlane.xlu1 %1677 }
 0x2f8   : > { %v1807_v53 = vsub.f32 %v5060_v3, %v1663_v6  ;;  %v1690_v61 = vpop.xlane.xlu2 %1689  ;;  %v1812_v40 = vsub.f32 %v5062_v50, %v1678_v45  ;;  %v4167_v50 = vpop.eup %4166 }
 0x2f9   : > { %v2238_v46 = vmul.f32 %v4167_v50, %v5039_v15 }
 0x2fa   : > { %v1894_v25 = vmul.f32 1.442695, %v1807_v53  ;;  %v1904_v3 = vmul.f32 1.442695, %v1812_v40 }
 0x2fb   : > { %v2302_v37 = vpack.c.bf16 %v2238_v46, %v2238_v46 }
 0x2fc   : > { %4168 = vpow2.f32 %v1894_v25  ;;  %2031 = vadd.xlane.f32.xlu0 %v2030_v14  ;;  %2043 = vadd.xlane.f32.xlu1 %v2042_v5  ;;  %v1816_v25 = vsub.f32 %v5064_v56, %v1690_v61 }
 0x2fd   : > { %v2437_v22 = vunpack.c.l.b16 %v2302_v37 }
 0x2ff   : > { %v1999_v48 = vpop.xlane.xlu0 %1998  ;;  %v2008_v63 = vpop.xlane.xlu1 %2007 }
 0x300   : > { %v2014_v10 = vpop.xlane.xlu2 %2013  ;;  %4170 = vrcp.f32 %v1999_v48 }
 0x301   : > { %4172 = vpow2.f32 %v1904_v3 }
 0x302   : > { %v5349_v12 = vpop.eup %4168  ;;  %4174 = vpow2.f32 %v1902_v17 }
 0x303   : > { %v2045_v18 = vsel %vm1591_vm2, %v5349_v12, 0.0  ;;  %4176 = vrcp.f32 %v1984_v39 }
 0x304   : > { %2055 = vadd.xlane.f32.xlu0 %v2054_v20  ;;  %2049 = vadd.xlane.f32.xlu1 %v2048_v34 }
 0x305   : > { %2046 = vadd.xlane.f32.xlu2 %v2045_v18 }
 0x306   : > { %v4171_v62 = vpop.eup %4170 }
 0x307   : > { %v2239_v32 = vmul.f32 %v4171_v62, %v5073_v2  ;;  %v1669_v54 = vpop.xlane.xlu0 %1668  ;;  %v2011_v38 = vpop.xlane.xlu1 %2010 }
 0x308   : > { %v5359_v13 = vpop.eup %4172  ;;  %v1681_v6 = vpop.xlane.xlu2 %1680  ;;  %v1809_v15 = vsub.f32 %v5091_v44, %v1669_v54  ;;  %v1912_v44 = vmul.f32 1.442695, %v1816_v25 }
 0x309   : > { %v5362_v45 = vpop.eup %4174  ;;  %v2303_v53 = vpack.c.bf16 %v2239_v32, %v2239_v32  ;;  %v2060_v5 = vsel %vm1591_vm2, %v5359_v13, 0.0  ;;  %v1813_v34 = vsub.f32 %v5095_v49, %v1681_v6 }
 0x30a   : > { %v1898_v40 = vmul.f32 1.442695, %v1809_v15  ;;  %v2057_v2 = vsel %vm1591_vm2, %v5362_v45, 0.0  ;;  %v4177_v56 = vpop.eup %4176 }
 0x30b   : > { %v2438_v14 = vunpack.c.l.b16 %v2303_v53  ;;  %v2234_v46 = vmul.f32 %v4177_v56, %v5031_v29  ;;  %v1906_v37 = vmul.f32 1.442695, %v1813_v34 }
 0x30c   : > { %4178 = vpow2.f32 %v1898_v40  ;;  %2061 = vadd.xlane.f32.xlu0 %v2060_v5 }
 0x30d   : > { %v2439_v3 = vpack.c.b16 %v2438_v14, %v2437_v22  ;;  %2058 = vadd.xlane.f32.xlu2 %v2057_v2  ;;  %v2298_v32 = vpack.c.bf16 %v2234_v46, %v2234_v46 }
 0x30f   : > { %3634 = vmatmul.msk.bf16.vlgmr.msrb.gmra.mxu3 %vm1591_vm2, %v2439_v3  ;;  %v1987_v17 = vpop.xlane.xlu0 %1986  ;;  %v5370_v39 = vpop.xlane.xlu1 %1686  ;;  %v2387_v40 = vunpack.c.l.b16 %v2298_v32 }
 0x310   : > { %v1684_v61 = vpop.xlane.xlu2 %1683  ;;  %2653 = vmatpush.bf16.msrb.mxu3 %v4841_v19  ;;  %4180 = vrcp.f32 %v1987_v17 }
 0x311   : > { %v1814_v48 = vsub.f32 %v5111_v31, %v1684_v61  ;;  %4182 = vpow2.f32 %v1912_v44 }
 0x312   : > { %v5374_v50 = vpop.eup %4178 }
 0x313   : > { %v1908_v20 = vmul.f32 1.442695, %v1814_v48  ;;  %v2051_v18 = vsel %vm1591_vm2, %v5374_v50, 0.0 }
 0x314   : > { %2052 = vadd.xlane.f32.xlu1 %v2051_v18 }
 0x315   : > { %4184 = vpow2.f32 %v1908_v20 }
 0x316   : > { %v4181_v62 = vpop.eup %4180  ;;  %4186 = vrcp.f32 %v2014_v10 }
 0x317   : > { %v2235_v19 = vmul.f32 %v4181_v62, %v5109_v7  ;;  %v1693_v31 = vpop.xlane.xlu0 %1692  ;;  %v5381_v54 = vpop.xlane.xlu1 %1707  ;;  %4188 = vrcp.f32 %v2011_v38 }
 0x318   : > { %v5383_v15 = vpop.eup %4182  ;;  %v1817_v29 = vsub.f32 %v5131_v0, %v1693_v31  ;;  %v2002_v49 = vpop.xlane.xlu2 %2001  ;;  %4190 = vrcp.f32 %v2008_v63 }
 0x319   : > { %v2299_v6 = vpack.c.bf16 %v2235_v19, %v2235_v19  ;;  %4192 = vpow2.f32 %v1906_v37  ;;  %v2072_v7 = vsel %vm1591_vm2, %v5383_v15, 0.0 }
 0x31a   : > { %v1914_v53 = vmul.f32 1.442695, %v1817_v29 }
 0x31b   : > { %v5386_v25 = vpop.eup %4184  ;;  %v2388_v22 = vunpack.c.l.b16 %v2299_v6 }
 0x31c   : > { %4194 = vpow2.f32 %v1914_v53  ;;  %2073 = vadd.xlane.f32.xlu1 %v2072_v7  ;;  %v2066_v10 = vsel %vm1591_vm2, %v5386_v25, 0.0  ;;  %v4187_v38 = vpop.eup %4186 }
 0x31d   : > { %v2389_v14 = vpack.c.b16 %v2388_v22, %v2387_v40  ;;  %2067 = vadd.xlane.f32.xlu0 %v2066_v10  ;;  %v4189_v0 = vpop.eup %4188  ;;  %v2244_v34 = vmul.f32 %v4187_v38, %v5079_v33  ;;  %v6097_v40 = vld [vmem:[#allocation24_spill] sm:$0xff] }
 0x31e   : > { %v4191_v63 = vpop.eup %4190  ;;  %v2243_v56 = vmul.f32 %v4189_v0, %v5093_v52  ;;  %v1815_v22 = vsub.f32 %v6097_v40, %v5370_v39 }
 0x31f   : > { %3632 = vmatmul.msk.bf16.vlgmr.msrb.gmra.mxu1 %vm1591_vm2, %v2389_v14  ;;  %v2017_v5 = vpop.xlane.xlu0 %2016  ;;  %v1702_v2 = vpop.xlane.xlu1 %1701  ;;  %v2242_v20 = vmul.f32 %v4191_v63, %v5077_v9  ;;  %v2308_v52 = vpack.c.bf16 %v2244_v34, %v2244_v34  ;;  %v6096_v9 = vld [vmem:[#allocation28_spill] sm:$0xff]  ;;  %v6099_v34 = vld [vmem:[#allocation23_spill] sm:$0xff] }
 0x320   : > { %v5393_v3 = vpop.eup %4192  ;;  %2603 = vmatpush.bf16.msrb.mxu1 %v4818_v41  ;;  %v1699_v44 = vpop.xlane.xlu2 %1698  ;;  %4196 = vrcp.f32 %v2017_v5  ;;  %v1820_v17 = vsub.f32 %v5159_v26, %v1702_v2  ;;  %v2307_v26 = vpack.c.bf16 %v2243_v56, %v2243_v56  ;;  %v1910_v39 = vmul.f32 1.442695, %v1815_v22 }
 0x321   : > { %v1819_v61 = vsub.f32 %v5163_v60, %v1699_v44  ;;  %v2063_v62 = vsel %vm1591_vm2, %v5393_v3, 0.0  ;;  %v2306_v37 = vpack.c.bf16 %v2242_v20, %v2242_v20  ;;  %v2512_v38 = vunpack.c.l.b16 %v2308_v52  ;;  %v6100_v20 = vld [vmem:[#allocation30_spill] sm:$0xff] }
 0x322   : > { %v5399_v48 = vpop.eup %4194  ;;  %v1920_v46 = vmul.f32 1.442695, %v1820_v17  ;;  %v2488_v29 = vunpack.c.l.b16 %v2307_v26 }
 0x323   : > { %v1918_v18 = vmul.f32 1.442695, %v1819_v61  ;;  %v2075_v41 = vsel %vm1591_vm2, %v5399_v48, 0.0  ;;  %v2487_v14 = vunpack.c.l.b16 %v2306_v37  ;;  %v6098_v61 = vld [vmem:[#allocation19_spill] sm:$0xff] }
 0x324   : > { %4198 = vpow2.f32 %v1920_v46  ;;  %2064 = vadd.xlane.f32.xlu1 %v2063_v62  ;;  %v6101_v62 = vld [vmem:[#allocation27_spill] sm:$0xff] }
 0x325   : > { %4200 = vpow2.f32 %v1918_v18  ;;  %2076 = vadd.xlane.f32.xlu0 %v2075_v41  ;;  %v2489_v2 = vpack.c.b16 %v2488_v29, %v2487_v14 }
 0x326   : > { %v4197_v60 = vpop.eup %4196  ;;  %4202 = vrcp.f32 %v2002_v49 }
 0x327   : > { %v2245_v33 = vmul.f32 %v4197_v60, %v5161_v23  ;;  %v1696_v32 = vpop.xlane.xlu0 %1695  ;;  %v2020_v19 = vpop.xlane.xlu1 %2019 }
 0x328   : > { %v1818_v31 = vsub.f32 %v6096_v9, %v1696_v32  ;;  %v1717_v63 = vpop.xlane.xlu2 %1716 }
 0x329   : > { %v2309_v6 = vpack.c.bf16 %v2245_v33, %v2245_v33  ;;  %v1825_v18 = vsub.f32 %v6100_v20, %v1717_v63 }
 0x32a   : > { %v5409_v53 = vpop.eup %4198  ;;  %v1916_v7 = vmul.f32 1.442695, %v1818_v31 }
 0x32b   : > { %v5413_v10 = vpop.eup %4200  ;;  %v2513_v0 = vunpack.c.l.b16 %v2309_v6  ;;  %v2084_v23 = vsel %vm1591_vm2, %v5409_v53, 0.0  ;;  %v1930_v37 = vmul.f32 1.442695, %v1825_v18  ;;  %v6105_v18 = vld [vmem:[#allocation29_spill] sm:$0xff] }
 0x32c   : > { %4204 = vpow2.f32 %v1916_v7  ;;  %v2081_v5 = vsel %vm1591_vm2, %v5413_v10, 0.0  ;;  %2085 = vadd.xlane.f32.xlu1 %v2084_v23  ;;  %v4203_v56 = vpop.eup %4202 }
 0x32d   : > { %v2514_v44 = vpack.c.b16 %v2513_v0, %v2512_v38  ;;  %2082 = vadd.xlane.f32.xlu0 %v2081_v5  ;;  %v2240_v41 = vmul.f32 %v4203_v56, %v6101_v62  ;;  %v6104_v56 = vld [vmem:[#allocation21_spill] sm:$0xff] }
 0x32f   : > { %3637 = vmatmul.msk.bf16.vlgmr.msra.gmra.mxu2 %vm1591_vm2, %v2514_v44  ;;  %v2005_v49 = vpop.xlane.xlu0 %2004  ;;  %3636 = vmatmul.msk.bf16.vlgmr.msra.gmra.mxu1 %vm1591_vm2, %v2489_v2  ;;  %v5421_v17 = vpop.xlane.xlu1 %1710  ;;  %v2304_v33 = vpack.c.bf16 %v2240_v41, %v2240_v41 }
 0x330   : > { %2728 = vmatpush.bf16.msra.mxu2 %v6098_v61  ;;  %4206 = vrcp.f32 %v2005_v49  ;;  %2703 = vmatpush.bf16.msra.mxu1 %v6099_v34  ;;  %v1720_v60 = vpop.xlane.xlu2 %1719  ;;  %v1832_v61 = vsub.f32 %v6104_v56, %v5244_v11 }
 0x331   : > { %4208 = vpow2.f32 %v1910_v39  ;;  %v1826_v6 = vsub.f32 %v5203_v59, %v1720_v60  ;;  %v2462_v14 = vunpack.c.l.b16 %v2304_v33  ;;  %v6103_v39 = vld [vmem:[#allocation5_spill] sm:$0xff]  ;;  %v6106_v33 = vld [vmem:[#allocation34_spill] sm:$0xff] }
 0x332   : > { %v5425_v46 = vpop.eup %4204  ;;  %4210 = vpow2.f32 %v1930_v37 }
 0x333   : > { %v2078_v26 = vsel %vm1591_vm2, %v5425_v46, 0.0  ;;  %4212 = vrcp.f32 %v2020_v19 }
 0x334   : > { %2079 = vadd.xlane.f32.xlu2 %v2078_v26  ;;  %v1944_v26 = vmul.f32 1.442695, %v1832_v61 }
 0x336   : > { %v4207_v52 = vpop.eup %4206 }
 0x337   : > { %v2241_v32 = vmul.f32 %v4207_v52, %v5201_v1  ;;  %v1714_v9 = vpop.xlane.xlu0 %1713  ;;  %v1705_v31 = vpop.xlane.xlu1 %1704  ;;  %v1932_v1 = vmul.f32 1.442695, %v1826_v6 }
 0x338   : > { %v5432_v29 = vpop.eup %4208  ;;  %v1824_v40 = vsub.f32 %v5218_v27, %v1714_v9  ;;  %v1821_v38 = vsub.f32 %v5220_v28, %v1705_v31  ;;  %v6102_v27 = vld [vmem:[#allocation18_spill] sm:$0xff]  ;;  %v5443_v19 = vpop.xlane.xlu2 %1731 }
 0x339   : > { %v2305_v22 = vpack.c.bf16 %v2241_v32, %v2241_v32  ;;  %v2069_v63 = vsel %vm1591_vm2, %v5432_v29, 0.0  ;;  %v5440_v59 = vpop.eup %4210 }
 0x33a   : > { %v1928_v7 = vmul.f32 1.442695, %v1824_v40  ;;  %v1922_v5 = vmul.f32 1.442695, %v1821_v38  ;;  %v4213_v44 = vpop.eup %4212  ;;  %v2099_v34 = vsel %vm1591_vm2, %v5440_v59, 0.0 }
 0x33b   : > { %v2463_v0 = vunpack.c.l.b16 %v2305_v22  ;;  %v2246_v62 = vmul.f32 %v4213_v44, %v6105_v18  ;;  %v6109_v18 = vld [vmem:[#allocation22_spill] sm:$0xff] }
 0x33c   : > { %4214 = vpow2.f32 %v1928_v7  ;;  %2070 = vadd.xlane.f32.xlu2 %v2069_v63 }
 0x33d   : > { %v2464_v23 = vpack.c.b16 %v2463_v0, %v2462_v14  ;;  %4216 = vpow2.f32 %v1932_v1  ;;  %v2310_v11 = vpack.c.bf16 %v2246_v62, %v2246_v62 }
 0x33f   : > { %v1726_v2 = vpop.xlane.xlu0 %1725  ;;  %3635 = vmatmul.msk.bf16.vlgmr.msra.gmra.mxu0 %vm1591_vm2, %v2464_v23  ;;  %v2023_v28 = vpop.xlane.xlu1 %2022  ;;  %v2537_v7 = vunpack.c.l.b16 %v2310_v11 }
 0x340   : > { %2678 = vmatpush.bf16.msra.mxu0 %v6102_v27  ;;  %4218 = vrcp.f32 %v2023_v28  ;;  %v5463_v6 = vpop.xlane.xlu2 %1749  ;;  %v6107_v28 = vld [vmem:[#allocation26_spill] sm:$0xff] }
 0x341   : > { %2865 = vrot.lane.b32.xlu0 %v6103_v39, %s4376_s14  ;;  %4220 = vpow2.f32 %v1922_v5  ;;  %v1822_v44 = vsub.f32 %v6107_v28, %v5381_v54 }
 0x342   : > { %v5447_v49 = vpop.eup %4214  ;;  %4222 = vpow2.f32 %v1944_v26  ;;  %v6110_v26 = vld [vmem:[#allocation33_spill] sm:$0xff] }
 0x343   : > { %v2096_v20 = vsel %vm1591_vm2, %v5447_v49, 0.0  ;;  %v5456_v41 = vpop.eup %4216  ;;  %v1924_v61 = vmul.f32 1.442695, %v1822_v44  ;;  %v3840_v44 = vld [vmem:[%s6026_s3 + $0xe0] sm:$0xff]  }
 0x344   : > { %2100 = vadd.xlane.f32.xlu2 %v2099_v34  ;;  %2097 = vadd.xlane.f32.xlu1 %v2096_v20  ;;  %v2102_v40 = vsel %vm1591_vm2, %v5456_v41, 0.0  ;;  %v6108_v20 = vld [vmem:[#allocation25_spill] sm:$0xff] }
 0x345   : > { %v1833_v62 = vsub.f32 %v6109_v18, %v6108_v20 }
 0x346   : > { %v4219_v60 = vpop.eup %4218 }
 0x347   : > { %v5458_v52 = vpop.xlane.xlu0 %1734  ;;  %v5460_v37 = vpop.eup %4220  ;;  %v2247_v32 = vmul.f32 %v4219_v60, %v6106_v33  ;;  %v1828_v60 = vsub.f32 %v6110_v26, %v1726_v2  ;;  %v1946_v11 = vmul.f32 1.442695, %v1833_v62  ;;  %v6111_v62 = vld [vmem:[#allocation13_spill] sm:$0xff] }
 0x348   : > { %v1729_v9 = vpop.xlane.xlu1 %1728  ;;  %v2087_v22 = vsel %vm1591_vm2, %v5460_v37, 0.0  ;;  %v5471_v63 = vpop.eup %4222 }
 0x349   : > { %v2311_v31 = vpack.c.bf16 %v2247_v32, %v2247_v32  ;;  %v2120_v27 = vsel %vm1591_vm2, %v5471_v63, 0.0  ;;  %v5479_v39 = vpop.xlane.xlu2 %1743  ;;  %v1829_v33 = vsub.f32 %v5259_v24, %v1729_v9 }
 0x34b   : > { %v2538_v38 = vunpack.c.l.b16 %v2311_v31 }
 0x34c   : > { %2103 = vadd.xlane.f32.xlu2 %v2102_v40  ;;  %2088 = vadd.xlane.f32.xlu1 %v2087_v22  ;;  %v1936_v40 = vmul.f32 1.442695, %v1828_v60  ;;  %v3799_v60 = vunpack.c.l.bf16 %v3840_v44 }
 0x34d   : > { %v2539_v14 = vpack.c.b16 %v2538_v38, %v2537_v7  ;;  %v1938_v38 = vmul.f32 1.442695, %v1829_v33 }
 0x34f   : > { %v5469_v0 = vpop.xlane.xlu0 %1752  ;;  %3638 = vmatmul.msk.bf16.vlgmr.msra.gmra.mxu3 %vm1591_vm2, %v2539_v14 }
 0x350   : > { %v1723_v1 = vpop.xlane.xlu1 %1722 }
 0x351   : > { %v1827_v23 = vsub.f32 %v5275_v8, %v1723_v1  ;;  %v5493_v32 = vpop.xlane.xlu2 %1758 }
 0x353   : > { %v1934_v5 = vmul.f32 1.442695, %v1827_v23 }
 0x354   : > { %2121 = vadd.xlane.f32.xlu2 %v2120_v27  ;;  %v1505_v27 = vpop.f32.mrf.mxu0 }
 0x355   : > { %4224 = vpow2.f32 %v1934_v5 }
 0x356   : > { %4226 = vpow2.f32 %v1924_v61 }
 0x357   : > { %v5481_v56 = vpop.xlane.xlu0 %1755  ;;  %4228 = vpow2.f32 %v1946_v11 }
 0x358   : > { %v5483_v34 = vpop.xlane.xlu1 %1746 }
 0x359   : > { %v2035_v24 = vpop.xlane.xlu2 %2034 }
 0x35b   : > { %v5487_v8 = vpop.eup %4224 }
 0x35c   : > { %v2105_v54 = vsel %vm1591_vm2, %v5487_v8, 0.0  ;;  %v5495_v7 = vpop.eup %4226 }
 0x35d   : > { %2106 = vadd.xlane.f32.xlu1 %v2105_v54  ;;  %v2090_v2 = vsel %vm1591_vm2, %v5495_v7, 0.0  ;;  %v5499_v14 = vpop.eup %4228 }
 0x35e   : > { %v2123_v61 = vsel %vm1591_vm2, %v5499_v14, 0.0 }
 0x35f   : > { %v2026_v31 = vpop.xlane.xlu0 %2025 }
 0x360   : > { %v2038_v22 = vpop.xlane.xlu1 %2037 }
 0x361   : > { %4230 = vrcp.f32 %v2038_v22 }
 0x362   : > { %4232 = vrcp.f32 %v2026_v31 }
 0x363   : > { %4234 = vpow2.f32 %v1936_v40 }
 0x364   : > { %4236 = vpow2.f32 %v1938_v38 }
 0x365   : > { %2091 = vadd.xlane.f32.xlu1 %v2090_v2 }
 0x367   : > { %v2041_v9 = vpop.xlane.xlu0 %2040  ;;  %v4231_v1 = vpop.eup %4230 }
 0x368   : > { %4238 = vrcp.f32 %v2041_v9  ;;  %v2029_v23 = vpop.xlane.xlu1 %2028  ;;  %v4233_v5 = vpop.eup %4232  ;;  %v2252_v20 = vmul.f32 %v4231_v1, %v5312_v47  ;;  %v3800_v1 = vunpack.c.h.bf16 %v3840_v44 }
 0x369   : > { %4240 = vrcp.f32 %v2029_v23  ;;  %v5501_v28 = vpop.eup %4234  ;;  %v2248_v18 = vmul.f32 %v4233_v5, %v5310_v30 }
 0x36a   : > { %4242 = vrcp.f32 %v2035_v24  ;;  %v5512_v26 = vpop.eup %4236  ;;  %v2108_v11 = vsel %vm1591_vm2, %v5501_v28, 0.0  ;;  %v2316_v31 = vpack.c.bf16 %v2252_v20, %v2252_v20  ;;  %v5518_v24 = vadd.f32 %v3799_v60, %v1505_v27 }
 0x36b   : > { %2124 = vadd.xlane.f32.xlu0 %v2123_v61  ;;  %v2312_v38 = vpack.c.bf16 %v2248_v18, %v2248_v18  ;;  %v2111_v5 = vsel %vm1591_vm2, %v5512_v26, 0.0  ;;  %v1507_v61 = vpop.f32.mrf.mxu0 }
 0x36c   : > { %2740 = vrot.lane.b32.xlu2 %v6111_v62, %s4376_s14  ;;  %v2612_v62 = vunpack.c.l.b16 %v2316_v31  ;;  %v1760_v44 = vsel %vm1591_vm2, %v5518_v24, -inf }
 0x36d   : > { %2109 = vadd.xlane.f32.xlu1 %v2108_v11  ;;  %v2562_v18 = vunpack.c.l.b16 %v2312_v38 }
 0x36e   : > { %v4239_v54 = vpop.eup %4238 }
 0x36f   : > { %v4241_v33 = vpop.eup %4240  ;;  %v2253_v40 = vmul.f32 %v4239_v54, %v5326_v58  ;;  %v2032_v22 = vpop.xlane.xlu0 %2031  ;;  %v5527_v54 = vadd.f32 %v3800_v1, %v1507_v61 }
 0x370   : > { %v4243_v47 = vpop.eup %4242  ;;  %v2249_v30 = vmul.f32 %v4241_v33, %v5324_v36  ;;  %4244 = vrcp.f32 %v2032_v22  ;;  %v2044_v2 = vpop.xlane.xlu1 %2043  ;;  %v6112_v36 = vld [vmem:[#allocation3_spill] sm:$0xff] }
 0x371   : > { %v2317_v9 = vpack.c.bf16 %v2253_v40, %v2253_v40  ;;  %v2251_v20 = vmul.f32 %v4243_v47, %v5302_v35  ;;  %4246 = vrcp.f32 %v2044_v2  ;;  %v1763_v2 = vsel %vm1591_vm2, %v5527_v54, -inf }
 0x372   : > { %v2313_v23 = vpack.c.bf16 %v2249_v30, %v2249_v30  ;;  %v6113_v30 = vld [vmem:[#allocation17_spill] sm:$0xff] }
 0x373   : > { %v2613_v58 = vunpack.c.l.b16 %v2317_v9  ;;  %2112 = vadd.xlane.f32.xlu0 %v2111_v5  ;;  %v2315_v40 = vpack.c.bf16 %v2251_v20, %v2251_v20 }
 0x374   : > { %v2563_v11 = vunpack.c.l.b16 %v2313_v23  ;;  %2815 = vrot.lane.b32.xlu2 %v6112_v36, %s4376_s14 }
 0x375   : > { %v2614_v27 = vpack.c.b16 %v2613_v58, %v2612_v62  ;;  %1761 = vmax.xlane.f32.xlu1 %v1760_v44  ;;  %v2588_v9 = vunpack.c.l.b16 %v2315_v40 }
 0x376   : > { %v4245_v60 = vpop.eup %4244  ;;  %v2564_v33 = vpack.c.b16 %v2563_v11, %v2562_v18  ;;  %v6114_v18 = vld [vmem:[#allocation20_spill] sm:$0xff] }
 0x377   : > { %v2250_v35 = vmul.f32 %v4245_v60, %v5336_v4  ;;  %3641 = vmatmul.msk.bf16.vlgmr.msrb.gmra.mxu2 %vm1591_vm2, %v2614_v27  ;;  %v2056_v31 = vpop.xlane.xlu0 %2055  ;;  %v4247_v47 = vpop.eup %4246 }
 0x378   : > { %v2047_v22 = vpop.xlane.xlu2 %2046  ;;  %3639 = vmatmul.msk.bf16.vlgmr.msrb.gmra.mxu0 %vm1591_vm2, %v2564_v33  ;;  %v2254_v4 = vmul.f32 %v4247_v47, %v5334_v42  ;;  %v2050_v61 = vpop.xlane.xlu1 %2049 }
 0x379   : > { %v2314_v38 = vpack.c.bf16 %v2250_v35, %v2250_v35  ;;  %4248 = vrcp.f32 %v2047_v22  ;;  %2778 = vmatpush.bf16.msrb.mxu0 %v6113_v30 }
 0x37a   : > { %4250 = vrcp.f32 %v2056_v31  ;;  %v2318_v20 = vpack.c.bf16 %v2254_v4, %v2254_v4 }
 0x37b   : > { %v2587_v1 = vunpack.c.l.b16 %v2314_v38  ;;  %1764 = vmax.xlane.f32.xlu0 %v1763_v2 }
 0x37c   : > { %v2637_v27 = vunpack.c.l.b16 %v2318_v20  ;;  %v6117_v20 = vld [vmem:[#allocation2_spill] sm:$0xff] }
 0x37d   : > { %v2589_v23 = vpack.c.b16 %v2588_v9, %v2587_v1 }
 0x37f   : > { %v4249_v5 = vpop.eup %4248  ;;  %3640 = vmatmul.msk.bf16.vlgmr.msrb.gmra.mxu1 %vm1591_vm2, %v2589_v23  ;;  %v2062_v47 = vpop.xlane.xlu0 %2061 }
 0x380   : > { %v2255_v62 = vmul.f32 %v4249_v5, %v5349_v12  ;;  %v2059_v58 = vpop.xlane.xlu2 %2058  ;;  %2803 = vmatpush.bf16.msrb.mxu1 %v6114_v18  ;;  %v4251_v11 = vpop.eup %4250  ;;  %v6115_v12 = vld [vmem:[#allocation31_spill] sm:$0xff] }
 0x381   : > { %4252 = vrcp.f32 %v2059_v58  ;;  %v2258_v44 = vmul.f32 %v4251_v11, %v5347_v51  ;;  %v1823_v38 = vsub.f32 %v6115_v12, %v5421_v17  ;;  %v6118_v17 = vld [vmem:[#allocation37_spill] sm:$0xff] }
 0x382   : > { %v2319_v36 = vpack.c.bf16 %v2255_v62, %v2255_v62  ;;  %4254 = vrcp.f32 %v2050_v61  ;;  %v1834_v18 = vsub.f32 %v6118_v17, %v5479_v39 }
 0x383   : > { %v2322_v31 = vpack.c.bf16 %v2258_v44, %v2258_v44  ;;  %v1926_v1 = vmul.f32 1.442695, %v1823_v38 }
 0x384   : > { %v2638_v60 = vunpack.c.l.b16 %v2319_v36  ;;  %v1948_v44 = vmul.f32 1.442695, %v1834_v18 }
 0x385   : > { %v2687_v9 = vunpack.c.l.b16 %v2322_v31 }
 0x386   : > { %v2639_v42 = vpack.c.b16 %v2638_v60, %v2637_v27  ;;  %v6119_v60 = vld [vmem:[#allocation10_spill] sm:$0xff] }
 0x387   : > { %v4253_v33 = vpop.eup %4252  ;;  %v2053_v40 = vpop.xlane.xlu1 %2052 }
 0x388   : > { %v4255_v35 = vpop.eup %4254  ;;  %v2259_v22 = vmul.f32 %v4253_v33, %v5362_v45  ;;  %3642 = vmatmul.msk.bf16.vlgmr.msrb.gmra.mxu3 %vm1591_vm2, %v2639_v42  ;;  %4256 = vrcp.f32 %v2053_v40  ;;  %v6116_v45 = vld [vmem:[#allocation12_spill] sm:$0xff] }
 0x389   : > { %v2256_v2 = vmul.f32 %v4255_v35, %v5345_v43  ;;  %4258 = vpow2.f32 %v1926_v1 }
 0x38a   : > { %v2323_v30 = vpack.c.bf16 %v2259_v22, %v2259_v22  ;;  %4260 = vrcp.f32 %v2062_v47 }
 0x38b   : > { %v2320_v5 = vpack.c.bf16 %v2256_v2, %v2256_v2 }
 0x38c   : > { %v2688_v51 = vunpack.c.l.b16 %v2323_v30 }
 0x38d   : > { %v2662_v11 = vunpack.c.l.b16 %v2320_v5 }
 0x38e   : > { %v4257_v4 = vpop.eup %4256  ;;  %v2689_v23 = vpack.c.b16 %v2688_v51, %v2687_v9  ;;  %2890 = vrot.lane.b32.xlu1 %v6116_v45, %s4376_s14 }
 0x38f   : > { %v2257_v61 = vmul.f32 %v4257_v4, %v5374_v50  ;;  %2965 = vrot.lane.b32.xlu0 %v6117_v20, %s4376_s14  ;;  %v2074_v62 = vpop.xlane.xlu1 %2073  ;;  %v5555_v27 = vpop.eup %4258 }
 0x390   : > { %v5550_v58 = vpop.xlane.xlu0 %2067  ;;  %3644 = vmatmul.msk.bf16.vlgmr.msra.gmra.mxu1 %vm1591_vm2, %v2689_v23  ;;  %4262 = vrcp.f32 %v2074_v62  ;;  %v4261_v33 = vpop.eup %4260  ;;  %v2093_v22 = vsel %vm1591_vm2, %v5555_v27, 0.0 }
 0x391   : > { %v2321_v43 = vpack.c.bf16 %v2257_v61, %v2257_v61  ;;  %v2260_v39 = vmul.f32 %v4261_v33, %v5359_v13 }
 0x393   : > { %v2663_v36 = vunpack.c.l.b16 %v2321_v43  ;;  %v2324_v38 = vpack.c.bf16 %v2260_v39, %v2260_v39 }
 0x395   : > { %v2664_v50 = vpack.c.b16 %v2663_v36, %v2662_v11  ;;  %v2712_v13 = vunpack.c.l.b16 %v2324_v38  ;;  %v6120_v36 = vld [vmem:[#allocation32_spill] sm:$0xff] }
 0x396   : > { %2840 = vrot.lane.b32.xlu1 %v6119_v60, %s4376_s14  ;;  %v4263_v35 = vpop.eup %4262 }
 0x397   : > { %3643 = vmatmul.msk.bf16.vlgmr.msra.gmra.mxu0 %vm1591_vm2, %v2664_v50  ;;  %v2065_v42 = vpop.xlane.xlu1 %2064  ;;  %v2264_v31 = vmul.f32 %v4263_v35, %v5383_v15  ;;  %v1830_v50 = vsub.f32 %v6120_v36, %v5443_v19  ;;  %v1837_v19 = vsub.f32 %v5277_v16, %v5469_v0  ;;  %v3841_v16 = vld [vmem:[%s6026_s3 + $0xe8] sm:$0xff]   ;;  %v6122_v0 = vld [vmem:[#allocation6_spill] sm:$0xff] }
 0x398   : > { %v2077_v40 = vpop.xlane.xlu0 %2076  ;;  %4264 = vrcp.f32 %v2065_v42 }
 0x399   : > { %4266 = vrcp.f32 %v2077_v40  ;;  %v2328_v2 = vpack.c.bf16 %v2264_v31, %v2264_v31  ;;  %v1940_v35 = vmul.f32 1.442695, %v1830_v50 }
 0x39a   : > { %4268 = vpow2.f32 %v1948_v44  ;;  %v6121_v44 = vld [vmem:[#allocation35_spill] sm:$0xff] }
 0x39b   : > { %v2762_v5 = vunpack.c.l.b16 %v2328_v2  ;;  %v1836_v60 = vsub.f32 %v6121_v44, %v5463_v6 }
 0x39d   : > { %2094 = vadd.xlane.f32.xlu2 %v2093_v22  ;;  %v1952_v39 = vmul.f32 1.442695, %v1836_v60  ;;  %v3804_v60 = vunpack.c.h.bf16 %v3841_v16 }
 0x39e   : > { %v4265_v47 = vpop.eup %4264 }
 0x39f   : > { %v4267_v12 = vpop.eup %4266  ;;  %v2261_v30 = vmul.f32 %v4265_v47, %v5393_v3  ;;  %v1835_v3 = vsub.f32 %v5295_v21, %v5483_v34  ;;  %v2086_v21 = vpop.xlane.xlu1 %2085 }
 0x3a0   : > { %v2265_v9 = vmul.f32 %v4267_v12, %v5399_v48  ;;  %v2083_v51 = vpop.xlane.xlu0 %2082  ;;  %v5566_v1 = vpop.eup %4268 }
 0x3a1   : > { %v2325_v4 = vpack.c.bf16 %v2261_v30, %v2261_v30  ;;  %4270 = vrcp.f32 %v2083_v51  ;;  %v2126_v45 = vsel %vm1591_vm2, %v5566_v1, 0.0  ;;  %v1950_v17 = vmul.f32 1.442695, %v1835_v3 }
 0x3a2   : > { %v2329_v23 = vpack.c.bf16 %v2265_v9, %v2265_v9  ;;  %v1954_v30 = vmul.f32 1.442695, %v1837_v19 }
 0x3a3   : > { %v2713_v15 = vunpack.c.l.b16 %v2325_v4 }
 0x3a4   : > { %v2763_v61 = vunpack.c.l.b16 %v2329_v23  ;;  %v1532_v23 = vpop.f32.mrf.mxu1 }
 0x3a5   : > { %v2714_v20 = vpack.c.b16 %v2713_v15, %v2712_v13  ;;  %2127 = vadd.xlane.f32.xlu2 %v2126_v45 }
 0x3a6   : > { %v2764_v62 = vpack.c.b16 %v2763_v61, %v2762_v5  ;;  %v3803_v5 = vunpack.c.l.bf16 %v3841_v16 }
 0x3a7   : > { %v2080_v48 = vpop.xlane.xlu2 %2079  ;;  %3645 = vmatmul.msk.bf16.vlgmr.msra.gmra.mxu2 %vm1591_vm2, %v2714_v20  ;;  %v4271_v43 = vpop.eup %4270 }
 0x3a8   : > { %4272 = vrcp.f32 %v2080_v48  ;;  %3647 = vmatmul.msk.bf16.vlgmr.msrb.gmra.mxu0 %vm1591_vm2, %v2764_v62  ;;  %v2267_v18 = vmul.f32 %v4271_v43, %v5413_v10 }
 0x3a9   : > { %4274 = vpow2.f32 %v1950_v17 }
 0x3aa   : > { %v2331_v42 = vpack.c.bf16 %v2267_v18, %v2267_v18  ;;  %4276 = vpow2.f32 %v1940_v35 }
 0x3ab   : > { %4278 = vpow2.f32 %v1952_v39 }
 0x3ac   : > { %v2788_v31 = vunpack.c.l.b16 %v2331_v42 }
 0x3ae   : > { %v4273_v11 = vpop.eup %4272 }
 0x3af   : > { %v2266_v34 = vmul.f32 %v4273_v11, %v5425_v46  ;;  %v2071_v33 = vpop.xlane.xlu2 %2070  ;;  %v5580_v10 = vpop.eup %4274 }
 0x3b0   : > { %v2129_v38 = vsel %vm1591_vm2, %v5580_v10, 0.0  ;;  %v5587_v2 = vpop.eup %4276 }
 0x3b1   : > { %v2330_v40 = vpack.c.bf16 %v2266_v34, %v2266_v34  ;;  %v5589_v9 = vpop.eup %4278  ;;  %v2114_v45 = vsel %vm1591_vm2, %v5587_v2, 0.0 }
 0x3b2   : > { %v2132_v20 = vsel %vm1591_vm2, %v5589_v9, 0.0 }
 0x3b3   : > { %v2787_v22 = vunpack.c.l.b16 %v2330_v40  ;;  %v2866_v47 = vpop.permute.xlu0 %2865 }
 0x3b4   : > { %2878 = vmatpush.bf16.msra.mxu0 %v2866_v47 }
 0x3b5   : > { %v2789_v12 = vpack.c.b16 %v2788_v31, %v2787_v22 }
 0x3b7   : > { %3648 = vmatmul.msk.bf16.vlgmr.msrb.gmra.mxu1 %vm1591_vm2, %v2789_v12  ;;  %v2101_v6 = vpop.xlane.xlu2 %2100  ;;  %v2098_v46 = vpop.xlane.xlu1 %2097 }
 0x3b8   : > { %4280 = vrcp.f32 %v2101_v6 }
 0x3b9   : > { %4282 = vrcp.f32 %v2098_v46  ;;  %2130 = vadd.xlane.f32.xlu0 %v2129_v38  ;;  %v1559_v38 = vpop.f32.mrf.mxu2 }
 0x3ba   : > { %4284 = vrcp.f32 %v2071_v33  ;;  %v1534_v33 = vpop.f32.mrf.mxu1 }
 0x3bb   : > { %4286 = vrcp.f32 %v5550_v58  ;;  %v5616_v39 = vadd.f32 %v3804_v60, %v1534_v33 }
 0x3bc   : > { %4288 = vpow2.f32 %v1954_v30 }
 0x3bd   : > { %2915 = vrot.lane.b32.xlu2 %v6122_v0, %s4376_s14  ;;  %v1769_v46 = vsel %vm1591_vm2, %v5616_v39, -inf }
 0x3be   : > { %v4281_v51 = vpop.eup %4280 }
 0x3bf   : > { %v4283_v4 = vpop.eup %4282  ;;  %v2273_v13 = vmul.f32 %v4281_v51, %v5440_v59  ;;  %v5598_v15 = vpop.xlane.xlu2 %2103  ;;  %v5605_v59 = vadd.f32 %v3803_v5, %v1532_v23 }
 0x3c0   : > { %v2272_v61 = vmul.f32 %v4283_v4, %v5447_v49  ;;  %2115 = vadd.xlane.f32.xlu1 %v2114_v45  ;;  %v2089_v3 = vpop.xlane.xlu1 %2088  ;;  %v4285_v58 = vpop.eup %4284 }
 0x3c1   : > { %v2337_v62 = vpack.c.bf16 %v2273_v13, %v2273_v13  ;;  %2133 = vadd.xlane.f32.xlu0 %v2132_v20  ;;  %v4287_v17 = vpop.eup %4286  ;;  %4290 = vrcp.f32 %v2089_v3  ;;  %v2263_v49 = vmul.f32 %v4285_v58, %v5432_v29  ;;  %v1766_v42 = vsel %vm1591_vm2, %v5605_v59, -inf }
 0x3c2   : > { %v2336_v48 = vpack.c.bf16 %v2272_v61, %v2272_v61  ;;  %v5607_v11 = vpop.eup %4288  ;;  %4292 = vrcp.f32 %v2086_v21  ;;  %v2262_v50 = vmul.f32 %v4287_v17, %v5386_v25  ;;  %v3842_v25 = vld [vmem:[%s6026_s3 + $0xf0] sm:$0xff]  }
 0x3c3   : > { %v2863_v43 = vunpack.c.l.b16 %v2337_v62  ;;  %v2135_v34 = vsel %vm1591_vm2, %v5607_v11, 0.0  ;;  %v2327_v40 = vpack.c.bf16 %v2263_v49, %v2263_v49  ;;  %v3807_v6 = vunpack.c.l.bf16 %v3842_v25  ;;  %v1561_v49 = vpop.f32.mrf.mxu2 }
 0x3c4   : > { %v2862_v18 = vunpack.c.l.b16 %v2336_v48  ;;  %v2326_v29 = vpack.c.bf16 %v2262_v50, %v2262_v50  ;;  %v3808_v48 = vunpack.c.h.bf16 %v3842_v25  ;;  %v5645_v50 = vpop.f32.mrf.mxu0 }
 0x3c5   : > { %v2738_v31 = vunpack.c.l.b16 %v2327_v40  ;;  %v5626_v51 = vadd.f32 %v3807_v6, %v1559_v38 }
 0x3c6   : > { %v2864_v36 = vpack.c.b16 %v2863_v43, %v2862_v18  ;;  %v2737_v47 = vunpack.c.l.b16 %v2326_v29 }
 0x3c7   : > { %v2122_v44 = vpop.xlane.xlu2 %2121  ;;  %v4291_v35 = vpop.eup %4290  ;;  %v1772_v45 = vsel %vm1591_vm2, %v5626_v51, -inf }
 0x3c8   : > { %3651 = vmatmul.msk.bf16.vlgmr.msra.gmra.mxu0 %vm1591_vm2, %v2864_v36  ;;  %1767 = vmax.xlane.f32.xlu1 %v1766_v42  ;;  %v4293_v21 = vpop.eup %4292  ;;  %v2269_v22 = vmul.f32 %v4291_v35, %v5460_v37  ;;  %v2739_v30 = vpack.c.b16 %v2738_v31, %v2737_v47  ;;  %v6123_v37 = vld [vmem:[#allocation36_spill] sm:$0xff]  ;;  %v5643_v36 = vadd.f32 %v3808_v48, %v1561_v49  ;;  %v6125_v42 = vld [vmem:[#allocation14_spill] sm:$0xff]  ;;  %v3843_v49 = vld [vmem:[%s6026_s3 + $0xf8] sm:$0xff]  }
 0x3c9   : > { %2136 = vadd.xlane.f32.xlu0 %v2135_v34  ;;  %v2268_v12 = vmul.f32 %v4293_v21, %v5409_v53  ;;  %v1831_v4 = vsub.f32 %v6123_v37, %v5458_v52  ;;  %v5630_v53 = vpop.f32.mrf.mxu1  ;;  %v6124_v52 = vld [vmem:[#allocation11_spill] sm:$0xff] }
 0x3ca   : > { %v2333_v16 = vpack.c.bf16 %v2269_v22, %v2269_v22  ;;  %v1775_v34 = vsel %vm1591_vm2, %v5643_v36, -inf }
 0x3cb   : > { %v2332_v0 = vpack.c.bf16 %v2268_v12, %v2268_v12  ;;  %v1942_v61 = vmul.f32 1.442695, %v1831_v4 }
 0x3cc   : > { %v2813_v23 = vunpack.c.l.b16 %v2333_v16  ;;  %v5654_v29 = vpop.f32.mrf.mxu0 }
 0x3cd   : > { %v2812_v13 = vunpack.c.l.b16 %v2332_v0  ;;  %4294 = vpow2.f32 %v1942_v61  ;;  %v5670_v61 = vpop.f32.mrf.mxu3 }
 0x3cf   : > { %v2741_v19 = vpop.permute.xlu2 %2740  ;;  %v2814_v20 = vpack.c.b16 %v2813_v23, %v2812_v13 }
 0x3d0   : > { %2753 = vmatpush.bf16.msra.mxu3 %v2741_v19  ;;  %v2107_v62 = vpop.xlane.xlu1 %2106 }
 0x3d1   : > { %1770 = vmax.xlane.f32.xlu0 %v1769_v46  ;;  %v5635_v3 = vpop.f32.mrf.mxu1  ;;  %4296 = vrcp.f32 %v2107_v62 }
 0x3d3   : > { %3646 = vmatmul.msk.bf16.vlgmr.msra.gmra.mxu3 %vm1591_vm2, %v2739_v30  ;;  %v5637_v58 = vpop.eup %4294 }
 0x3d4   : > { %v2117_v18 = vsel %vm1591_vm2, %v5637_v58, 0.0  ;;  %v5666_v38 = vpop.f32.mrf.mxu0 }
 0x3d7   : > { %v2816_v5 = vpop.permute.xlu2 %2815  ;;  %v4297_v35 = vpop.eup %4296 }
 0x3d8   : > { %2828 = vmatpush.bf16.msrb.mxu2 %v2816_v5  ;;  %v2092_v43 = vpop.xlane.xlu1 %2091  ;;  %v2275_v47 = vmul.f32 %v4297_v35, %v5487_v8 }
 0x3d9   : > { %1773 = vmax.xlane.f32.xlu0 %v1772_v45  ;;  %v5647_v60 = vpop.f32.mrf.mxu1  ;;  %v1839_v45 = vsub.f32 %v5279_v57, %v5493_v32  ;;  %v3812_v57 = vunpack.c.h.bf16 %v3843_v49 }
 0x3da   : > { %v2339_v30 = vpack.c.bf16 %v2275_v47, %v2275_v47 }
 0x3db   : > { %3649 = vmatmul.msk.bf16.vlgmr.msrb.gmra.mxu2 %vm1591_vm2, %v2814_v20 }
 0x3dc   : > { %v5676_v62 = vpop.f32.mrf.mxu0 }
 0x3de   : > { %v2125_v17 = vpop.xlane.xlu0 %2124 }
 0x3df   : > { %4298 = vrcp.f32 %v2125_v17  ;;  %v1958_v17 = vmul.f32 1.442695, %v1839_v45 }
 0x3e0   : > { %4300 = vrcp.f32 %v5598_v15  ;;  %v2110_v33 = vpop.xlane.xlu1 %2109 }
 0x3e1   : > { %2990 = vrot.lane.b32.xlu1 %v6124_v52, %s4376_s14  ;;  %4302 = vrcp.f32 %v2122_v44  ;;  %v5656_v25 = vpop.f32.mrf.mxu1  ;;  %v1838_v44 = vsub.f32 %v5293_v55, %v5481_v56  ;;  %v6126_v52 = vld [vmem:[#allocation4_spill] sm:$0xff] }
 0x3e3   : > { %v1956_v4 = vmul.f32 1.442695, %v1838_v44 }
 0x3e5   : > { %v4299_v21 = vpop.eup %4298  ;;  %4304 = vpow2.f32 %v1956_v4 }
 0x3e6   : > { %2118 = vadd.xlane.f32.xlu2 %v2117_v18  ;;  %v2113_v40 = vpop.xlane.xlu0 %2112  ;;  %v4301_v31 = vpop.eup %4300  ;;  %v2281_v12 = vmul.f32 %v4299_v21, %v5499_v14  ;;  %v2888_v14 = vunpack.c.l.b16 %v2339_v30  ;;  %4306 = vrcp.f32 %v2092_v43 }
 0x3e7   : > { %v4303_v22 = vpop.eup %4302  ;;  %v2274_v19 = vmul.f32 %v4301_v31, %v5456_v41  ;;  %4308 = vpow2.f32 %v1958_v17 }
 0x3e8   : > { %v2280_v6 = vmul.f32 %v4303_v22, %v5471_v63  ;;  %v1762_v15 = vpop.xlane.xlu1 %1761  ;;  %v2345_v16 = vpack.c.bf16 %v2281_v12, %v2281_v12  ;;  %4310 = vrcp.f32 %v2113_v40 }
 0x3e9   : > { %v2338_v37 = vpack.c.bf16 %v2274_v19, %v2274_v19  ;;  %4312 = vrcp.f32 %v2110_v33 }
 0x3ea   : > { %v2344_v8 = vpack.c.bf16 %v2280_v6, %v2280_v6  ;;  %v2963_v23 = vunpack.c.l.b16 %v2345_v16 }
 0x3eb   : > { %v2887_v41 = vunpack.c.l.b16 %v2338_v37  ;;  %v5682_v48 = vpop.eup %4304 }
 0x3ec   : > { %v2962_v13 = vunpack.c.l.b16 %v2344_v8  ;;  %v2138_v32 = vsel %vm1591_vm2, %v5682_v48, 0.0  ;;  %v4307_v47 = vpop.eup %4306 }
 0x3ed   : > { %2940 = vrot.lane.b32.xlu0 %v6125_v42, %s4376_s14  ;;  %v2889_v55 = vpack.c.b16 %v2888_v14, %v2887_v41  ;;  %v1588_v42 = vpop.f32.mrf.mxu3  ;;  %v5696_v43 = vpop.eup %4308  ;;  %v2270_v40 = vmul.f32 %v4307_v47, %v5495_v7  ;;  %v6127_v47 = vld [vmem:[#allocation9_spill] sm:$0xff] }
 0x3ee   : > { %1776 = vmax.xlane.f32.xlu2 %v1775_v34  ;;  %v5662_v46 = vpop.xlane.xlu0 %1764  ;;  %v2964_v56 = vpack.c.b16 %v2963_v23, %v2962_v13  ;;  %v1840_v34 = vsub.f32 %v5518_v24, %v1762_v15  ;;  %v5694_v31 = vadd.f32 %v3812_v57, %v1588_v42  ;;  %v4311_v19 = vpop.eup %4310  ;;  %v2141_v30 = vsel %vm1591_vm2, %v5696_v43, 0.0 }
 0x3ef   : > { %v4313_v24 = vpop.eup %4312  ;;  %v2277_v44 = vmul.f32 %v4311_v19, %v5512_v26  ;;  %v2334_v8 = vpack.c.bf16 %v2270_v40, %v2270_v40  ;;  %v3811_v57 = vunpack.c.l.bf16 %v3843_v49 }
 0x3f0   : > { %v1960_v12 = vmul.f32 1.442695, %v1840_v34  ;;  %v1781_v6 = vsel %vm1591_vm2, %v5694_v31, -inf  ;;  %v2276_v7 = vmul.f32 %v4313_v24, %v5501_v28 }
 0x3f1   : > { %v2341_v23 = vpack.c.bf16 %v2277_v44, %v2277_v44  ;;  %v2837_v26 = vunpack.c.l.b16 %v2334_v8  ;;  %v5725_v34 = vadd.f32 %v3811_v57, %v5670_v61 }
 0x3f5   : > { %v5690_v35 = vpop.f32.mrf.mxu0 }
 0x3fc   : > { %v5668_v0 = vpop.f32.mrf.mxu1 }
 0x3fd   : > { %v5708_v37 = vpop.f32.mrf.mxu0 }
 0x400   : > { %v2891_v63 = vpop.permute.xlu1 %2890 }
 0x401   : > { %v2966_v5 = vpop.permute.xlu0 %2965  ;;  %2903 = vmatpush.bf16.msra.mxu1 %v2891_v63  ;;  %v2340_v63 = vpack.c.bf16 %v2276_v7, %v2276_v7 }
 0x402   : > { %2978 = vmatpush.bf16.msrb.mxu0 %v2966_v5 }
 0x403   : > { %v2912_v17 = vunpack.c.l.b16 %v2340_v63 }
 0x404   : > { %v5674_v20 = vpop.f32.mrf.mxu1  ;;  %3652 = vmatmul.msk.bf16.vlgmr.msra.gmra.mxu1 %vm1591_vm2, %v2889_v55  ;;  %v2913_v55 = vunpack.c.l.b16 %v2341_v23 }
 0x405   : > { %3655 = vmatmul.msk.bf16.vlgmr.msrb.gmra.mxu0 %vm1591_vm2, %v2964_v56 }
 0x406   : > { %3015 = vrot.lane.b32.xlu2 %v6126_v52, %s4376_s14 }
 0x408   : > { %v2841_v18 = vpop.permute.xlu1 %2840 }
 0x409   : > { %2853 = vmatpush.bf16.msrb.mxu3 %v2841_v18  ;;  %v1841_v18 = vsub.f32 %v5527_v54, %v5662_v46  ;;  %v6128_v54 = vld [vmem:[#allocation8_spill] sm:$0xff] }
 0x40b   : > { %2139 = vadd.xlane.f32.xlu1 %v2138_v32  ;;  %v1962_v32 = vmul.f32 1.442695, %v1841_v18 }
 0x40d   : > { %v5692_v21 = vpop.f32.mrf.mxu1 }
 0x410   : > { %v2095_v22 = vpop.xlane.xlu2 %2094 }
 0x411   : > { %4314 = vrcp.f32 %v2095_v22 }
 0x412   : > { %4316 = vpow2.f32 %v1960_v12  ;;  %v1778_v12 = vsel %vm1591_vm2, %v5725_v34, -inf }
 0x413   : > { %1782 = vmax.xlane.f32.xlu1 %v1781_v6  ;;  %4318 = vpow2.f32 %v1962_v32 }
 0x414   : > { %v5716_v52 = vpop.f32.mrf.mxu0 }
 0x415   : > { %v5701_v15 = vpop.f32.mrf.mxu1 }
 0x416   : > { %v4061_v33 = vpack.i.bf16 %v5701_v15, %v5692_v21 }
 0x417   : > { %v4315_v16 = vpop.eup %4314  ;;  %2142 = vadd.xlane.f32.xlu0 %v2141_v30 }
 0x418   : > { %v2271_v4 = vmul.f32 %v4315_v16, %v5555_v27  ;;  %v2128_v14 = vpop.xlane.xlu2 %2127  ;;  %v5712_v13 = vpop.eup %4316  ;;  %v2914_v27 = vpack.c.b16 %v2913_v55, %v2912_v17 }
 0x419   : > { %v2144_v45 = vsel %vm1591_vm2, %v5712_v13, 0.0  ;;  %v5731_v19 = vpop.eup %4318 }
 0x41a   : > { %v2335_v41 = vpack.c.bf16 %v2271_v4, %v2271_v4  ;;  %v2147_v61 = vsel %vm1591_vm2, %v5731_v19, 0.0 }
 0x41c   : > { %v2838_v5 = vunpack.c.l.b16 %v2335_v41  ;;  %v5722_v42 = vpop.f32.mrf.mxu0 }
 0x41e   : > { %v2839_v56 = vpack.c.b16 %v2838_v5, %v2837_v26 }
 0x41f   : > { %2145 = vadd.xlane.f32.xlu0 %v2144_v45 }
 0x420   : > { %v2916_v28 = vpop.permute.xlu2 %2915  ;;  %3650 = vmatmul.msk.bf16.vlgmr.msrb.gmra.mxu3 %vm1591_vm2, %v2839_v56 }
 0x421   : > { %2928 = vmatpush.bf16.msra.mxu2 %v2916_v28 }
 0x424   : > { %3653 = vmatmul.msk.bf16.vlgmr.msra.gmra.mxu2 %vm1591_vm2, %v2914_v27 }
 0x425   : > { %v5733_v6 = vpop.f32.mrf.mxu0 }
 0x42c   : > { %v2131_v22 = vpop.xlane.xlu0 %2130  ;;  %3040 = vrot.lane.b32.xlu1 %v6127_v47, %s4376_s14 }
 0x42d   : > { %v5739_v44 = vpop.f32.mrf.mxu0  ;;  %4320 = vrcp.f32 %v2131_v22 }
 0x42f   : > { %1779 = vmax.xlane.f32.xlu2 %v1778_v12 }
 0x433   : > { %3065 = vrot.lane.b32.xlu0 %v6128_v54, %s4376_s14  ;;  %v2116_v46 = vpop.xlane.xlu1 %2115  ;;  %v4321_v23 = vpop.eup %4320 }
 0x434   : > { %v2134_v49 = vpop.xlane.xlu0 %2133 }
 0x437   : > { %2148 = vadd.xlane.f32.xlu2 %v2147_v61 }
 0x43b   : > { %v1768_v40 = vpop.xlane.xlu1 %1767 }
 0x43c   : > { %v2137_v24 = vpop.xlane.xlu0 %2136  ;;  %v1842_v30 = vsub.f32 %v5605_v59, %v1768_v40  ;;  %v2283_v59 = vmul.f32 %v4321_v23, %v5580_v10 }
 0x43e   : > { %v1964_v16 = vmul.f32 1.442695, %v1842_v30  ;;  %v2347_v45 = vpack.c.bf16 %v2283_v59, %v2283_v59 }
 0x440   : > { %4322 = vpow2.f32 %v1964_v16  ;;  %v2988_v18 = vunpack.c.l.b16 %v2347_v45 }
 0x441   : > { %4324 = vrcp.f32 %v2128_v14 }
 0x444   : > { %v1771_v8 = vpop.xlane.xlu0 %1770 }
 0x445   : > { %v1843_v7 = vsub.f32 %v5616_v39, %v1771_v8  ;;  %v5743_v4 = vpop.f32.mrf.mxu0 }
 0x446   : > { %v5745_v41 = vpop.eup %4322 }
 0x447   : > { %v2150_v26 = vsel %vm1591_vm2, %v5745_v41, 0.0  ;;  %v4325_v63 = vpop.eup %4324  ;;  %v1966_v5 = vmul.f32 1.442695, %v1843_v7 }
 0x448   : > { %2151 = vadd.xlane.f32.xlu2 %v2150_v26  ;;  %v2282_v55 = vmul.f32 %v4325_v63, %v5566_v1 }
 0x449   : > { %4326 = vpow2.f32 %v1966_v5 }
 0x44a   : > { %v2346_v27 = vpack.c.bf16 %v2282_v55, %v2282_v55 }
 0x44c   : > { %v1774_v56 = vpop.xlane.xlu0 %1773  ;;  %v2987_v32 = vunpack.c.l.b16 %v2346_v27 }
 0x44d   : > { %v1844_v14 = vsub.f32 %v5626_v51, %v1774_v56  ;;  %v5752_v39 = vpop.f32.mrf.mxu0 }
 0x44e   : > { %v4051_v17 = vpack.i.bf16 %v5752_v39, %v5743_v4  ;;  %v2989_v1 = vpack.c.b16 %v2988_v18, %v2987_v32  ;;  %v5778_v18 = vpop.f32.mrf.mxu1 }
 0x44f   : > { %v1968_v28 = vmul.f32 1.442695, %v1844_v14  ;;  %v5756_v57 = vpop.eup %4326  ;;  %v5770_v14 = vpop.f32.mrf.mxu2 }
 0x450   : > { %v2153_v51 = vsel %vm1591_vm2, %v5756_v57, 0.0 }
 0x451   : > { %4328 = vpow2.f32 %v1968_v28 }
 0x452   : > { %4330 = vrcp.f32 %v2116_v46 }
 0x453   : > { %v2991_v10 = vpop.permute.xlu1 %2990  ;;  %4332 = vrcp.f32 %v2137_v24 }
 0x454   : > { %3003 = vmatpush.bf16.msrb.mxu1 %v2991_v10  ;;  %4334 = vrcp.f32 %v2134_v49  ;;  %v6129_v10 = vld [vmem:[#allocation15_spill] sm:$0xff] }
 0x456   : > { %2154 = vadd.xlane.f32.xlu1 %v2153_v51  ;;  %v6130_v51 = vld [vmem:[#allocation7_spill] sm:$0xff] }
 0x457   : > { %v5760_v22 = vpop.eup %4328  ;;  %3656 = vmatmul.msk.bf16.vlgmr.msrb.gmra.mxu1 %vm1591_vm2, %v2989_v1  ;;  %v5780_v32 = vpop.f32.mrf.mxu2 }
 0x458   : > { %v2156_v47 = vsel %vm1591_vm2, %v5760_v22, 0.0  ;;  %v4331_v54 = vpop.eup %4330 }
 0x459   : > { %2157 = vadd.xlane.f32.xlu2 %v2156_v47  ;;  %v2119_v12 = vpop.xlane.xlu2 %2118  ;;  %v4333_v46 = vpop.eup %4332  ;;  %v2278_v61 = vmul.f32 %v4331_v54, %v5587_v2 }
 0x45a   : > { %4336 = vrcp.f32 %v2119_v12  ;;  %v4335_v40 = vpop.eup %4334  ;;  %v2285_v24 = vmul.f32 %v4333_v46, %v5607_v11  ;;  %v5788_v47 = vpop.f32.mrf.mxu1  ;;  %v6131_v46 = vld [vmem:[#allocation16_spill] sm:$0xff] }
 0x45b   : > { %v2342_v8 = vpack.c.bf16 %v2278_v61, %v2278_v61  ;;  %v2284_v49 = vmul.f32 %v4335_v40, %v5589_v9 }
 0x45c   : > { %v2349_v63 = vpack.c.bf16 %v2285_v24, %v2285_v24  ;;  %v3991_v24 = vpack.i.bf16 %v5739_v44, %v5733_v6 }
 0x45d   : > { %v2937_v55 = vunpack.c.l.b16 %v2342_v8  ;;  %v2348_v56 = vpack.c.bf16 %v2284_v49, %v2284_v49 }
 0x45e   : > { %v3013_v11 = vunpack.c.l.b16 %v2349_v63 }
 0x45f   : > { %v2941_v30 = vpop.permute.xlu0 %2940  ;;  %v3012_v28 = vunpack.c.l.b16 %v2348_v56  ;;  %v5784_v1 = vpop.f32.mrf.mxu2 }
 0x460   : > { %v4337_v16 = vpop.eup %4336  ;;  %2953 = vmatpush.bf16.msra.mxu3 %v2941_v30 }
 0x461   : > { %v2279_v7 = vmul.f32 %v4337_v16, %v5637_v58  ;;  %v1777_v23 = vpop.xlane.xlu2 %1776  ;;  %v3014_v9 = vpack.c.b16 %v3013_v11, %v3012_v28 }
 0x462   : > { %v1845_v26 = vsub.f32 %v5643_v36, %v1777_v23 }
 0x463   : > { %v2343_v5 = vpack.c.bf16 %v2279_v7, %v2279_v7 }
 0x464   : > { %v1970_v59 = vmul.f32 1.442695, %v1845_v26  ;;  %v4001_v26 = vpack.i.bf16 %v5674_v20, %v5668_v0 }
 0x465   : > { %v2938_v2 = vunpack.c.l.b16 %v2343_v5 }
 0x466   : > { %4338 = vpow2.f32 %v1970_v59 }
 0x467   : > { %v2939_v45 = vpack.c.b16 %v2938_v2, %v2937_v55  ;;  %v5794_v61 = vpop.f32.mrf.mxu2 }
 0x469   : > { %v3016_v27 = vpop.permute.xlu2 %3015  ;;  %3654 = vmatmul.msk.bf16.vlgmr.msra.gmra.mxu3 %vm1591_vm2, %v2939_v45 }
 0x46a   : > { %3028 = vmatpush.bf16.msrb.mxu2 %v3016_v27 }
 0x46c   : > { %v5773_v58 = vpop.eup %4338 }
 0x46d   : > { %3657 = vmatmul.msk.bf16.vlgmr.msrb.gmra.mxu2 %vm1591_vm2, %v3014_v9  ;;  %v2159_v36 = vsel %vm1591_vm2, %v5773_v58, 0.0 }
 0x46e   : > { %2160 = vadd.xlane.f32.xlu0 %v2159_v36 }
 0x46f   : > { %v2630_v7 = vpop.f32.mrf.mxu2 }
 0x471   : > { %3090 = vrot.lane.b32.xlu2 %v6129_v10, %s4376_s14 }
 0x477   : > { %v2632_v5 = vpop.f32.mrf.mxu2 }
 0x478   : > { %v4016_v56 = vpack.i.bf16 %v2632_v5, %v2630_v7 }
 0x479   : > { %3115 = vrot.lane.b32.xlu2 %v6130_v51, %s4376_s14 }
 0x47e   : > { %v2140_v12 = vpop.xlane.xlu1 %2139 }
 0x481   : > { %v5790_v54 = vpop.f32.mrf.mxu1 }
 0x482   : > { %3140 = vrot.lane.b32.xlu0 %v6131_v46, %s4376_s14  ;;  %s4378_s14 = smov 8   ;;  %v3986_v46 = vpack.i.bf16 %v5708_v37, %v5690_v35 }
 0x486   : > { %v1783_v40 = vpop.xlane.xlu1 %1782 }
 0x487   : > { %v1847_v30 = vsub.f32 %v5694_v31, %v1783_v40  ;;  %v5818_v40 = vpop.f32.mrf.mxu3 }
 0x489   : > { %v1974_v16 = vmul.f32 1.442695, %v1847_v30  ;;  %v5799_v8 = vpop.f32.mrf.mxu1 }
 0x48a   : > { %v2143_v49 = vpop.xlane.xlu0 %2142  ;;  %3992 = vrot.lane.b32.xlu0 %v3991_v24, %s4377_s19  ;;  %v4066_v23 = vpack.i.bf16 %v5799_v8, %v5790_v54 }
 0x48b   : > { %4340 = vrcp.f32 %v2143_v49 }
 0x48c   : > { %4342 = vpow2.f32 %v1974_v16 }
 0x48d   : > { %4344 = vrcp.f32 %v2140_v12 }
 0x48f   : > { %v5828_v37 = vpop.f32.mrf.mxu3 }
 0x491   : > { %v4341_v6 = vpop.eup %4340 }
 0x492   : > { %v5806_v44 = vpop.eup %4342  ;;  %4002 = vrot.lane.b32.xlu0 %v4001_v26, %s4378_s14  ;;  %v2287_v59 = vmul.f32 %v4341_v6, %v5696_v43  ;;  %v2146_v11 = vpop.xlane.xlu0 %2145 }
 0x493   : > { %v2165_v31 = vsel %vm1591_vm2, %v5806_v44, 0.0  ;;  %v4345_v63 = vpop.eup %4344  ;;  %4346 = vrcp.f32 %v2146_v11 }
 0x494   : > { %2166 = vadd.xlane.f32.xlu1 %v2165_v31  ;;  %v2286_v55 = vmul.f32 %v4345_v63, %v5682_v48  ;;  %v2351_v2 = vpack.c.bf16 %v2287_v59, %v2287_v59  ;;  %v2980_v48 = vpop.f32.mrf.mxu0 }
 0x496   : > { %v2350_v0 = vpack.c.bf16 %v2286_v55, %v2286_v55  ;;  %v3038_v20 = vunpack.c.l.b16 %v2351_v2 }
 0x497   : > { %v5833_v59 = vpop.f32.mrf.mxu3 }
 0x498   : > { %v3037_v45 = vunpack.c.l.b16 %v2350_v0 }
 0x499   : > { %v4347_v12 = vpop.eup %4346 }
 0x49a   : > { %4017 = vrot.lane.b32.xlu0 %v4016_v56, %s4378_s14  ;;  %v3039_v27 = vpack.c.b16 %v3038_v20, %v3037_v45 }
 0x49c   : > { %v2982_v16 = vpop.f32.mrf.mxu0 }
 0x49d   : > { %v3996_v6 = vpack.i.bf16 %v2982_v16, %v2980_v48 }
 0x49e   : > { %v3041_v28 = vpop.permute.xlu1 %3040 }
 0x49f   : > { %3053 = vmatpush.bf16.msrb.mxu3 %v3041_v28  ;;  %v5840_v2 = vpop.f32.mrf.mxu3 }
 0x4a2   : > { %v1780_v9 = vpop.xlane.xlu2 %1779  ;;  %3658 = vmatmul.msk.bf16.vlgmr.msrb.gmra.mxu3 %vm1591_vm2, %v3039_v27 }
 0x4a3   : > { %v1846_v36 = vsub.f32 %v5725_v34, %v1780_v9  ;;  %v2288_v34 = vmul.f32 %v4347_v12, %v5712_v13  ;;  %v5830_v13 = vpop.f32.mrf.mxu2 }
 0x4a5   : > { %v1972_v43 = vmul.f32 1.442695, %v1846_v36  ;;  %v3066_v10 = vpop.permute.xlu0 %3065  ;;  %v2352_v7 = vpack.c.bf16 %v2288_v34, %v2288_v34 }
 0x4a6   : > { %3078 = vmatpush.bf16.msra.mxu0 %v3066_v10 }
 0x4a7   : > { %4348 = vpow2.f32 %v1972_v43  ;;  %v3062_v31 = vunpack.c.l.b16 %v2352_v7  ;;  %v2655_v27 = vpop.f32.mrf.mxu3 }
 0x4aa   : > { %v2149_v51 = vpop.xlane.xlu2 %2148 }
 0x4ab   : > { %4350 = vrcp.f32 %v2149_v51  ;;  %v5835_v56 = vpop.f32.mrf.mxu2 }
 0x4ad   : > { %v5820_v24 = vpop.eup %4348  ;;  %3987 = vrot.lane.b32.xlu1 %v3986_v46, %s4378_s14 }
 0x4ae   : > { %v2162_v30 = vsel %vm1591_vm2, %v5820_v24, 0.0 }
 0x4af   : > { %2163 = vadd.xlane.f32.xlu2 %v2162_v30  ;;  %v2657_v34 = vpop.f32.mrf.mxu3 }
 0x4b1   : > { %v4351_v49 = vpop.eup %4350 }
 0x4b2   : > { %v2289_v26 = vmul.f32 %v4351_v49, %v5731_v19  ;;  %v4006_v19 = vpack.i.bf16 %v5788_v47, %v5778_v18 }
 0x4b3   : > { %v2830_v11 = vpop.f32.mrf.mxu2 }
 0x4b4   : > { %v2353_v35 = vpack.c.bf16 %v2289_v26, %v2289_v26 }
 0x4b5   : > { %3997 = vrot.lane.b32.xlu1 %v3996_v6, %s4379_s20 }
 0x4b6   : > { %v3063_v63 = vunpack.c.l.b16 %v2353_v35 }
 0x4b7   : > { %v2755_v26 = vpop.f32.mrf.mxu3 }
 0x4b8   : > { %v3064_v5 = vpack.c.b16 %v3063_v63, %v3062_v31 }
 0x4ba   : > { %3659 = vmatmul.msk.bf16.vlgmr.msra.gmra.mxu0 %vm1591_vm2, %v3064_v5 }
 0x4bb   : > { %v2152_v55 = vpop.xlane.xlu2 %2151  ;;  %v2832_v47 = vpop.f32.mrf.mxu2 }
 0x4bc   : > { %4352 = vrcp.f32 %v2152_v55  ;;  %v4021_v35 = vpack.i.bf16 %v2832_v47, %v2830_v11 }
 0x4c2   : > { %v4353_v20 = vpop.eup %4352 }
 0x4c3   : > { %v2290_v28 = vmul.f32 %v4353_v20, %v5745_v41  ;;  %v2930_v41 = vpop.f32.mrf.mxu2 }
 0x4c5   : > { %v2354_v36 = vpack.c.bf16 %v2290_v28, %v2290_v28  ;;  %v4031_v28 = vpack.i.bf16 %v2657_v34, %v2655_v27 }
 0x4c7   : > { %4007 = vrot.lane.b32.xlu2 %v4006_v19, %s4377_s19  ;;  %v3087_v51 = vunpack.c.l.b16 %v2354_v36 }
 0x4c9   : > { %v2155_v0 = vpop.xlane.xlu1 %2154 }
 0x4ca   : > { %4354 = vrcp.f32 %v2155_v0  ;;  %v2757_v0 = vpop.f32.mrf.mxu3 }
 0x4cb   : > { %v2932_v63 = vpop.f32.mrf.mxu2  ;;  %v4091_v21 = vpack.i.bf16 %v2757_v0, %v2755_v26 }
 0x4cc   : > { %v2158_v45 = vpop.xlane.xlu2 %2157 }
 0x4cd   : > { %4356 = vrcp.f32 %v2158_v45 }
 0x4d0   : > { %v4355_v9 = vpop.eup %4354 }
 0x4d1   : > { %v2291_v43 = vmul.f32 %v4355_v9, %v5756_v57 }
 0x4d3   : > { %v2355_v10 = vpack.c.bf16 %v2291_v43, %v2291_v43  ;;  %v4357_v7 = vpop.eup %4356  ;;  %v4046_v43 = vpack.i.bf16 %v5722_v42, %v5716_v52  ;;  %v4076_v52 = vpack.i.bf16 %v5835_v56, %v5830_v13  ;;  %v3683_v42 = vld [vmem:[%s6027_s4] sm:$0xff]  ;;  %v4081_v13 = vpack.i.bf16 %v2932_v63, %v2930_v41 }
 0x4d4   : > { %v3091_v48 = vpop.permute.xlu2 %3090  ;;  %v3005_v18 = vpop.f32.mrf.mxu1  ;;  %v2292_v6 = vmul.f32 %v4357_v7, %v5760_v22 }
 0x4d5   : > { %3103 = vmatpush.bf16.msra.mxu1 %v3091_v48  ;;  %v3088_v12 = vunpack.c.l.b16 %v2355_v10  ;;  %v2855_v22 = vpop.f32.mrf.mxu3 }
 0x4d6   : > { %v2356_v5 = vpack.c.bf16 %v2292_v6, %v2292_v6 }
 0x4d7   : > { %v3089_v46 = vpack.c.b16 %v3088_v12, %v3087_v51 }
 0x4d8   : > { %v3112_v20 = vunpack.c.l.b16 %v2356_v5 }
 0x4d9   : > { %3660 = vmatmul.msk.bf16.vlgmr.msra.gmra.mxu1 %vm1591_vm2, %v3089_v46 }
 0x4dc   : > { %v3116_v30 = vpop.permute.xlu2 %3115  ;;  %v3007_v16 = vpop.f32.mrf.mxu1 }
 0x4dd   : > { %3128 = vmatpush.bf16.msra.mxu2 %v3116_v30  ;;  %v4011_v49 = vpack.i.bf16 %v3007_v16, %v3005_v18  ;;  %v2857_v48 = vpop.f32.mrf.mxu3  ;;  %v3684_v18 = vld [vmem:[%s6027_s4 + $0x8] sm:$0xff] }
 0x4de   : > { %v4036_v27 = vpack.i.bf16 %v2857_v48, %v2855_v22  ;;  %3459 = vmatpush.bf16.msrb.mxu0 %v3684_v18 }
 0x4df   : > { %4012 = vrot.lane.b32.xlu1 %v4011_v49, %s4379_s20 }
 0x4e1   : > { %v2161_v57 = vpop.xlane.xlu0 %2160 }
 0x4e2   : > { %4358 = vrcp.f32 %v2161_v57  ;;  %3460 = vmatpush.bf16.msrb.mxu0 %v3683_v42 }
 0x4e7   : > { %4022 = vrot.lane.b32.xlu1 %v4021_v35, %s4377_s19 }
 0x4e8   : > { %v4359_v31 = vpop.eup %4358 }
 0x4e9   : > { %v2293_v55 = vmul.f32 %v4359_v31, %v5773_v58 }
 0x4eb   : > { %v2357_v19 = vpack.c.bf16 %v2293_v55, %v2293_v55 }
 0x4ec   : > { %v2955_v15 = vpop.f32.mrf.mxu3 }
 0x4ed   : > { %v3113_v45 = vunpack.c.l.b16 %v2357_v19 }
 0x4ef   : > { %v3114_v9 = vpack.c.b16 %v3113_v45, %v3112_v20  ;;  %4032 = vrot.lane.b32.xlu1 %v4031_v28, %s4378_s14 }
 0x4f0   : > { %v3030_v36 = vpop.f32.mrf.mxu2 }
 0x4f1   : > { %3661 = vmatmul.msk.bf16.vlgmr.msra.gmra.mxu2 %vm1591_vm2, %v3114_v9 }
 0x4f4   : > { %v3141_v11 = vpop.permute.xlu0 %3140  ;;  %v2957_v56 = vpop.f32.mrf.mxu3 }
 0x4f5   : > { %3153 = vmatpush.bf16.msra.mxu3 %v3141_v11  ;;  %v4096_v51 = vpack.i.bf16 %v2957_v56, %v2955_v15 }
 0x4f7   : > { %4047 = vrot.lane.b32.xlu1 %v4046_v43, %s4378_s14 }
 0x4f8   : > { %v3032_v58 = vpop.f32.mrf.mxu2 }
 0x4f9   : > { %v4026_v10 = vpack.i.bf16 %v3032_v58, %v3030_v36 }
 0x4fb   : > { %4027 = vrot.lane.b32.xlu0 %v4026_v10, %s4379_s20 }
 0x4fc   : > { %v3993_v46 = vpop.permute.xlu0 %3992 }
 0x4fd   : > { %v3995_v30 = vunpack.i.h.bf16 %v3993_v46  ;;  %v3994_v16 = vunpack.i.l.bf16 %v3993_v46 }
 0x4ff   : > { %4062 = vrot.lane.b32.xlu1 %v4061_v33, %s4378_s14 }
 0x503   : > { %4037 = vrot.lane.b32.xlu0 %v4036_v27, %s4377_s19 }
 0x504   : > { %v4003_v9 = vpop.permute.xlu0 %4002 }
 0x505   : > { %v4005_v22 = vunpack.i.h.bf16 %v4003_v9  ;;  %v4004_v11 = vunpack.i.l.bf16 %v4003_v9 }
 0x507   : > { %4077 = vrot.lane.b32.xlu1 %v4076_v52, %s4378_s14  ;;  %v2167_v33 = vpop.xlane.xlu1 %2166  ;;  %v3355_v48 = vsel %vm733_vm1, %v5635_v3, %v4005_v22  ;;  %v3354_v27 = vsel %vm733_vm1, %v5630_v53, %v4004_v11 }
 0x508   : > { %4360 = vrcp.f32 %v2167_v33 }
 0x50b   : > { %4052 = vrot.lane.b32.xlu0 %v4051_v17, %s4377_s19 }
 0x50c   : > { %v4018_v3 = vpop.permute.xlu0 %4017 }
 0x50e   : > { %v4361_v17 = vpop.eup %4360 }
 0x50f   : > { %4092 = vrot.lane.b32.xlu1 %v4091_v21, %s4378_s14  ;;  %v2295_v54 = vmul.f32 %v4361_v17, %v5806_v44 }
 0x511   : > { %v2359_v35 = vpack.c.bf16 %v2295_v54, %v2295_v54 }
 0x513   : > { %4067 = vrot.lane.b32.xlu0 %v4066_v23, %s4377_s19  ;;  %v3138_v5 = vunpack.c.l.b16 %v2359_v35 }
 0x51b   : > { %4082 = vrot.lane.b32.xlu0 %v4081_v13, %s4377_s19 }
 0x51f   : > { %v3988_v47 = vpop.permute.xlu1 %3987 }
 0x520   : > { %v3990_v12 = vunpack.i.h.bf16 %v3988_v47  ;;  %v3989_v4 = vunpack.i.l.bf16 %v3988_v47 }
 0x522   : > { %v2164_v39 = vpop.xlane.xlu2 %2163  ;;  %v3353_v8 = vsel %vm733_vm1, %v5654_v29, %v3990_v12  ;;  %v3352_v23 = vsel %vm733_vm1, %v5645_v50, %v3989_v4  ;;  %v4020_v12 = vunpack.i.h.bf16 %v4018_v3  ;;  %v4019_v4 = vunpack.i.l.bf16 %v4018_v3 }
 0x523   : > { %4362 = vrcp.f32 %v2164_v39  ;;  %4097 = vrot.lane.b32.xlu0 %v4096_v51, %s4377_s19  ;;  %v3368_v26 = vsel %vm1591_vm2, %v3352_v23, %v3994_v16  ;;  %v3369_v6 = vsel %vm1591_vm2, %v3353_v8, %v3995_v30 }
 0x524   : > { %v3357_v54 = vsel %vm733_vm1, %v5780_v32, %v4020_v12  ;;  %v3356_v8 = vsel %vm733_vm1, %v5770_v14, %v4019_v4 }
 0x525   : > { %v3055_v34 = vpop.f32.mrf.mxu3 }
 0x527   : > { %v3998_v41 = vpop.permute.xlu1 %3997 }
 0x528   : > { %v4000_v49 = vunpack.i.h.bf16 %v3998_v41  ;;  %v3999_v57 = vunpack.i.l.bf16 %v3998_v41 }
 0x529   : > { %v4363_v7 = vpop.eup %4362 }
 0x52a   : > { %v2294_v44 = vmul.f32 %v4363_v7, %v5820_v24  ;;  %v3385_v29 = vsel %vm3384_vm3, %v3368_v26, %v3999_v57  ;;  %v3386_v31 = vsel %vm3384_vm3, %v3369_v6, %v4000_v49  ;;  %v4008_v36 = vpop.permute.xlu2 %4007 }
 0x52b   : > { %v3401_v50 = vpack.c.bf16 %v3386_v31, %v3385_v29  ;;  %v4010_v43 = vunpack.i.h.bf16 %v4008_v36  ;;  %v4009_v58 = vunpack.i.l.bf16 %v4008_v36 }
 0x52c   : > { %v2358_v63 = vpack.c.bf16 %v2294_v44, %v2294_v44 }
 0x52d   : > { %3671 = vmatmul.msk.bf16.vlgmr.msrb.gmra.mxu0 %vm300_vm0, %v3401_v50  ;;  %v3057_v19 = vpop.f32.mrf.mxu3  ;;  %v3371_v42 = vsel %vm1591_vm2, %v3355_v48, %v4010_v43  ;;  %v3370_v21 = vsel %vm1591_vm2, %v3354_v27, %v4009_v58 }
 0x52e   : > { %v3137_v55 = vunpack.c.l.b16 %v2358_v63  ;;  %v4041_v0 = vpack.i.bf16 %v3057_v19, %v3055_v34 }
 0x530   : > { %v3139_v20 = vpack.c.b16 %v3138_v5, %v3137_v55  ;;  %4042 = vrot.lane.b32.xlu2 %v4041_v0, %s4379_s20 }
 0x532   : > { %3662 = vmatmul.msk.bf16.vlgmr.msra.gmra.mxu3 %vm1591_vm2, %v3139_v20 }
 0x537   : > { %v3080_v45 = vpop.f32.mrf.mxu0 }
 0x53f   : > { %v3082_v28 = vpop.f32.mrf.mxu0 }
 0x540   : > { %v4056_v24 = vpack.i.bf16 %v3082_v28, %v3080_v45 }
 0x542   : > { %4057 = vrot.lane.b32.xlu2 %v4056_v24, %s4379_s20 }
 0x551   : > { %v4013_v10 = vpop.permute.xlu1 %4012 }
 0x552   : > { %v4015_v18 = vunpack.i.h.bf16 %v4013_v10  ;;  %v4014_v52 = vunpack.i.l.bf16 %v4013_v10 }
 0x554   : > { %v3388_v15 = vsel %vm3384_vm3, %v3371_v42, %v4015_v18  ;;  %v3387_v33 = vsel %vm3384_vm3, %v3370_v21, %v4014_v52 }
 0x555   : > { %v3402_v13 = vpack.c.bf16 %v3388_v15, %v3387_v33 }
 0x556   : > { %v3105_v56 = vpop.f32.mrf.mxu1 }
 0x557   : > { %3672 = vmatmul.msk.bf16.gmra.mxu0 %vm300_vm0, %v3402_v13 }
 0x559   : > { %v4023_v53 = vpop.permute.xlu1 %4022 }
 0x55a   : > { %v4025_v39 = vunpack.i.h.bf16 %v4023_v53  ;;  %v4024_v17 = vunpack.i.l.bf16 %v4023_v53 }
 0x55c   : > { %v3373_v30 = vsel %vm1591_vm2, %v3357_v54, %v4025_v39  ;;  %v3372_v16 = vsel %vm1591_vm2, %v3356_v8, %v4024_v17 }
 0x55e   : > { %v3107_v47 = vpop.f32.mrf.mxu1 }
 0x55f   : > { %v4071_v51 = vpack.i.bf16 %v3107_v47, %v3105_v56 }
 0x561   : > { %4072 = vrot.lane.b32.xlu2 %v4071_v51, %s4379_s20  ;;  %v4033_v32 = vpop.permute.xlu1 %4032 }
 0x562   : > { %v4035_v35 = vunpack.i.h.bf16 %v4033_v32  ;;  %v4034_v44 = vunpack.i.l.bf16 %v4033_v32 }
 0x564   : > { %v3359_v63 = vsel %vm733_vm1, %v5828_v37, %v4035_v35  ;;  %v3358_v5 = vsel %vm733_vm1, %v5818_v40, %v4034_v44 }
 0x569   : > { %v4048_v9 = vpop.permute.xlu1 %4047 }
 0x56a   : > { %v4050_v22 = vunpack.i.h.bf16 %v4048_v9  ;;  %v4049_v37 = vunpack.i.l.bf16 %v4048_v9 }
 0x56c   : > { %v3361_v58 = vsel %vm733_vm1, %v5676_v62, %v4050_v22  ;;  %v3360_v10 = vsel %vm733_vm1, %v5666_v38, %v4049_v37  ;;  %v5935_v62 = vld [vmem:[%s6028_s5] ss:$0 sm:$0xff] }
 0x56d   : > { %v4028_v46 = vpop.permute.xlu0 %4027 }
 0x56e   : > { %v4030_v23 = vunpack.i.h.bf16 %v4028_v46  ;;  %v4029_v34 = vunpack.i.l.bf16 %v4028_v46 }
 0x570   : > { %v3389_v41 = vsel %vm3384_vm3, %v3372_v16, %v4029_v34  ;;  %v3390_v49 = vsel %vm3384_vm3, %v3373_v30, %v4030_v23 }
 0x571   : > { %v3403_v57 = vpack.c.bf16 %v3390_v49, %v3389_v41  ;;  %v4063_v51 = vpop.permute.xlu1 %4062 }
 0x572   : > { %v4065_v53 = vunpack.i.h.bf16 %v4063_v51  ;;  %v4064_v12 = vunpack.i.l.bf16 %v4063_v51 }
 0x573   : > { %3673 = vmatmul.msk.bf16.gmra.mxu0 %vm300_vm0, %v3403_v57 }
 0x574   : > { %v3130_v7 = vpop.f32.mrf.mxu2  ;;  %v3363_v46 = vsel %vm733_vm1, %v5656_v25, %v4065_v53  ;;  %v3362_v54 = vsel %vm733_vm1, %v5647_v60, %v4064_v12 }
 0x575   : > { %v4038_v14 = vpop.permute.xlu0 %4037 }
 0x576   : > { %v4040_v29 = vunpack.i.h.bf16 %v4038_v14  ;;  %v4039_v31 = vunpack.i.l.bf16 %v4038_v14 }
 0x578   : > { %v3374_v0 = vsel %vm1591_vm2, %v3358_v5, %v4039_v31  ;;  %v3375_v20 = vsel %vm1591_vm2, %v3359_v63, %v4040_v29 }
 0x579   : > { %v4078_v25 = vpop.permute.xlu1 %4077 }
 0x57a   : > { %v4079_v32 = vunpack.i.l.bf16 %v4078_v25 }
 0x57c   : > { %v3132_v26 = vpop.f32.mrf.mxu2 }
 0x57d   : > { %v4086_v6 = vpack.i.bf16 %v3132_v26, %v3130_v7  ;;  %v4053_v36 = vpop.permute.xlu0 %4052 }
 0x57e   : > { %v4055_v11 = vunpack.i.h.bf16 %v4053_v36  ;;  %v4054_v40 = vunpack.i.l.bf16 %v4053_v36 }
 0x57f   : > { %4087 = vrot.lane.b32.xlu2 %v4086_v6, %s4379_s20  ;;  %v4080_v6 = vunpack.i.h.bf16 %v4078_v25 }
 0x580   : > { %v3376_v18 = vsel %vm1591_vm2, %v3360_v10, %v4054_v40  ;;  %v3377_v52 = vsel %vm1591_vm2, %v3361_v58, %v4055_v11 }
 0x581   : > { %v3365_v31 = vsel %vm733_vm1, %v5794_v61, %v4080_v6  ;;  %v4093_v11 = vpop.permute.xlu1 %4092 }
 0x582   : > { %v4095_v58 = vunpack.i.h.bf16 %v4093_v11  ;;  %v4094_v10 = vunpack.i.l.bf16 %v4093_v11 }
 0x585   : > { %v4068_v3 = vpop.permute.xlu0 %4067 }
 0x586   : > { %v4070_v4 = vunpack.i.h.bf16 %v4068_v3  ;;  %v4069_v39 = vunpack.i.l.bf16 %v4068_v3 }
 0x588   : > { %v3378_v30 = vsel %vm1591_vm2, %v3362_v54, %v4069_v39  ;;  %v3379_v16 = vsel %vm1591_vm2, %v3363_v46, %v4070_v4 }
 0x58a   : > { %v4043_v50 = vpop.permute.xlu2 %4042 }
 0x58b   : > { %v4045_v55 = vunpack.i.h.bf16 %v4043_v50  ;;  %v4044_v19 = vunpack.i.l.bf16 %v4043_v50  ;;  %v3364_v50 = vsel %vm733_vm1, %v5784_v1, %v4079_v32 }
 0x58d   : > { %v3391_v45 = vsel %vm3384_vm3, %v3374_v0, %v4044_v19  ;;  %v3392_v28 = vsel %vm3384_vm3, %v3375_v20, %v4045_v55  ;;  %v4083_v60 = vpop.permute.xlu0 %4082 }
 0x58e   : > { %v3404_v24 = vpack.c.bf16 %v3392_v28, %v3391_v45  ;;  %v4085_v35 = vunpack.i.h.bf16 %v4083_v60  ;;  %v4084_v44 = vunpack.i.l.bf16 %v4083_v60 }
 0x590   : > { %3674 = vmatmul.msk.bf16.gmra.mxu0 %vm300_vm0, %v3404_v24  ;;  %v3380_v55 = vsel %vm1591_vm2, %v3364_v50, %v4084_v44  ;;  %v3381_v19 = vsel %vm1591_vm2, %v3365_v31, %v4085_v35 }
 0x595   : > { %v4098_v40 = vpop.permute.xlu0 %4097 }
 0x59c   : > { %v4058_v43 = vpop.permute.xlu2 %4057 }
 0x59d   : > { %v4060_v48 = vunpack.i.h.bf16 %v4058_v43  ;;  %v4059_v27 = vunpack.i.l.bf16 %v4058_v43 }
 0x59f   : > { %v3393_v42 = vsel %vm3384_vm3, %v3376_v18, %v4059_v27  ;;  %v3394_v21 = vsel %vm3384_vm3, %v3377_v52, %v4060_v48  ;;  %v4100_v27 = vunpack.i.h.bf16 %v4098_v40  ;;  %v4099_v18 = vunpack.i.l.bf16 %v4098_v40 }
 0x5a0   : > { %v3405_v15 = vpack.c.bf16 %v3394_v21, %v3393_v42  ;;  %v3367_v42 = vsel %vm733_vm1, %v5840_v2, %v4095_v58  ;;  %v3366_v21 = vsel %vm733_vm1, %v5833_v59, %v4094_v10 }
 0x5a2   : > { %3675 = vmatmul.msk.bf16.gmra.mxu0 %vm300_vm0, %v3405_v15 }
 0x5aa   : > { %v3462_v38 = vpop.f32.mrf.mxu0 }
 0x5ab   : > { %v3463_v33 = vadd.f32 %v5935_v62, %v3462_v38 }
 0x5ad   : > { %3502 = vst.msk [vmem:[%s5942_s8] sm:$0xff] %vm300_vm0, %v3463_v33  ;;  %v3382_v33 = vsel %vm1591_vm2, %v3366_v21, %v4099_v18 }
 0x5b2   : > { %v3464_v13 = vpop.f32.mrf.mxu0 }
 0x5b3   : > { %v3465_v56 = vadd.f32 %v5935_v62, %v3464_v13  ;;  %v3383_v13 = vsel %vm1591_vm2, %v3367_v42, %v4100_v27 }
 0x5b5   : > { %3503 = vst.msk [vmem:[%s5942_s8 + $0x8] sm:$0xff] %vm300_vm0, %v3465_v56  ;;  %v3155_v47 = vpop.f32.mrf.mxu3 }
 0x5bb   : > { %v4073_v17 = vpop.permute.xlu2 %4072 }
 0x5bc   : > { %v4075_v8 = vunpack.i.h.bf16 %v4073_v17  ;;  %v4074_v23 = vunpack.i.l.bf16 %v4073_v17 }
 0x5bd   : > { %v3157_v34 = vpop.f32.mrf.mxu3 }
 0x5be   : > { %v4101_v41 = vpack.i.bf16 %v3157_v34, %v3155_v47  ;;  %v3395_v49 = vsel %vm3384_vm3, %v3378_v30, %v4074_v23  ;;  %v3396_v57 = vsel %vm3384_vm3, %v3379_v16, %v4075_v8 }
 0x5bf   : > { %v3406_v7 = vpack.c.bf16 %v3396_v57, %v3395_v49 }
 0x5c0   : > { %4102 = vrot.lane.b32.xlu2 %v4101_v41, %s4379_s20 }
 0x5c1   : > { %3676 = vmatmul.msk.bf16.gmra.mxu0 %vm300_vm0, %v3406_v7 }
 0x5d4   : > { %v3467_v26 = vpop.f32.mrf.mxu0 }
 0x5d5   : > { %v3468_v14 = vadd.f32 %v5935_v62, %v3467_v26 }
 0x5d7   : > { %3504 = vst.msk [vmem:[%s5942_s8 + $0x10] sm:$0xff] %vm300_vm0, %v3468_v14 }
 0x5d9   : > { %v4088_v29 = vpop.permute.xlu2 %4087 }
 0x5da   : > { %v4090_v63 = vunpack.i.h.bf16 %v4088_v29  ;;  %v4089_v5 = vunpack.i.l.bf16 %v4088_v29 }
 0x5dc   : > { %v3397_v0 = vsel %vm3384_vm3, %v3380_v55, %v4089_v5  ;;  %v3398_v20 = vsel %vm3384_vm3, %v3381_v19, %v4090_v63  ;;  %v3469_v28 = vpop.f32.mrf.mxu0 }
 0x5dd   : > { %v3407_v45 = vpack.c.bf16 %v3398_v20, %v3397_v0  ;;  %v3470_v24 = vadd.f32 %v5935_v62, %v3469_v28 }
 0x5df   : > { %3677 = vmatmul.msk.bf16.gmra.mxu0 %vm300_vm0, %v3407_v45  ;;  %3505 = vst.msk [vmem:[%s5942_s8 + $0x18] sm:$0xff] %vm300_vm0, %v3470_v24 }
 0x5f0   : > { %v3472_v1 = vpop.f32.mrf.mxu0 }
 0x5f1   : > { %v3473_v61 = vadd.f32 %v5935_v62, %v3472_v1 }
 0x5f3   : > { %3506 = vst.msk [vmem:[%s5942_s8 + $0x20] sm:$0xff] %vm300_vm0, %v3473_v61 }
 0x5f8   : > { %v3474_v9 = vpop.f32.mrf.mxu0 }
 0x5f9   : > { %v3475_v36 = vadd.f32 %v5935_v62, %v3474_v9 }
 0x5fb   : > { %3507 = vst.msk [vmem:[%s5942_s8 + $0x28] sm:$0xff] %vm300_vm0, %v3475_v36 }
 0x60d   : > { %v3477_v22 = vpop.f32.mrf.mxu0 }
 0x60e   : > { %v3478_v37 = vadd.f32 %v5935_v62, %v3477_v22 }
 0x610   : > { %3508 = vst.msk [vmem:[%s5942_s8 + $0x30] sm:$0xff] %vm300_vm0, %v3478_v37 }
 0x615   : > { %v3479_v43 = vpop.f32.mrf.mxu0 }
 0x616   : > { %v3480_v48 = vadd.f32 %v5935_v62, %v3479_v43 }
 0x618   : > { %3509 = vst.msk [vmem:[%s5942_s8 + $0x38] sm:$0xff] %vm300_vm0, %v3480_v48 }
 0x61a   : > { %v4103_v52 = vpop.permute.xlu2 %4102 }
 0x61b   : > { %v4105_v15 = vunpack.i.h.bf16 %v4103_v52  ;;  %v4104_v38 = vunpack.i.l.bf16 %v4103_v52 }
 0x61d   : > { %v3399_v56 = vsel %vm3384_vm3, %v3382_v33, %v4104_v38  ;;  %v3400_v47 = vsel %vm3384_vm3, %v3383_v13, %v4105_v15 }
 0x61e   : > { %v3408_v51 = vpack.c.bf16 %v3400_v47, %v3399_v56 }
 0x61f   : > { %v3482_v3 = vpop.f32.mrf.mxu0 }
 0x620   : > { %v3483_v2 = vadd.f32 %v5935_v62, %v3482_v3  ;;  %3678 = vmatmul.msk.bf16.gmra.mxu0 %vm300_vm0, %v3408_v51 }
 0x622   : > { %3510 = vst.msk [vmem:[%s5942_s8 + $0x40] sm:$0xff] %vm300_vm0, %v3483_v2 }
 0x627   : > { %v3484_v59 = vpop.f32.mrf.mxu0 }
 0x628   : > { %v3485_v53 = vadd.f32 %v5935_v62, %v3484_v59 }
 0x62a   : > { %3511 = vst.msk [vmem:[%s5942_s8 + $0x48] sm:$0xff] %vm300_vm0, %v3485_v53 }
 0x63e   : > { %v3487_v12 = vpop.f32.mrf.mxu0 }
 0x63f   : > { %v3488_v4 = vadd.f32 %v5935_v62, %v3487_v12 }
 0x641   : > { %3512 = vst.msk [vmem:[%s5942_s8 + $0x50] sm:$0xff] %vm300_vm0, %v3488_v4 }
 0x646   : > { %v3489_v39 = vpop.f32.mrf.mxu0 }
 0x647   : > { %v3490_v17 = vadd.f32 %v5935_v62, %v3489_v39 }
 0x649   : > { %3513 = vst.msk [vmem:[%s5942_s8 + $0x58] sm:$0xff] %vm300_vm0, %v3490_v17 }
 0x65c   : > { %v3492_v46 = vpop.f32.mrf.mxu0 }
 0x65d   : > { %v3493_v54 = vadd.f32 %v5935_v62, %v3492_v46 }
 0x65f   : > { %3514 = vst.msk [vmem:[%s5942_s8 + $0x60] sm:$0xff] %vm300_vm0, %v3493_v54 }
 0x664   : > { %v3494_v8 = vpop.f32.mrf.mxu0 }
 0x665   : > { %v3495_v23 = vadd.f32 %v5935_v62, %v3494_v8 }
 0x667   : > { %3515 = vst.msk [vmem:[%s5942_s8 + $0x68] sm:$0xff] %vm300_vm0, %v3495_v23 }
 0x69d   : > { %v3497_v34 = vpop.f32.mrf.mxu0 }
 0x69e   : > { %v3498_v30 = vadd.f32 %v5935_v62, %v3497_v34 }
 0x6a0   : > { %3516 = vst.msk [vmem:[%s5942_s8 + $0x70] sm:$0xff] %vm300_vm0, %v3498_v30 }
 0x6a5   : > { %v3499_v16 = vpop.f32.mrf.mxu0 }
 0x6a6   : > { %v3500_v41 = vadd.f32 %v5935_v62, %v3499_v16 }
 0x6a8   : > { %3517 = vst.msk [vmem:[%s5942_s8 + $0x78] sm:$0xff] %vm300_vm0, %v3500_v41 }
 0x6a9 PF: > { %s16_s21 = sadd.s32 1, %s4370_s21  }
 0x6aa   : > { %p13_p4 = scmp.ge.s32.totalorder %s16_s21, 4  }
 0x6ac   :  { %15 = sbr.rel (!%p13_p4) target bundleno = 1 (0x1), region = 74 }

</bundles_post_ra>
